<compile_context>
chip_gen: v7x
topology: tpu7x:2x2x1
jax: 0.10.0
libtpu: 0.0.40
codegen_flags: <defaults>
</compile_context>

<pallas_src>
import functools

import jax
import jax.numpy as jnp
import numpy as np
from jax import lax
from jax.experimental import pallas as pl
from jax.experimental.pallas import tpu as pltpu

EPSILON = 1e-8
_COS_EPS_SQ = EPSILON * EPSILON  # max(||a||*||b||, eps) == sqrt(max(na2*nb2, eps^2))


def _round_up(x, m):
    return ((x + m - 1) // m) * m


def _default_compute_dtype():
    """bf16 elementwise/sigmoid on parts with bf16 VALU/EUP (v6e, v7x); f32 otherwise."""
    try:
        kind = jax.devices()[0].device_kind.lower()
    except Exception:  # pragma: no cover - defensive
        return jnp.float32
    if any(tag in kind for tag in ("v6", "v7", "7x")):
        return jnp.bfloat16
    return jnp.float32


def _infonce_kernel(deg2_ref, z_ref, z1_ref, z2_ref,
                    zt_ref, z1t_ref, z2t_ref, adjx_ref, out_ref,
                    *, n_true, n_pad, ew_dtype):
    # Exact scalar padding correction: padded gram columns are sigmoid(0)^2 = 0.25.
    pad_corr = 0.25 * (n_pad - n_true)

    ax = adjx_ref[...].astype(ew_dtype)          # [TM, n_pad] adjacency row slab
    dn = (((1,), (1,)), ((), ()))                # contract over D (A @ B^T form)

    def slab_terms(tile_ref, all_ref):
        # One gram slab at a time: [TM, D] x [n_pad, D]^T on the MXU, f32 acc.
        logits = lax.dot_general(tile_ref[...], all_ref[...], dn,
                                 preferred_element_type=jnp.float32)
        g = jax.nn.sigmoid(logits.astype(ew_dtype))
        # Row reductions with forced f32 accumulation (bf16-safe).
        xy = jnp.sum(ax * g, axis=1, keepdims=True, dtype=jnp.float32)
        ny2 = jnp.sum(g * g, axis=1, keepdims=True, dtype=jnp.float32)
        if pad_corr:
            ny2 = ny2 - pad_corr
        return xy, ny2

    xy0, ny20 = slab_terms(zt_ref, z_ref)        # positive slab; xy0 == E_x_y
    xy1, ny21 = slab_terms(z1t_ref, z1_ref)
    xy2, ny22 = slab_terms(z2t_ref, z2_ref)

    nx2 = deg2_ref[...]                          # [TM, 1] f32, hoisted out of kernel
    pos = xy0 * lax.rsqrt(jnp.maximum(nx2 * ny20, _COS_EPS_SQ))
    neg1 = xy1 * lax.rsqrt(jnp.maximum(nx2 * ny21, _COS_EPS_SQ))
    neg2 = xy2 * lax.rsqrt(jnp.maximum(nx2 * ny22, _COS_EPS_SQ))

    # -E_x_y * log(exp(pos) / den) == -E_x_y * (pos - log(den))
    log_den = jnp.log(jnp.exp(pos) + jnp.exp(neg1) + jnp.exp(neg2) + EPSILON)
    info = -xy0 * (pos - log_den)                # [TM, 1]; padded rows contribute 0

    out_ref[...] = jnp.sum(info, axis=0, keepdims=True).reshape(1, 1, 1)


def to_dense_adj(edge_index, max_num_nodes):
    """Plain-JAX glue equivalent of torch_geometric.utils.to_dense_adj."""
    src, dst = edge_index[0], edge_index[1]
    adj = jnp.zeros((max_num_nodes, max_num_nodes), dtype=jnp.float32)
    return adj.at[src, dst].add(1.0)


def infonce_loss(z, z1, z2, edge_index, max_nodes, *, block_rows=128,
                 compute_dtype=None):
    n_true, d = z.shape
    assert n_true == max_nodes

    if compute_dtype is None:
        compute_dtype = _default_compute_dtype()
    ew_dtype = jnp.dtype(compute_dtype)

    adj_x = to_dense_adj(edge_index, max_nodes)                 # [N, N] f32
    deg2 = jnp.sum(adj_x * adj_x, axis=1, keepdims=True)        # [N, 1] ||adj_x row||^2

    # Row-tile size: multiple of 16 (bf16 sublane packing), capped at block_rows.
    tm = min(block_rows, _round_up(n_true, 16))
    n_pad = _round_up(n_true, tm)

    if n_pad != n_true:
        pad = n_pad - n_true
        z = jnp.pad(z, ((0, pad), (0, 0)))
        z1 = jnp.pad(z1, ((0, pad), (0, 0)))
        z2 = jnp.pad(z2, ((0, pad), (0, 0)))
        adj_x = jnp.pad(adj_x, ((0, pad), (0, pad)))
        deg2 = jnp.pad(deg2, ((0, pad), (0, 0)))

    # Stream the dominant adj_x read as bf16 (edge counts are tiny integers,
    # exactly representable up to 256) -> halves the N^2 HBM traffic.
    # TODO(synk): int8 streaming / in-kernel CSR gather for very large sparse graphs.
    adj_x = adj_x.astype(jnp.bfloat16)

    # MXU operands in the compute dtype (bf16 on v6e/v7x, f32 on v5e); f32 acc always.
    z = z.astype(ew_dtype)
    z1 = z1.astype(ew_dtype)
    z2 = z2.astype(ew_dtype)

    num_tiles = n_pad // tm
    grid = (num_tiles,)

    esize = jnp.dtype(ew_dtype).itemsize
    est = (3 * n_pad * d * esize          # resident z/z1/z2
           + 2 * 2 * tm * n_pad           # double-buffered bf16 adj_x slab
           + 3 * tm * n_pad * 4           # one live f32 gram + elementwise temporaries
           + 6 * tm * d * esize           # row-tile double buffers
           + (1 << 20))                   # headroom
    cp_kwargs = {"dimension_semantics": ("parallel",)}  # per-tile partials -> megacore OK
    if est > (16 << 20):
        cp_kwargs["vmem_limit_bytes"] = int(min(est, 48 << 20))  # v7x-safe cap

    kernel = functools.partial(_infonce_kernel, n_true=n_true, n_pad=n_pad,
                               ew_dtype=ew_dtype)

    partials = pl.pallas_call(
        kernel,
        out_shape=jax.ShapeDtypeStruct((num_tiles, 1, 1), jnp.float32),
        grid=grid,
        in_specs=[
            pl.BlockSpec((tm, 1), lambda i: (i, 0)),       # deg2 row tile (hoisted nx2)
            pl.BlockSpec((n_pad, d), lambda i: (0, 0)),    # z   (resident)
            pl.BlockSpec((n_pad, d), lambda i: (0, 0)),    # z1  (resident)
            pl.BlockSpec((n_pad, d), lambda i: (0, 0)),    # z2  (resident)
            pl.BlockSpec((tm, d), lambda i: (i, 0)),       # z  row tile
            pl.BlockSpec((tm, d), lambda i: (i, 0)),       # z1 row tile
            pl.BlockSpec((tm, d), lambda i: (i, 0)),       # z2 row tile
            pl.BlockSpec((tm, n_pad), lambda i: (i, 0)),   # adj_x row slab (pipelined)
        ],
        out_specs=pl.BlockSpec((1, 1, 1), lambda i: (i, 0, 0)),
        compiler_params=pltpu.CompilerParams(**cp_kwargs),
    )(deg2, z, z1, z2, z, z1, z2, adj_x)

    return jnp.sum(partials) / n_true


# ----------------------------- pure-JAX reference -----------------------------

def _row_cosine_ref(a, b):
    dot = jnp.sum(a * b, axis=1)
    na = jnp.sqrt(jnp.sum(a * a, axis=1))
    nb = jnp.sqrt(jnp.sum(b * b, axis=1))
    return dot / jnp.maximum(na * nb, EPSILON)


def infonce_loss_ref(z, z1, z2, edge_index, max_nodes):
    adj_x = to_dense_adj(edge_index, max_nodes)
    adj_y = jax.nn.sigmoid(z @ z.T)
    adj_y1 = jax.nn.sigmoid(z1 @ z1.T)
    adj_y2 = jax.nn.sigmoid(z2 @ z2.T)
    pos = _row_cosine_ref(adj_x, adj_y)
    n1 = _row_cosine_ref(adj_x, adj_y1)
    n2 = _row_cosine_ref(adj_x, adj_y2)
    e_x_y = jnp.sum(adj_y * adj_x, axis=1)
    info = -e_x_y * jnp.log(jnp.exp(pos) /
                            (jnp.exp(pos) + jnp.exp(n1) + jnp.exp(n2) + EPSILON))
    return jnp.mean(info)


if __name__ == "__main__":
    key = jax.random.PRNGKey(0)
    max_nodes = 256   # N: number of graph nodes (rows of z); 2 row tiles of 128
    hidden = 32       # D: embedding dim
    num_edges = 512

    k1, k2, k3, k4, k5 = jax.random.split(key, 5)
    z = jax.random.normal(k1, (max_nodes, hidden), dtype=jnp.float32)
    z1 = jax.random.normal(k2, (max_nodes, hidden), dtype=jnp.float32)
    z2 = jax.random.normal(k3, (max_nodes, hidden), dtype=jnp.float32)
    src = jax.random.randint(k4, (num_edges,), 0, max_nodes, dtype=jnp.int32)
    dst = jax.random.randint(k5, (num_edges,), 0, max_nodes, dtype=jnp.int32)
    edge_index = jnp.stack([src, dst], axis=0)  # [2, E]

    ref = infonce_loss_ref(z, z1, z2, edge_index, max_nodes)

    # 1) f32 compute path (strict tolerance vs the pure-JAX reference).
    out_f32 = jax.block_until_ready(
        infonce_loss(z, z1, z2, edge_index, max_nodes, compute_dtype=jnp.float32))
    assert jnp.allclose(out_f32, ref, rtol=1e-4, atol=1e-5), (out_f32, ref)

    # 2) Non-multiple-of-tile N to exercise the scalar padding correction (strict).
    n_small = 200
    ei_np = np.asarray(edge_index)
    keep = (ei_np[0] < n_small) & (ei_np[1] < n_small)
    edge_small = jnp.asarray(ei_np[:, keep])
    z_s, z1_s, z2_s = z[:n_small], z1[:n_small], z2[:n_small]
    ref_s = infonce_loss_ref(z_s, z1_s, z2_s, edge_small, n_small)
    out_s = jax.block_until_ready(
        infonce_loss(z_s, z1_s, z2_s, edge_small, n_small, compute_dtype=jnp.float32))
    assert jnp.allclose(out_s, ref_s, rtol=1e-4, atol=1e-5), (out_s, ref_s)

    # 3) Auto compute dtype (bf16 elementwise on v6e/v7x) — loose tolerance sanity check.
    out_auto = jax.block_until_ready(infonce_loss(z, z1, z2, edge_index, max_nodes))
    assert jnp.allclose(out_auto, ref, rtol=1e-1, atol=5e-2), (out_auto, ref)

    print("KERNEL_OK")
</pallas_src>

<mosaic_0001>
module attributes {stable_mosaic.version = 11 : i64} {
  func.func @_infonce_kernel(%arg0: i32, %arg1: memref<128x1xf32, #tpu.memory_space<vmem>>, %arg2: memref<256x32xf32, #tpu.memory_space<vmem>>, %arg3: memref<256x32xf32, #tpu.memory_space<vmem>>, %arg4: memref<256x32xf32, #tpu.memory_space<vmem>>, %arg5: memref<128x32xf32, #tpu.memory_space<vmem>>, %arg6: memref<128x32xf32, #tpu.memory_space<vmem>>, %arg7: memref<128x32xf32, #tpu.memory_space<vmem>>, %arg8: memref<128x256xbf16, #tpu.memory_space<vmem>>, %arg9: memref<1x1x1xf32, #tpu.memory_space<vmem>>) attributes {dimension_semantics = [#tpu.dimension_semantics<parallel>], iteration_bounds = array<i64: 2>, scalar_prefetch = 0 : i64, scratch_operands = 0 : i64, tpu.core_type = #tpu.core_type<tc>, window_params = [{transform_indices = @transform_0, window_bounds = array<i64: 128, 1>}, {pipeline_mode = #tpu.pipeline_mode<synchronous>, transform_indices = @transform_1, window_bounds = array<i64: 256, 32>}, {pipeline_mode = #tpu.pipeline_mode<synchronous>, transform_indices = @transform_2, window_bounds = array<i64: 256, 32>}, {pipeline_mode = #tpu.pipeline_mode<synchronous>, transform_indices = @transform_3, window_bounds = array<i64: 256, 32>}, {transform_indices = @transform_4, window_bounds = array<i64: 128, 32>}, {transform_indices = @transform_5, window_bounds = array<i64: 128, 32>}, {transform_indices = @transform_6, window_bounds = array<i64: 128, 32>}, {transform_indices = @transform_7, window_bounds = array<i64: 128, 256>}, {transform_indices = @transform_8, window_bounds = array<i64: 1, 1, 1>}]} {
    %c0 = arith.constant 0 : index
    %c0_0 = arith.constant 0 : index
    %0 = vector.load %arg8[%c0, %c0_0] : memref<128x256xbf16, #tpu.memory_space<vmem>>, vector<128x256xbf16>
    %1 = arith.extf %0 : vector<128x256xbf16> to vector<128x256xf32>
    %c0_1 = arith.constant 0 : index
    %c0_2 = arith.constant 0 : index
    %2 = vector.load %arg5[%c0_1, %c0_2] : memref<128x32xf32, #tpu.memory_space<vmem>>, vector<128x32xf32>
    %c0_3 = arith.constant 0 : index
    %c0_4 = arith.constant 0 : index
    %3 = vector.load %arg2[%c0_3, %c0_4] : memref<256x32xf32, #tpu.memory_space<vmem>>, vector<256x32xf32>
    %cst = arith.constant dense<0.000000e+00> : vector<128x256xf32>
    %4 = tpu.matmul %2, %3, %cst {dimension_numbers = #tpu.dot_dimension_numbers<[1], [1], [0], [0], [0, 0, 1, 0], [], []>} : vector<128x32xf32>, vector<256x32xf32>, vector<128x256xf32> -> vector<128x256xf32>
    %5 = arith.negf %4 : vector<128x256xf32>
    %6 = math.exp %5 : vector<128x256xf32>
    %cst_5 = arith.constant 1.000000e+00 : f32
    %7 = vector.broadcast %cst_5 : f32 to vector<128x256xf32>
    %8 = arith.addf %7, %6 : vector<128x256xf32>
    %9 = arith.divf %7, %8 : vector<128x256xf32>
    %10 = arith.mulf %1, %9 : vector<128x256xf32>
    %cst_6 = arith.constant dense<0.000000e+00> : vector<128xf32>
    %11 = vector.multi_reduction <add>, %10, %cst_6 [1] : vector<128x256xf32> to vector<128xf32>
    %12 = vector.shape_cast %11 : vector<128xf32> to vector<128x1xf32>
    %13 = arith.mulf %9, %9 : vector<128x256xf32>
    %cst_7 = arith.constant dense<0.000000e+00> : vector<128xf32>
    %14 = vector.multi_reduction <add>, %13, %cst_7 [1] : vector<128x256xf32> to vector<128xf32>
    %15 = vector.shape_cast %14 : vector<128xf32> to vector<128x1xf32>
    %c0_8 = arith.constant 0 : index
    %c0_9 = arith.constant 0 : index
    %16 = vector.load %arg6[%c0_8, %c0_9] : memref<128x32xf32, #tpu.memory_space<vmem>>, vector<128x32xf32>
    %c0_10 = arith.constant 0 : index
    %c0_11 = arith.constant 0 : index
    %17 = vector.load %arg3[%c0_10, %c0_11] : memref<256x32xf32, #tpu.memory_space<vmem>>, vector<256x32xf32>
    %cst_12 = arith.constant dense<0.000000e+00> : vector<128x256xf32>
    %18 = tpu.matmul %16, %17, %cst_12 {dimension_numbers = #tpu.dot_dimension_numbers<[1], [1], [0], [0], [0, 0, 1, 0], [], []>} : vector<128x32xf32>, vector<256x32xf32>, vector<128x256xf32> -> vector<128x256xf32>
    %19 = arith.negf %18 : vector<128x256xf32>
    %20 = math.exp %19 : vector<128x256xf32>
    %cst_13 = arith.constant 1.000000e+00 : f32
    %21 = vector.broadcast %cst_13 : f32 to vector<128x256xf32>
    %22 = arith.addf %21, %20 : vector<128x256xf32>
    %23 = arith.divf %21, %22 : vector<128x256xf32>
    %24 = arith.mulf %1, %23 : vector<128x256xf32>
    %cst_14 = arith.constant dense<0.000000e+00> : vector<128xf32>
    %25 = vector.multi_reduction <add>, %24, %cst_14 [1] : vector<128x256xf32> to vector<128xf32>
    %26 = vector.shape_cast %25 : vector<128xf32> to vector<128x1xf32>
    %27 = arith.mulf %23, %23 : vector<128x256xf32>
    %cst_15 = arith.constant dense<0.000000e+00> : vector<128xf32>
    %28 = vector.multi_reduction <add>, %27, %cst_15 [1] : vector<128x256xf32> to vector<128xf32>
    %29 = vector.shape_cast %28 : vector<128xf32> to vector<128x1xf32>
    %c0_16 = arith.constant 0 : index
    %c0_17 = arith.constant 0 : index
    %30 = vector.load %arg7[%c0_16, %c0_17] : memref<128x32xf32, #tpu.memory_space<vmem>>, vector<128x32xf32>
    %c0_18 = arith.constant 0 : index
    %c0_19 = arith.constant 0 : index
    %31 = vector.load %arg4[%c0_18, %c0_19] : memref<256x32xf32, #tpu.memory_space<vmem>>, vector<256x32xf32>
    %cst_20 = arith.constant dense<0.000000e+00> : vector<128x256xf32>
    %32 = tpu.matmul %30, %31, %cst_20 {dimension_numbers = #tpu.dot_dimension_numbers<[1], [1], [0], [0], [0, 0, 1, 0], [], []>} : vector<128x32xf32>, vector<256x32xf32>, vector<128x256xf32> -> vector<128x256xf32>
    %33 = arith.negf %32 : vector<128x256xf32>
    %34 = math.exp %33 : vector<128x256xf32>
    %cst_21 = arith.constant 1.000000e+00 : f32
    %35 = vector.broadcast %cst_21 : f32 to vector<128x256xf32>
    %36 = arith.addf %35, %34 : vector<128x256xf32>
    %37 = arith.divf %35, %36 : vector<128x256xf32>
    %38 = arith.mulf %1, %37 : vector<128x256xf32>
    %cst_22 = arith.constant dense<0.000000e+00> : vector<128xf32>
    %39 = vector.multi_reduction <add>, %38, %cst_22 [1] : vector<128x256xf32> to vector<128xf32>
    %40 = vector.shape_cast %39 : vector<128xf32> to vector<128x1xf32>
    %41 = arith.mulf %37, %37 : vector<128x256xf32>
    %cst_23 = arith.constant dense<0.000000e+00> : vector<128xf32>
    %42 = vector.multi_reduction <add>, %41, %cst_23 [1] : vector<128x256xf32> to vector<128xf32>
    %43 = vector.shape_cast %42 : vector<128xf32> to vector<128x1xf32>
    %c0_24 = arith.constant 0 : index
    %c0_25 = arith.constant 0 : index
    %44 = vector.load %arg1[%c0_24, %c0_25] : memref<128x1xf32, #tpu.memory_space<vmem>>, vector<128x1xf32>
    %45 = arith.mulf %44, %15 : vector<128x1xf32>
    %cst_26 = arith.constant 1.000000e-16 : f32
    %46 = vector.broadcast %cst_26 : f32 to vector<128x1xf32>
    %47 = arith.maximumf %45, %46 : vector<128x1xf32>
    %48 = math.rsqrt %47 : vector<128x1xf32>
    %49 = arith.mulf %12, %48 : vector<128x1xf32>
    %50 = arith.mulf %44, %29 : vector<128x1xf32>
    %cst_27 = arith.constant 1.000000e-16 : f32
    %51 = vector.broadcast %cst_27 : f32 to vector<128x1xf32>
    %52 = arith.maximumf %50, %51 : vector<128x1xf32>
    %53 = math.rsqrt %52 : vector<128x1xf32>
    %54 = arith.mulf %26, %53 : vector<128x1xf32>
    %55 = arith.mulf %44, %43 : vector<128x1xf32>
    %cst_28 = arith.constant 1.000000e-16 : f32
    %56 = vector.broadcast %cst_28 : f32 to vector<128x1xf32>
    %57 = arith.maximumf %55, %56 : vector<128x1xf32>
    %58 = math.rsqrt %57 : vector<128x1xf32>
    %59 = arith.mulf %40, %58 : vector<128x1xf32>
    %60 = math.exp %49 : vector<128x1xf32>
    %61 = math.exp %54 : vector<128x1xf32>
    %62 = arith.addf %60, %61 : vector<128x1xf32>
    %63 = math.exp %59 : vector<128x1xf32>
    %64 = arith.addf %62, %63 : vector<128x1xf32>
    %cst_29 = arith.constant 9.99999993E-9 : f32
    %65 = vector.broadcast %cst_29 : f32 to vector<128x1xf32>
    %66 = arith.addf %64, %65 : vector<128x1xf32>
    %67 = math.log %66 : vector<128x1xf32>
    %cst_30 = arith.constant 0.000000e+00 : f32
    %68 = vector.broadcast %cst_30 : f32 to vector<128x1xf32>
    %69 = arith.subf %68, %12 : vector<128x1xf32>
    %70 = arith.subf %49, %67 : vector<128x1xf32>
    %71 = arith.mulf %69, %70 : vector<128x1xf32>
    %cst_31 = arith.constant dense<0.000000e+00> : vector<1xf32>
    %72 = vector.multi_reduction <add>, %71, %cst_31 [0] : vector<128x1xf32> to vector<1xf32>
    %73 = vector.shape_cast %72 : vector<1xf32> to vector<1x1xf32>
    %74 = vector.shape_cast %73 : vector<1x1xf32> to vector<1x1x1xf32>
    %c0_32 = arith.constant 0 : index
    %c0_33 = arith.constant 0 : index
    %c0_34 = arith.constant 0 : index
    %75 = vector.load %arg9[%c0_32, %c0_33, %c0_34] : memref<1x1x1xf32, #tpu.memory_space<vmem>>, vector<1x1x1xf32>
    tpu.vector_store %arg9[%c0_32, %c0_33, %c0_34], %74 {strides = array<i32>} : memref<1x1x1xf32, #tpu.memory_space<vmem>>, vector<1x1x1xf32>,
    return
  }
  func.func @transform_0(%arg0: i32) -> (i32, i32) {
    %c0_i32 = arith.constant 0 : i32
    %c0_i32_0 = arith.constant 0 : i32
    return %arg0, %c0_i32 : i32, i32
  }
  func.func @transform_1(%arg0: i32) -> (i32, i32) {
    %c0_i32 = arith.constant 0 : i32
    %c0_i32_0 = arith.constant 0 : i32
    %c0_i32_1 = arith.constant 0 : i32
    return %c0_i32, %c0_i32_0 : i32, i32
  }
  func.func @transform_2(%arg0: i32) -> (i32, i32) {
    %c0_i32 = arith.constant 0 : i32
    %c0_i32_0 = arith.constant 0 : i32
    %c0_i32_1 = arith.constant 0 : i32
    return %c0_i32, %c0_i32_0 : i32, i32
  }
  func.func @transform_3(%arg0: i32) -> (i32, i32) {
    %c0_i32 = arith.constant 0 : i32
    %c0_i32_0 = arith.constant 0 : i32
    %c0_i32_1 = arith.constant 0 : i32
    return %c0_i32, %c0_i32_0 : i32, i32
  }
  func.func @transform_4(%arg0: i32) -> (i32, i32) {
    %c0_i32 = arith.constant 0 : i32
    %c0_i32_0 = arith.constant 0 : i32
    return %arg0, %c0_i32 : i32, i32
  }
  func.func @transform_5(%arg0: i32) -> (i32, i32) {
    %c0_i32 = arith.constant 0 : i32
    %c0_i32_0 = arith.constant 0 : i32
    return %arg0, %c0_i32 : i32, i32
  }
  func.func @transform_6(%arg0: i32) -> (i32, i32) {
    %c0_i32 = arith.constant 0 : i32
    %c0_i32_0 = arith.constant 0 : i32
    return %arg0, %c0_i32 : i32, i32
  }
  func.func @transform_7(%arg0: i32) -> (i32, i32) {
    %c0_i32 = arith.constant 0 : i32
    %c0_i32_0 = arith.constant 0 : i32
    return %arg0, %c0_i32 : i32, i32
  }
  func.func @transform_8(%arg0: i32) -> (i32, i32, i32) {
    %c0_i32 = arith.constant 0 : i32
    %c0_i32_0 = arith.constant 0 : i32
    %c0_i32_1 = arith.constant 0 : i32
    return %arg0, %c0_i32, %c0_i32_0 : i32, i32, i32
  }
}

</mosaic_0001>

<bundles_post_ra>
// kernel: tpu_custom_call.1
= control target key start
LH: loop header
LB: loop body
LE: loop exit
PB: predicated region body
PF: predicated region fallthrough
CT: control target
= control target key end

     0   :  { %s4406_s27 = smov 0   ;;  %s5964_s0 = inlined_call_operand.vmem [shape: f32[256,1], index: 0, kind: input, shape index: {}]   ;;  %s5965_s1 = inlined_call_operand.vmem [shape: f32[256,32], index: 1, kind: input, shape index: {}]   ;;  %s5966_s2 = inlined_call_operand.vmem [shape: f32[256,32], index: 2, kind: input, shape index: {}]   ;;  %s5967_s3 = inlined_call_operand.vmem [shape: f32[256,32], index: 3, kind: input, shape index: {}]   ;;  %s5968_s4 = inlined_call_operand.vmem [shape: f32[256,32], index: 4, kind: input, shape index: {}]   ;;  %s5969_s5 = inlined_call_operand.vmem [shape: f32[256,32], index: 5, kind: input, shape index: {}]   ;;  %s5970_s6 = inlined_call_operand.vmem [shape: f32[256,32], index: 6, kind: input, shape index: {}]   ;;  %s5971_s7 = inlined_call_operand.vmem [shape: bf16[256,256], index: 7, kind: input, shape index: {}]   ;;  %s5972_s8 = inlined_call_operand.vmem [shape: f32[2,1,1], index: 8, kind: output, shape index: {}]  }
   0x1 LB: > { %s4412_s28 = sadd.s32 4294967295, %s4359_s27   ;;  %p3130_p0 = scmp.ge.s32.totalorder %s4359_s27, 1  ;;  %s4359_s27 = sphi %s4406_s27, %s18_s27  }
   0x2   : > { %p308_p1 = scmp.lt.s32.totalorder %s4359_s27, 3 }
   0x4   : > { %p309_p2 = pnand %p3130_p0, %p308_p1 }
   0x6   : > { %312 = sbr.rel (%p309_p2) target bundleno = 735 (0x2df), region = 52 }
   0xd   : > { %v475_v0 = vld [vmem:[%s5965_s1 + $0x80] sm:$0xff]  ;;  %v476_v1 = vld [vmem:[%s5965_s1 + $0x88] sm:$0xff]  ;;  %vm491_vm0 = vcmask 261120   ;;  %v477_v13 = vld [vmem:[%s5965_s1 + $0x90] sm:$0xff]  ;;  %s3131_s11 = sshll.u32 %s4412_s28, 4  ;;  %vm2991_vm2 = vcmask 7168  }
   0xe   : > { %v459_v2 = vld [vmem:[%s5965_s1] sm:$0xff]  ;;  %v3577_v3 = vpack.c.bf16 %v476_v1, %v475_v0  ;;  %vm4427_vm1 = vmpackc.low %vm491_vm0, %vm491_vm0  ;;  %v460_v5 = vld [vmem:[%s5965_s1 + $0x8] sm:$0xff]  ;;  %p362_p3 = scmp.lt.s32.totalorder %s3131_s11, 31  ;;  %p392_p4 = scmp.lt.s32.totalorder %s4412_s28, 1  ;;  %vm3029_vm3 = vcmask 0  }
   0xf   : > { %v1181_v6 = vld [vmem:[%s5966_s2 + $0x80] sm:$0xff]  ;;  %v3580_v7 = vpack.c.bf16 %v460_v5, %v459_v2  ;;  %v1182_v8 = vld [vmem:[%s5966_s2 + $0x88] sm:$0xff]  ;;  %v478_v14 = vld [vmem:[%s5965_s1 + $0x98] sm:$0xff] }
  0x10   : > { %v1165_v9 = vld [vmem:[%s5966_s2] sm:$0xff]  ;;  %v1166_v10 = vld [vmem:[%s5966_s2 + $0x8] sm:$0xff]  ;;  %3579 = vmatprep.subr.msk.bf16.mxu0 %vm4427_vm1, %v3577_v3  ;;  %v3625_v11 = vpack.c.bf16 %v1182_v8, %v1181_v6  ;;  %v3583_v15 = vpack.c.bf16 %v478_v14, %v477_v13  ;;  %v1183_v16 = vld [vmem:[%s5966_s2 + $0x90] sm:$0xff]  ;;  %s6072_s11 = smov (!%p362_p3, %s3131_s11), 31  ;;  %s6074_s28 = smov (!%p392_p4, %s4412_s28), 1 }
  0x11   : > { %v3628_v12 = vpack.c.bf16 %v1166_v10, %v1165_v9  ;;  %3582 = vmatpush3.bf16.xpose.msk.msra.mxu0 %vm4427_vm1, %v3580_v7  ;;  %v1184_v17 = vld [vmem:[%s5966_s2 + $0x98] sm:$0xff]  ;;  %v461_v18 = vld [vmem:[%s5965_s1 + $0x10] sm:$0xff]  ;;  %v479_v21 = vld [vmem:[%s5965_s1 + $0xa0] sm:$0xff]  ;;  %s4521_s21 = sshll.u32 %s6072_s11, 3  ;;  %s394_s20 = scalar_lea.vmem %s5972_s8, %s6074_s28 }
  0x12   : > { %3627 = vmatprep.subr.msk.bf16.mxu1 %vm4427_vm1, %v3625_v11  ;;  %v462_v19 = vld [vmem:[%s5965_s1 + $0x18] sm:$0xff]  ;;  %v3631_v20 = vpack.c.bf16 %v1184_v17, %v1183_v16  ;;  %3585 = vmatprep.subr.msk.bf16.mxu0 %vm4427_vm1, %v3583_v15  ;;  %v480_v22 = vld [vmem:[%s5965_s1 + $0xa8] sm:$0xff]  ;;  %v1167_v23 = vld [vmem:[%s5966_s2 + $0x10] sm:$0xff]  ;;  %s4533_s30 = scalar_lea.vmem %s5968_s4, %s4521_s21  ;;  %s4539_s10 = scalar_lea.vmem %s5969_s5, %s4521_s21 }
  0x13   : > { %3630 = vmatpush3.bf16.xpose.msk.msra.mxu1 %vm4427_vm1, %v3628_v12  ;;  %v1168_v24 = vld [vmem:[%s5966_s2 + $0x18] sm:$0xff]  ;;  %v3586_v25 = vpack.c.bf16 %v462_v19, %v461_v18  ;;  %v1185_v26 = vld [vmem:[%s5966_s2 + $0xa0] sm:$0xff]  ;;  %v1186_v27 = vld [vmem:[%s5966_s2 + $0xa8] sm:$0xff]  ;;  %v3589_v28 = vpack.c.bf16 %v480_v22, %v479_v21  ;;  %s4950_s14 = scalar_lea.vmem %s5970_s6, %s4521_s21  ;;  %s5015_s15 = scalar_lea.vmem %s5971_s7, %s4521_s21 }
  0x14   : > { %3633 = vmatprep.subr.msk.bf16.mxu1 %vm4427_vm1, %v3631_v20  ;;  %v3634_v29 = vpack.c.bf16 %v1168_v24, %v1167_v23  ;;  %v3637_v30 = vpack.c.bf16 %v1186_v27, %v1185_v26  ;;  %v463_v31 = vld [vmem:[%s5965_s1 + $0x20] sm:$0xff]  ;;  %v464_v32 = vld [vmem:[%s5965_s1 + $0x28] sm:$0xff]  ;;  %v481_v33 = vld [vmem:[%s5965_s1 + $0xb0] sm:$0xff]  ;;  %s5557_s18 = scalar_lea.vmem %s5964_s0, %s4521_s21 }
  0x15   : > { %v482_v34 = vld [vmem:[%s5965_s1 + $0xb8] sm:$0xff]  ;;  %v1169_v35 = vld [vmem:[%s5966_s2 + $0x20] sm:$0xff]  ;;  %v1170_v36 = vld [vmem:[%s5966_s2 + $0x28] sm:$0xff]  ;;  %v3592_v37 = vpack.c.bf16 %v464_v32, %v463_v31 }
  0x16   : > { %v1187_v38 = vld [vmem:[%s5966_s2 + $0xb0] sm:$0xff]  ;;  %v1188_v39 = vld [vmem:[%s5966_s2 + $0xb8] sm:$0xff]  ;;  %v3595_v40 = vpack.c.bf16 %v482_v34, %v481_v33  ;;  %v3640_v41 = vpack.c.bf16 %v1170_v36, %v1169_v35  ;;  %v4552_v45 = vld [vmem:[%s4533_s30] sm:$0xff] }
  0x17   : > { %v3643_v42 = vpack.c.bf16 %v1188_v39, %v1187_v38  ;;  %v465_v43 = vld [vmem:[%s5965_s1 + $0x30] sm:$0xff]  ;;  %v466_v44 = vld [vmem:[%s5965_s1 + $0x38] sm:$0xff]  ;;  %v483_v46 = vld [vmem:[%s5965_s1 + $0xc0] sm:$0xff]  ;;  %3417 = vmatprep.mubr.msk.f32.mxu0 %vm491_vm0, %v4552_v45 }
  0x18   : > { %v484_v47 = vld [vmem:[%s5965_s1 + $0xc8] sm:$0xff]  ;;  %v4565_v48 = vld [vmem:[%s4539_s10] sm:$0xff]  ;;  %v1171_v49 = vld [vmem:[%s5966_s2 + $0x30] sm:$0xff]  ;;  %v3598_v51 = vpack.c.bf16 %v466_v44, %v465_v43 }
  0x19   : > { %3588 = vmatpush3.bf16.xpose.msk.msra.mxu0 %vm4427_vm1, %v3586_v25  ;;  %v1172_v50 = vld [vmem:[%s5966_s2 + $0x38] sm:$0xff]  ;;  %3481 = vmatprep.mubr.msk.f32.mxu1 %vm491_vm0, %v4565_v48  ;;  %v1189_v52 = vld [vmem:[%s5966_s2 + $0xc0] sm:$0xff]  ;;  %v1190_v53 = vld [vmem:[%s5966_s2 + $0xc8] sm:$0xff]  ;;  %v3601_v54 = vpack.c.bf16 %v484_v47, %v483_v46 }
  0x1a   : > { %3591 = vmatprep.subr.msk.bf16.mxu0 %vm4427_vm1, %v3589_v28  ;;  %v3646_v55 = vpack.c.bf16 %v1172_v50, %v1171_v49  ;;  %v3649_v56 = vpack.c.bf16 %v1190_v53, %v1189_v52  ;;  %v467_v57 = vld [vmem:[%s5965_s1 + $0x40] sm:$0xff]  ;;  %v468_v58 = vld [vmem:[%s5965_s1 + $0x48] sm:$0xff]  ;;  %v485_v59 = vld [vmem:[%s5965_s1 + $0xd0] sm:$0xff] }
  0x1b   : > { %3636 = vmatpush3.bf16.xpose.msk.msra.mxu1 %vm4427_vm1, %v3634_v29  ;;  %v486_v60 = vld [vmem:[%s5965_s1 + $0xd8] sm:$0xff]  ;;  %v1173_v61 = vld [vmem:[%s5966_s2 + $0x40] sm:$0xff]  ;;  %v1174_v62 = vld [vmem:[%s5966_s2 + $0x48] sm:$0xff]  ;;  %v3604_v63 = vpack.c.bf16 %v468_v58, %v467_v57 }
  0x1c   : > { %3639 = vmatprep.subr.msk.bf16.mxu1 %vm4427_vm1, %v3637_v30  ;;  %v1191_v0 = vld [vmem:[%s5966_s2 + $0xd0] sm:$0xff]  ;;  %v1192_v1 = vld [vmem:[%s5966_s2 + $0xd8] sm:$0xff]  ;;  %v3607_v2 = vpack.c.bf16 %v486_v60, %v485_v59  ;;  %v3652_v3 = vpack.c.bf16 %v1174_v62, %v1173_v61  ;;  %v487_v8 = vld [vmem:[%s5965_s1 + $0xe0] sm:$0xff] }
  0x1d   : > { %v3655_v5 = vpack.c.bf16 %v1192_v1, %v1191_v0  ;;  %v469_v6 = vld [vmem:[%s5965_s1 + $0x50] sm:$0xff]  ;;  %v470_v7 = vld [vmem:[%s5965_s1 + $0x58] sm:$0xff]  ;;  %v488_v9 = vld [vmem:[%s5965_s1 + $0xe8] sm:$0xff] }
  0x1e   : > { %v1175_v10 = vld [vmem:[%s5966_s2 + $0x50] sm:$0xff]  ;;  %v1176_v11 = vld [vmem:[%s5966_s2 + $0x58] sm:$0xff]  ;;  %v3610_v12 = vpack.c.bf16 %v470_v7, %v469_v6  ;;  %v1193_v13 = vld [vmem:[%s5966_s2 + $0xe0] sm:$0xff]  ;;  %v3613_v15 = vpack.c.bf16 %v488_v9, %v487_v8 }
  0x1f   : > { %v1194_v14 = vld [vmem:[%s5966_s2 + $0xe8] sm:$0xff]  ;;  %v3658_v16 = vpack.c.bf16 %v1176_v11, %v1175_v10  ;;  %v471_v18 = vld [vmem:[%s5965_s1 + $0x60] sm:$0xff]  ;;  %v489_v20 = vld [vmem:[%s5965_s1 + $0xf0] sm:$0xff] }
  0x20   : > { %v3661_v17 = vpack.c.bf16 %v1194_v14, %v1193_v13  ;;  %v472_v19 = vld [vmem:[%s5965_s1 + $0x68] sm:$0xff]  ;;  %v490_v21 = vld [vmem:[%s5965_s1 + $0xf8] sm:$0xff]  ;;  %v1177_v22 = vld [vmem:[%s5966_s2 + $0x60] sm:$0xff] }
  0x21   : > { %3594 = vmatpush3.bf16.xpose.msk.msra.mxu0 %vm4427_vm1, %v3592_v37  ;;  %v1178_v23 = vld [vmem:[%s5966_s2 + $0x68] sm:$0xff]  ;;  %v3616_v24 = vpack.c.bf16 %v472_v19, %v471_v18  ;;  %v1195_v25 = vld [vmem:[%s5966_s2 + $0xf0] sm:$0xff]  ;;  %v1196_v26 = vld [vmem:[%s5966_s2 + $0xf8] sm:$0xff]  ;;  %v3619_v27 = vpack.c.bf16 %v490_v21, %v489_v20 }
  0x22   : > { %3597 = vmatprep.subr.msk.bf16.mxu0 %vm4427_vm1, %v3595_v40  ;;  %v3664_v28 = vpack.c.bf16 %v1178_v23, %v1177_v22  ;;  %v3667_v29 = vpack.c.bf16 %v1196_v26, %v1195_v25  ;;  %v473_v30 = vld [vmem:[%s5965_s1 + $0x70] sm:$0xff]  ;;  %v474_v31 = vld [vmem:[%s5965_s1 + $0x78] sm:$0xff]  ;;  %v1886_v32 = vld [vmem:[%s5967_s3 + $0x80] sm:$0xff] }
  0x23   : > { %3642 = vmatpush3.bf16.xpose.msk.msra.mxu1 %vm4427_vm1, %v3640_v41  ;;  %v1887_v33 = vld [vmem:[%s5967_s3 + $0x88] sm:$0xff]  ;;  %v1179_v34 = vld [vmem:[%s5966_s2 + $0x70] sm:$0xff]  ;;  %v1180_v35 = vld [vmem:[%s5966_s2 + $0x78] sm:$0xff]  ;;  %v3622_v36 = vpack.c.bf16 %v474_v31, %v473_v30 }
  0x24   : > { %3645 = vmatprep.subr.msk.bf16.mxu1 %vm4427_vm1, %v3643_v42  ;;  %v3673_v37 = vpack.c.bf16 %v1887_v33, %v1886_v32  ;;  %v3670_v38 = vpack.c.bf16 %v1180_v35, %v1179_v34  ;;  %v1870_v39 = vld [vmem:[%s5967_s3] sm:$0xff]  ;;  %v1871_v40 = vld [vmem:[%s5967_s3 + $0x8] sm:$0xff]  ;;  %v1888_v41 = vld [vmem:[%s5967_s3 + $0x90] sm:$0xff] }
  0x25   : > { %v1889_v42 = vld [vmem:[%s5967_s3 + $0x98] sm:$0xff]  ;;  %v3676_v43 = vpack.c.bf16 %v1871_v40, %v1870_v39  ;;  %v444_v44 = vld [vmem:[%s4533_s30 + $0x8] sm:$0xff]  ;;  %v445_v49 = vld [vmem:[%s4533_s30 + $0x10] sm:$0xff] }
  0x26   : > { %v3679_v46 = vpack.c.bf16 %v1889_v42, %v1888_v41  ;;  %v1150_v47 = vld [vmem:[%s4539_s10 + $0x8] sm:$0xff]  ;;  %v1872_v50 = vld [vmem:[%s5967_s3 + $0x10] sm:$0xff]  ;;  %v447_v57 = vld [vmem:[%s4533_s30 + $0x20] sm:$0xff] }
  0x27   : > { %v1151_v52 = vld [vmem:[%s4539_s10 + $0x10] sm:$0xff]  ;;  %v1874_v58 = vld [vmem:[%s5967_s3 + $0x20] sm:$0xff]  ;;  %v1875_v59 = vld [vmem:[%s5967_s3 + $0x28] sm:$0xff] }
  0x28   : > { %v1892_v60 = vld [vmem:[%s5967_s3 + $0xb0] sm:$0xff]  ;;  %v1893_v61 = vld [vmem:[%s5967_s3 + $0xb8] sm:$0xff]  ;;  %v1153_v62 = vld [vmem:[%s4539_s10 + $0x20] sm:$0xff] }
  0x29   : > { %3600 = vmatpush3.bf16.xpose.msk.msra.mxu0 %vm4427_vm1, %v3598_v51  ;;  %v1891_v51 = vld [vmem:[%s5967_s3 + $0xa8] sm:$0xff]  ;;  %v3691_v1 = vpack.c.bf16 %v1893_v61, %v1892_v60  ;;  %v1877_v6 = vld [vmem:[%s5967_s3 + $0x38] sm:$0xff]  ;;  %v1894_v7 = vld [vmem:[%s5967_s3 + $0xc0] sm:$0xff] }
  0x2a   : > { %3603 = vmatprep.subr.msk.bf16.mxu0 %vm4427_vm1, %v3601_v54  ;;  %v446_v54 = vld [vmem:[%s4533_s30 + $0x18] sm:$0xff]  ;;  %v448_v0 = vld [vmem:[%s4533_s30 + $0x28] sm:$0xff]  ;;  %v1155_v9 = vld [vmem:[%s4539_s10 + $0x30] sm:$0xff] }
  0x2b   : > { %3648 = vmatpush3.bf16.xpose.msk.msra.mxu1 %vm4427_vm1, %v3646_v55  ;;  %v1895_v8 = vld [vmem:[%s5967_s3 + $0xc8] sm:$0xff]  ;;  %v450_v11 = vld [vmem:[%s4533_s30 + $0x38] sm:$0xff]  ;;  %v451_v14 = vld [vmem:[%s4533_s30 + $0x40] sm:$0xff] }
  0x2c   : > { %3651 = vmatprep.subr.msk.bf16.mxu1 %vm4427_vm1, %v3649_v56  ;;  %v1152_v56 = vld [vmem:[%s4539_s10 + $0x18] sm:$0xff]  ;;  %v1157_v19 = vld [vmem:[%s4539_s10 + $0x40] sm:$0xff]  ;;  %v452_v21 = vld [vmem:[%s4533_s30 + $0x48] sm:$0xff] }
  0x2d   : > { %v1156_v13 = vld [vmem:[%s4539_s10 + $0x38] sm:$0xff]  ;;  %v1158_v23 = vld [vmem:[%s4539_s10 + $0x48] sm:$0xff]  ;;  %v1880_v25 = vld [vmem:[%s5967_s3 + $0x50] sm:$0xff] }
  0x2e   : > { %v1897_v18 = vld [vmem:[%s5967_s3 + $0xd8] sm:$0xff]  ;;  %v455_v34 = vld [vmem:[%s4533_s30 + $0x60] sm:$0xff]  ;;  %v456_v41 = vld [vmem:[%s4533_s30 + $0x68] sm:$0xff] }
  0x2f   : > { %v1881_v26 = vld [vmem:[%s5967_s3 + $0x58] sm:$0xff]  ;;  %v1882_v35 = vld [vmem:[%s5967_s3 + $0x60] sm:$0xff]  ;;  %v1856_v4 = vld [vmem:[%s4950_s14 + $0x10] sm:$0xff] }
  0x30   : > { %v3706_v30 = vpack.c.bf16 %v1881_v26, %v1880_v25  ;;  %v454_v31 = vld [vmem:[%s4533_s30 + $0x58] sm:$0xff]  ;;  %v1161_v39 = vld [vmem:[%s4539_s10 + $0x60] sm:$0xff]  ;;  %v1859_v60 = vld [vmem:[%s4950_s14 + $0x28] sm:$0xff] }
  0x31   : > { %3606 = vmatpush3.bf16.xpose.msk.msra.mxu0 %vm4427_vm1, %v3604_v63  ;;  %v3688_v63 = vpack.c.bf16 %v1875_v59, %v1874_v58  ;;  %v1160_v33 = vld [vmem:[%s4539_s10 + $0x58] sm:$0xff]  ;;  %v1858_v58 = vld [vmem:[%s4950_s14 + $0x20] sm:$0xff]  ;;  %v1867_v61 = vld [vmem:[%s4950_s14 + $0x68] sm:$0xff] }
  0x32   : > { %3609 = vmatprep.subr.msk.bf16.mxu0 %vm4427_vm1, %v3607_v2  ;;  %v1154_v2 = vld [vmem:[%s4539_s10 + $0x28] sm:$0xff]  ;;  %v1866_v59 = vld [vmem:[%s4950_s14 + $0x60] sm:$0xff] }
  0x33   : > { %3654 = vmatpush3.bf16.xpose.msk.msra.mxu1 %vm4427_vm1, %v3652_v3  ;;  %v449_v3 = vld [vmem:[%s4533_s30 + $0x30] sm:$0xff] }
  0x34   : > { %3657 = vmatprep.subr.msk.bf16.mxu1 %vm4427_vm1, %v3655_v5  ;;  %v1876_v5 = vld [vmem:[%s5967_s3 + $0x30] sm:$0xff] }
  0x35   : > { %v3694_v10 = vpack.c.bf16 %v1877_v6, %v1876_v5 }
  0x39   : > { %3612 = vmatpush3.bf16.xpose.msk.msra.mxu0 %vm4427_vm1, %v3610_v12  ;;  %v3697_v12 = vpack.c.bf16 %v1895_v8, %v1894_v7 }
  0x3a   : > { %3615 = vmatprep.subr.msk.bf16.mxu0 %vm4427_vm1, %v3613_v15  ;;  %v1878_v15 = vld [vmem:[%s5967_s3 + $0x40] sm:$0xff] }
  0x3b   : > { %3660 = vmatpush3.bf16.xpose.msk.msra.mxu1 %vm4427_vm1, %v3658_v16  ;;  %v1879_v16 = vld [vmem:[%s5967_s3 + $0x48] sm:$0xff] }
  0x3c   : > { %3663 = vmatprep.subr.msk.bf16.mxu1 %vm4427_vm1, %v3661_v17  ;;  %v1896_v17 = vld [vmem:[%s5967_s3 + $0xd0] sm:$0xff]  ;;  %v3700_v20 = vpack.c.bf16 %v1879_v16, %v1878_v15 }
  0x3d   : > { %v3703_v22 = vpack.c.bf16 %v1897_v18, %v1896_v17 }
  0x41   : > { %3618 = vmatpush3.bf16.xpose.msk.msra.mxu0 %vm4427_vm1, %v3616_v24  ;;  %v453_v24 = vld [vmem:[%s4533_s30 + $0x50] sm:$0xff] }
  0x42   : > { %3621 = vmatprep.subr.msk.bf16.mxu0 %vm4427_vm1, %v3619_v27  ;;  %v1898_v27 = vld [vmem:[%s5967_s3 + $0xe0] sm:$0xff] }
  0x43   : > { %3666 = vmatpush3.bf16.xpose.msk.msra.mxu1 %vm4427_vm1, %v3664_v28  ;;  %v1899_v28 = vld [vmem:[%s5967_s3 + $0xe8] sm:$0xff] }
  0x44   : > { %3669 = vmatprep.subr.msk.bf16.mxu1 %vm4427_vm1, %v3667_v29  ;;  %v1159_v29 = vld [vmem:[%s4539_s10 + $0x50] sm:$0xff]  ;;  %v3709_v32 = vpack.c.bf16 %v1899_v28, %v1898_v27 }
  0x49   : > { %3624 = vmatpush3.bf16.xpose.msk.msra.mxu0 %vm4427_vm1, %v3622_v36  ;;  %v1883_v36 = vld [vmem:[%s5967_s3 + $0x68] sm:$0xff] }
  0x4a   : > { %3675 = vmatprep.subr.msk.bf16.mxu0 %vm4427_vm1, %v3673_v37  ;;  %v3712_v40 = vpack.c.bf16 %v1883_v36, %v1882_v35 }
  0x4b   : > { %3672 = vmatpush3.bf16.xpose.msk.msra.mxu1 %vm4427_vm1, %v3670_v38  ;;  %v1901_v38 = vld [vmem:[%s5967_s3 + $0xf8] sm:$0xff] }
  0x4c   : > { %3721 = vmatprep.subr.msk.bf16.mxu1 %vm4427_vm1, %v3673_v37  ;;  %v1900_v37 = vld [vmem:[%s5967_s3 + $0xf0] sm:$0xff] }
  0x4d   : > { %v3715_v42 = vpack.c.bf16 %v1901_v38, %v1900_v37 }
  0x50   : > { %3418 = vmatmul.mubr.msk.f32.vlgmr.msra.gmra.mrb[0].mxu0 %vm491_vm0, %v4552_v45  ;;  %v1873_v45 = vld [vmem:[%s5967_s3 + $0x18] sm:$0xff] }
  0x51   : > { %3419 = vmatprep.mubr.msk.f32.mxu0 %vm491_vm0, %v444_v44  ;;  %3678 = vmatpush3.bf16.xpose.msk.msra.mxu0 %vm4427_vm1, %v3676_v43  ;;  %v3682_v53 = vpack.c.bf16 %v1873_v45, %v1872_v50  ;;  %v458_v45 = vld [vmem:[%s4533_s30 + $0x78] sm:$0xff] }
  0x52   : > { %3482 = vmatmul.mubr.msk.f32.vlgmr.msra.gmra.mrb[0].mxu1 %vm491_vm0, %v4565_v48  ;;  %3681 = vmatprep.subr.msk.bf16.mxu0 %vm4427_vm1, %v3679_v46  ;;  %v1890_v48 = vld [vmem:[%s5967_s3 + $0xa0] sm:$0xff] }
  0x53   : > { %3483 = vmatprep.mubr.msk.f32.mxu1 %vm491_vm0, %v1150_v47  ;;  %3729 = vmatpush3.bf16.xpose.msk.msra.mxu1 %vm4427_vm1, %v3676_v43  ;;  %v3685_v55 = vpack.c.bf16 %v1891_v51, %v1890_v48  ;;  %v1162_v43 = vld [vmem:[%s4539_s10 + $0x68] sm:$0xff]  ;;  %v1164_v48 = vld [vmem:[%s4539_s10 + $0x78] sm:$0xff]  ;;  %v1854_v51 = vld [vmem:[%s4950_s14] sm:$0xff] }
  0x54   : > { %3420 = vmatmul.mubr.msk.f32.gmra.mrb[2].mxu0 %vm491_vm0, %v444_v44  ;;  %3722 = vmatprep.subr.msk.bf16.mxu1 %vm4427_vm1, %v3679_v46  ;;  %v457_v44 = vld [vmem:[%s4533_s30 + $0x70] sm:$0xff] }
  0x55   : > { %3421 = vmatprep.mubr.msk.f32.mxu0 %vm491_vm0, %v445_v49  ;;  %v1884_v46 = vld [vmem:[%s5967_s3 + $0x70] sm:$0xff] }
  0x56   : > { %3484 = vmatmul.mubr.msk.f32.gmra.mrb[2].mxu1 %vm491_vm0, %v1150_v47  ;;  %v1885_v47 = vld [vmem:[%s5967_s3 + $0x78] sm:$0xff] }
  0x57   : > { %3485 = vmatprep.mubr.msk.f32.mxu1 %vm491_vm0, %v1151_v52  ;;  %v3718_v50 = vpack.c.bf16 %v1885_v47, %v1884_v46 }
  0x58   : > { %3422 = vmatmul.mubr.msk.f32.gmra.mrb[4].mxu0 %vm491_vm0, %v445_v49  ;;  %v1163_v49 = vld [vmem:[%s4539_s10 + $0x70] sm:$0xff] }
  0x59   : > { %3423 = vmatprep.mubr.msk.f32.mxu0 %vm491_vm0, %v446_v54  ;;  %3684 = vmatpush3.bf16.xpose.msk.msra.mxu0 %vm4427_vm1, %v3682_v53 }
  0x5a   : > { %3486 = vmatmul.mubr.msk.f32.gmra.mrb[4].mxu1 %vm491_vm0, %v1151_v52  ;;  %3687 = vmatprep.subr.msk.bf16.mxu0 %vm4427_vm1, %v3685_v55  ;;  %v1862_v52 = vld [vmem:[%s4950_s14 + $0x40] sm:$0xff] }
  0x5b   : > { %3487 = vmatprep.mubr.msk.f32.mxu1 %vm491_vm0, %v1152_v56  ;;  %3730 = vmatpush3.bf16.xpose.msk.msra.mxu1 %vm4427_vm1, %v3682_v53  ;;  %v1855_v53 = vld [vmem:[%s4950_s14 + $0x8] sm:$0xff] }
  0x5c   : > { %3424 = vmatmul.mubr.msk.f32.gmra.mrb[6].mxu0 %vm491_vm0, %v446_v54  ;;  %3723 = vmatprep.subr.msk.bf16.mxu1 %vm4427_vm1, %v3685_v55  ;;  %v1863_v54 = vld [vmem:[%s4950_s14 + $0x48] sm:$0xff]  ;;  %v1864_v55 = vld [vmem:[%s4950_s14 + $0x50] sm:$0xff] }
  0x5d   : > { %3425 = vmatprep.mubr.msk.f32.mxu0 %vm491_vm0, %v447_v57 }
  0x5e   : > { %3488 = vmatmul.mubr.msk.f32.gmra.mrb[6].mxu1 %vm491_vm0, %v1152_v56  ;;  %v1857_v56 = vld [vmem:[%s4950_s14 + $0x18] sm:$0xff] }
  0x5f   : > { %3489 = vmatprep.mubr.msk.f32.mxu1 %vm491_vm0, %v1153_v62 }
  0x60   : > { %3426 = vmatmul.mubr.msk.f32.gmra.mrb[8].mxu0 %vm491_vm0, %v447_v57  ;;  %v1865_v57 = vld [vmem:[%s4950_s14 + $0x58] sm:$0xff] }
  0x61   : > { %3427 = vmatprep.mubr.msk.f32.mxu0 %vm491_vm0, %v448_v0  ;;  %3690 = vmatpush3.bf16.xpose.msk.msra.mxu0 %vm4427_vm1, %v3688_v63 }
  0x62   : > { %3490 = vmatmul.mubr.msk.f32.gmra.mrb[8].mxu1 %vm491_vm0, %v1153_v62  ;;  %3693 = vmatprep.subr.msk.bf16.mxu0 %vm4427_vm1, %v3691_v1  ;;  %v1860_v62 = vld [vmem:[%s4950_s14 + $0x30] sm:$0xff] }
  0x63   : > { %3491 = vmatprep.mubr.msk.f32.mxu1 %vm491_vm0, %v1154_v2  ;;  %3731 = vmatpush3.bf16.xpose.msk.msra.mxu1 %vm4427_vm1, %v3688_v63  ;;  %v1868_v63 = vld [vmem:[%s4950_s14 + $0x70] sm:$0xff] }
  0x64   : > { %3428 = vmatmul.mubr.msk.f32.gmra.mrb[10].mxu0 %vm491_vm0, %v448_v0  ;;  %3724 = vmatprep.subr.msk.bf16.mxu1 %vm4427_vm1, %v3691_v1  ;;  %v1861_v0 = vld [vmem:[%s4950_s14 + $0x38] sm:$0xff] }
  0x65   : > { %3429 = vmatprep.mubr.msk.f32.mxu0 %vm491_vm0, %v449_v3  ;;  %v1869_v1 = vld [vmem:[%s4950_s14 + $0x78] sm:$0xff] }
  0x66   : > { %3492 = vmatmul.mubr.msk.f32.gmra.mrb[10].mxu1 %vm491_vm0, %v1154_v2 }
  0x67   : > { %3493 = vmatprep.mubr.msk.f32.mxu1 %vm491_vm0, %v1155_v9 }
  0x68   : > { %3430 = vmatmul.mubr.msk.f32.gmra.mrb[12].mxu0 %vm491_vm0, %v449_v3 }
  0x69   : > { %3431 = vmatprep.mubr.msk.f32.mxu0 %vm491_vm0, %v450_v11  ;;  %3696 = vmatpush3.bf16.xpose.msk.msra.mxu0 %vm4427_vm1, %v3694_v10 }
  0x6a   : > { %3494 = vmatmul.mubr.msk.f32.gmra.mrb[12].mxu1 %vm491_vm0, %v1155_v9  ;;  %3699 = vmatprep.subr.msk.bf16.mxu0 %vm4427_vm1, %v3697_v12 }
  0x6b   : > { %3495 = vmatprep.mubr.msk.f32.mxu1 %vm491_vm0, %v1156_v13  ;;  %3732 = vmatpush3.bf16.xpose.msk.msra.mxu1 %vm4427_vm1, %v3694_v10 }
  0x6c   : > { %3432 = vmatmul.mubr.msk.f32.gmra.mrb[14].mxu0 %vm491_vm0, %v450_v11  ;;  %3725 = vmatprep.subr.msk.bf16.mxu1 %vm4427_vm1, %v3697_v12 }
  0x6d   : > { %3433 = vmatprep.mubr.msk.f32.mxu0 %vm491_vm0, %v451_v14 }
  0x6e   : > { %3496 = vmatmul.mubr.msk.f32.gmra.mrb[14].mxu1 %vm491_vm0, %v1156_v13 }
  0x6f   : > { %3497 = vmatprep.mubr.msk.f32.mxu1 %vm491_vm0, %v1157_v19 }
  0x70   : > { %3434 = vmatmul.mubr.msk.f32.gmra.mrb[16].mxu0 %vm491_vm0, %v451_v14 }
  0x71   : > { %3435 = vmatprep.mubr.msk.f32.mxu0 %vm491_vm0, %v452_v21  ;;  %3702 = vmatpush3.bf16.xpose.msk.msra.mxu0 %vm4427_vm1, %v3700_v20 }
  0x72   : > { %3498 = vmatmul.mubr.msk.f32.gmra.mrb[16].mxu1 %vm491_vm0, %v1157_v19  ;;  %3705 = vmatprep.subr.msk.bf16.mxu0 %vm4427_vm1, %v3703_v22 }
  0x73   : > { %3499 = vmatprep.mubr.msk.f32.mxu1 %vm491_vm0, %v1158_v23  ;;  %3733 = vmatpush3.bf16.xpose.msk.msra.mxu1 %vm4427_vm1, %v3700_v20 }
  0x74   : > { %3436 = vmatmul.mubr.msk.f32.gmra.mrb[18].mxu0 %vm491_vm0, %v452_v21  ;;  %3726 = vmatprep.subr.msk.bf16.mxu1 %vm4427_vm1, %v3703_v22 }
  0x75   : > { %3437 = vmatprep.mubr.msk.f32.mxu0 %vm491_vm0, %v453_v24 }
  0x76   : > { %3500 = vmatmul.mubr.msk.f32.gmra.mrb[18].mxu1 %vm491_vm0, %v1158_v23 }
  0x77   : > { %3501 = vmatprep.mubr.msk.f32.mxu1 %vm491_vm0, %v1159_v29 }
  0x78   : > { %3438 = vmatmul.mubr.msk.f32.gmra.mrb[20].mxu0 %vm491_vm0, %v453_v24 }
  0x79   : > { %3708 = vmatpush3.bf16.xpose.msk.msra.mxu0 %vm4427_vm1, %v3706_v30  ;;  %3439 = vmatprep.mubr.msk.f32.mxu0 %vm491_vm0, %v454_v31 }
  0x7a   : > { %3502 = vmatmul.mubr.msk.f32.gmra.mrb[20].mxu1 %vm491_vm0, %v1159_v29  ;;  %3711 = vmatprep.subr.msk.bf16.mxu0 %vm4427_vm1, %v3709_v32 }
  0x7b   : > { %3503 = vmatprep.mubr.msk.f32.mxu1 %vm491_vm0, %v1160_v33  ;;  %3734 = vmatpush3.bf16.xpose.msk.msra.mxu1 %vm4427_vm1, %v3706_v30 }
  0x7c   : > { %3440 = vmatmul.mubr.msk.f32.gmra.mrb[22].mxu0 %vm491_vm0, %v454_v31  ;;  %3727 = vmatprep.subr.msk.bf16.mxu1 %vm4427_vm1, %v3709_v32 }
  0x7d   : > { %3441 = vmatprep.mubr.msk.f32.mxu0 %vm491_vm0, %v455_v34 }
  0x7e   : > { %3504 = vmatmul.mubr.msk.f32.gmra.mrb[22].mxu1 %vm491_vm0, %v1160_v33 }
  0x7f   : > { %3505 = vmatprep.mubr.msk.f32.mxu1 %vm491_vm0, %v1161_v39 }
  0x80   : > { %3442 = vmatmul.mubr.msk.f32.gmra.mrb[24].mxu0 %vm491_vm0, %v455_v34 }
  0x81   : > { %3714 = vmatpush3.bf16.xpose.msk.msra.mxu0 %vm4427_vm1, %v3712_v40  ;;  %3443 = vmatprep.mubr.msk.f32.mxu0 %vm491_vm0, %v456_v41 }
  0x82   : > { %3506 = vmatmul.mubr.msk.f32.gmra.mrb[24].mxu1 %vm491_vm0, %v1161_v39  ;;  %3717 = vmatprep.subr.msk.bf16.mxu0 %vm4427_vm1, %v3715_v42 }
  0x83   : > { %3507 = vmatprep.mubr.msk.f32.mxu1 %vm491_vm0, %v1162_v43  ;;  %3735 = vmatpush3.bf16.xpose.msk.msra.mxu1 %vm4427_vm1, %v3712_v40  ;;  %v395_v40 = vld [vmem:[%s5015_s15] sm:$0xff] }
  0x84   : > { %3444 = vmatmul.mubr.msk.f32.gmra.mrb[26].mxu0 %vm491_vm0, %v456_v41  ;;  %3728 = vmatprep.subr.msk.bf16.mxu1 %vm4427_vm1, %v3715_v42 }
  0x85   : > { %3445 = vmatprep.mubr.msk.f32.mxu0 %vm491_vm0, %v457_v44 }
  0x86   : > { %3508 = vmatmul.mubr.msk.f32.gmra.mrb[26].mxu1 %vm491_vm0, %v1162_v43 }
  0x87   : > { %3509 = vmatprep.mubr.msk.f32.mxu1 %vm491_vm0, %v1163_v49 }
  0x88   : > { %3446 = vmatmul.mubr.msk.f32.gmra.mrb[28].mxu0 %vm491_vm0, %v457_v44  ;;  %v396_v44 = vld [vmem:[%s5015_s15 + $0x8] sm:$0xff] }
  0x89   : > { %3720 = vmatpush3.bf16.xpose.msk.msra.mxu0 %vm4427_vm1, %v3718_v50  ;;  %3447 = vmatprep.mubr.msk.f32.mxu0 %vm491_vm0, %v458_v45 }
  0x8a   : > { %3510 = vmatmul.mubr.msk.f32.gmra.mrb[28].mxu1 %vm491_vm0, %v1163_v49 }
  0x8b   : > { %3511 = vmatprep.mubr.msk.f32.mxu1 %vm491_vm0, %v1164_v48  ;;  %3736 = vmatpush3.bf16.xpose.msk.msra.mxu1 %vm4427_vm1, %v3718_v50  ;;  %v397_v50 = vld [vmem:[%s5015_s15 + $0x10] sm:$0xff] }
  0x8c   : > { %3448 = vmatmul.mubr.msk.f32.gmra.mrb[30].mxu0 %vm491_vm0, %v458_v45 }
  0x8d   : > { %3545 = vmatprep.mubr.msk.f32.mxu0 %vm491_vm0, %v1854_v51 }
  0x8e   : > { %3512 = vmatmul.mubr.msk.f32.gmra.mrb[30].mxu1 %vm491_vm0, %v1164_v48 }
  0x8f   : > { %3561 = vmatprep.mubr.msk.f32.mxu1 %vm491_vm0, %v1862_v52 }
  0x90   : > { %3546 = vmatmul.mubr.msk.f32.vlgmr.msra.gmra.mrb[32].mxu0 %vm491_vm0, %v1854_v51  ;;  %v5020_v51 = vunpack.c.l.bf16 %v395_v40 }
  0x91   : > { %3547 = vmatprep.mubr.msk.f32.mxu0 %vm491_vm0, %v1855_v53 }
  0x92   : > { %3562 = vmatmul.mubr.msk.f32.vlgmr.msra.gmra.mrb[32].mxu1 %vm491_vm0, %v1862_v52  ;;  %5999 = vst [vmem:[#allocation2_spill] sm:$0xff] %v5020_v51  ;;  %v5022_v52 = vunpack.c.h.bf16 %v395_v40 }
  0x93   : > { %3563 = vmatprep.mubr.msk.f32.mxu1 %vm491_vm0, %v1863_v54 }
  0x94   : > { %3548 = vmatmul.mubr.msk.f32.gmra.mrb[34].mxu0 %vm491_vm0, %v1855_v53  ;;  %6000 = vst [vmem:[#allocation3_spill] sm:$0xff] %v5022_v52 }
  0x95   : > { %3549 = vmatprep.mubr.msk.f32.mxu0 %vm491_vm0, %v1856_v4 }
  0x96   : > { %3564 = vmatmul.mubr.msk.f32.gmra.mrb[34].mxu1 %vm491_vm0, %v1863_v54 }
  0x97   : > { %3565 = vmatprep.mubr.msk.f32.mxu1 %vm491_vm0, %v1864_v55 }
  0x98   : > { %3550 = vmatmul.mubr.msk.f32.gmra.mrb[36].mxu0 %vm491_vm0, %v1856_v4 }
  0x99   : > { %3551 = vmatprep.mubr.msk.f32.mxu0 %vm491_vm0, %v1857_v56 }
  0x9a   : > { %3566 = vmatmul.mubr.msk.f32.gmra.mrb[36].mxu1 %vm491_vm0, %v1864_v55 }
  0x9b   : > { %3567 = vmatprep.mubr.msk.f32.mxu1 %vm491_vm0, %v1865_v57 }
  0x9c   : > { %3552 = vmatmul.mubr.msk.f32.gmra.mrb[38].mxu0 %vm491_vm0, %v1857_v56  ;;  %v5024_v56 = vunpack.c.l.bf16 %v396_v44 }
  0x9d   : > { %3553 = vmatprep.mubr.msk.f32.mxu0 %vm491_vm0, %v1858_v58 }
  0x9e   : > { %3568 = vmatmul.mubr.msk.f32.gmra.mrb[38].mxu1 %vm491_vm0, %v1865_v57  ;;  %6001 = vst [vmem:[#allocation4_spill] sm:$0xff] %v5024_v56  ;;  %v5026_v57 = vunpack.c.h.bf16 %v396_v44 }
  0x9f   : > { %3569 = vmatprep.mubr.msk.f32.mxu1 %vm491_vm0, %v1866_v59 }
  0xa0   : > { %3554 = vmatmul.mubr.msk.f32.gmra.mrb[40].mxu0 %vm491_vm0, %v1858_v58  ;;  %6002 = vst [vmem:[#allocation5_spill] sm:$0xff] %v5026_v57 }
  0xa1   : > { %3555 = vmatprep.mubr.msk.f32.mxu0 %vm491_vm0, %v1859_v60 }
  0xa2   : > { %3570 = vmatmul.mubr.msk.f32.gmra.mrb[40].mxu1 %vm491_vm0, %v1866_v59 }
  0xa3   : > { %3571 = vmatprep.mubr.msk.f32.mxu1 %vm491_vm0, %v1867_v61 }
  0xa4   : > { %3556 = vmatmul.mubr.msk.f32.gmra.mrb[42].mxu0 %vm491_vm0, %v1859_v60 }
  0xa5   : > { %3557 = vmatprep.mubr.msk.f32.mxu0 %vm491_vm0, %v1860_v62 }
  0xa6   : > { %3572 = vmatmul.mubr.msk.f32.gmra.mrb[42].mxu1 %vm491_vm0, %v1867_v61  ;;  %v5028_v61 = vunpack.c.l.bf16 %v397_v50 }
  0xa7   : > { %3573 = vmatprep.mubr.msk.f32.mxu1 %vm491_vm0, %v1868_v63 }
  0xa8   : > { %3558 = vmatmul.mubr.msk.f32.gmra.mrb[44].mxu0 %vm491_vm0, %v1860_v62  ;;  %6003 = vst [vmem:[#allocation6_spill] sm:$0xff] %v5028_v61  ;;  %v5030_v62 = vunpack.c.h.bf16 %v397_v50 }
  0xa9   : > { %3559 = vmatprep.mubr.msk.f32.mxu0 %vm491_vm0, %v1861_v0 }
  0xaa   : > { %3574 = vmatmul.mubr.msk.f32.gmra.mrb[44].mxu1 %vm491_vm0, %v1868_v63  ;;  %6004 = vst [vmem:[#allocation7_spill] sm:$0xff] %v5030_v62 }
  0xab   : > { %3575 = vmatprep.mubr.msk.f32.mxu1 %vm491_vm0, %v1869_v1 }
  0xac   : > { %3560 = vmatmul.mubr.msk.f32.gmra.mrb[46].mxu0 %vm491_vm0, %v1861_v0 }
  0xae   : > { %3576 = vmatmul.mubr.msk.f32.gmra.mrb[46].mxu1 %vm491_vm0, %v1869_v1 }
 0x123   : > { %v702_v2 = vpop.f32.mrb[0].mxu0 }
 0x124   : > { %v3190_v3 = vmul.f32 -1.442695, %v702_v2  ;;  %v704_v5 = vpop.f32.mrb[1].mxu0 }
 0x125   : > { %v3191_v6 = vmul.f32 -1.442695, %v704_v5  ;;  %v1407_v7 = vpop.f32.mrb[0].mxu1 }
 0x126   : > { %3745 = vpow2.f32 %v3190_v3  ;;  %v3270_v8 = vmul.f32 -1.442695, %v1407_v7  ;;  %v1409_v9 = vpop.f32.mrb[1].mxu1 }
 0x127   : > { %3747 = vpow2.f32 %v3191_v6  ;;  %v708_v10 = vpop.f32.mrb[2].mxu0  ;;  %v3271_v11 = vmul.f32 -1.442695, %v1409_v9 }
 0x128   : > { %3749 = vpow2.f32 %v3270_v8  ;;  %v3192_v12 = vmul.f32 -1.442695, %v708_v10  ;;  %v710_v13 = vpop.f32.mrb[3].mxu0 }
 0x129   : > { %3751 = vpow2.f32 %v3271_v11  ;;  %v3193_v14 = vmul.f32 -1.442695, %v710_v13  ;;  %v1413_v15 = vpop.f32.mrb[2].mxu1 }
 0x12a   : > { %3753 = vpow2.f32 %v3192_v12  ;;  %v3272_v16 = vmul.f32 -1.442695, %v1413_v15  ;;  %v1415_v17 = vpop.f32.mrb[3].mxu1 }
 0x12b   : > { %3755 = vpow2.f32 %v3193_v14  ;;  %v3273_v18 = vmul.f32 -1.442695, %v1415_v17  ;;  %v714_v19 = vpop.f32.mrb[4].mxu0 }
 0x12c   : > { %3757 = vpow2.f32 %v3272_v16  ;;  %v3194_v20 = vmul.f32 -1.442695, %v714_v19  ;;  %v716_v21 = vpop.f32.mrb[5].mxu0 }
 0x12d   : > { %3759 = vpow2.f32 %v3273_v18  ;;  %v3195_v22 = vmul.f32 -1.442695, %v716_v21  ;;  %v1419_v23 = vpop.f32.mrb[4].mxu1 }
 0x12e   : > { %3761 = vpow2.f32 %v3194_v20  ;;  %v3274_v24 = vmul.f32 -1.442695, %v1419_v23  ;;  %v1421_v25 = vpop.f32.mrb[5].mxu1 }
 0x12f   : > { %3763 = vpow2.f32 %v3195_v22  ;;  %v3275_v26 = vmul.f32 -1.442695, %v1421_v25  ;;  %v720_v27 = vpop.f32.mrb[6].mxu0 }
 0x130   : > { %v3746_v28 = vpop.eup %3745  ;;  %3765 = vpow2.f32 %v3274_v24  ;;  %v3196_v29 = vmul.f32 -1.442695, %v720_v27  ;;  %v722_v30 = vpop.f32.mrb[7].mxu0 }
 0x131   : > { %v3748_v31 = vpop.eup %3747  ;;  %v893_v32 = vadd.f32 1.0, %v3746_v28  ;;  %3767 = vpow2.f32 %v3275_v26  ;;  %v1425_v33 = vpop.f32.mrb[6].mxu1  ;;  %v3197_v1 = vmul.f32 -1.442695, %v722_v30 }
 0x132   : > { %v3750_v34 = vpop.eup %3749  ;;  %v894_v35 = vadd.f32 1.0, %v3748_v31  ;;  %3769 = vpow2.f32 %v3196_v29  ;;  %v1427_v36 = vpop.f32.mrb[7].mxu1  ;;  %v3276_v2 = vmul.f32 -1.442695, %v1425_v33 }
 0x133   : > { %v3752_v37 = vpop.eup %3751  ;;  %3771 = vrcp.f32 %v893_v32  ;;  %v1598_v38 = vadd.f32 1.0, %v3750_v34  ;;  %v726_v39 = vpop.f32.mrb[8].mxu0  ;;  %v3277_v8 = vmul.f32 -1.442695, %v1427_v36 }
 0x134   : > { %v3754_v41 = vpop.eup %3753  ;;  %3773 = vrcp.f32 %v894_v35  ;;  %v1599_v42 = vadd.f32 1.0, %v3752_v37  ;;  %v728_v43 = vpop.f32.mrb[9].mxu0  ;;  %v3198_v7 = vmul.f32 -1.442695, %v726_v39 }
 0x135   : > { %v3756_v46 = vpop.eup %3755  ;;  %3775 = vrcp.f32 %v1598_v38  ;;  %v895_v47 = vadd.f32 1.0, %v3754_v41  ;;  %v1431_v49 = vpop.f32.mrb[8].mxu1  ;;  %v3199_v12 = vmul.f32 -1.442695, %v728_v43 }
 0x136   : > { %v3758_v45 = vpop.eup %3757  ;;  %3777 = vrcp.f32 %v1599_v42  ;;  %v896_v48 = vadd.f32 1.0, %v3756_v46  ;;  %v1433_v53 = vpop.f32.mrb[9].mxu1  ;;  %v3278_v13 = vmul.f32 -1.442695, %v1431_v49 }
 0x137   : > { %v3760_v54 = vpop.eup %3759  ;;  %3779 = vrcp.f32 %v895_v47  ;;  %v1600_v4 = vadd.f32 1.0, %v3758_v45  ;;  %v732_v55 = vpop.f32.mrb[10].mxu0  ;;  %v3279_v17 = vmul.f32 -1.442695, %v1433_v53 }
 0x138   : > { %v3762_v58 = vpop.eup %3761  ;;  %3781 = vrcp.f32 %v896_v48  ;;  %v1601_v59 = vadd.f32 1.0, %v3760_v54  ;;  %v734_v60 = vpop.f32.mrb[11].mxu0  ;;  %v5032_v18 = vmul.f32 -1.442695, %v732_v55 }
 0x139   : > { %v3764_v63 = vpop.eup %3763  ;;  %3783 = vrcp.f32 %v1600_v4  ;;  %v897_v0 = vadd.f32 1.0, %v3762_v58  ;;  %v1437_v3 = vpop.f32.mrb[10].mxu1  ;;  %v5034_v22 = vmul.f32 -1.442695, %v734_v60 }
 0x13a   : > { %v3766_v5 = vpop.eup %3765  ;;  %3785 = vrcp.f32 %v1601_v59  ;;  %v898_v6 = vadd.f32 1.0, %v3764_v63  ;;  %v1439_v9 = vpop.f32.mrb[11].mxu1  ;;  %v5036_v23 = vmul.f32 -1.442695, %v1437_v3 }
 0x13b   : > { %v3768_v10 = vpop.eup %3767  ;;  %3787 = vrcp.f32 %v897_v0  ;;  %v1602_v11 = vadd.f32 1.0, %v3766_v5  ;;  %v738_v14 = vpop.f32.mrb[12].mxu0  ;;  %v5041_v28 = vmul.f32 -1.442695, %v1439_v9 }
 0x13c   : > { %v3770_v15 = vpop.eup %3769  ;;  %3789 = vrcp.f32 %v898_v6  ;;  %v1603_v16 = vadd.f32 1.0, %v3768_v10  ;;  %v740_v19 = vpop.f32.mrb[13].mxu0  ;;  %v3202_v33 = vmul.f32 -1.442695, %v738_v14 }
 0x13d   : > { %v3772_v20 = vpop.eup %3771  ;;  %3791 = vrcp.f32 %v1602_v11  ;;  %v899_v21 = vadd.f32 1.0, %v3770_v15  ;;  %v5038_v24 = vpop.f32.mrb[12].mxu1  ;;  %v3203_v38 = vmul.f32 -1.442695, %v740_v19 }
 0x13e   : > { %v3774_v25 = vpop.eup %3773  ;;  %3793 = vrcp.f32 %v1603_v16  ;;  %v989_v26 = vmul.f32 %v3772_v20, %v5020_v51  ;;  %v1069_v27 = vmul.f32 %v3772_v20, %v3772_v20  ;;  %v5043_v29 = vpop.f32.mrb[13].mxu1 }
 0x13f   : > { %v3776_v30 = vpop.eup %3775  ;;  %3795 = vrcp.f32 %v899_v21  ;;  %v990_v31 = vmul.f32 %v3774_v25, %v5022_v52  ;;  %v1070_v32 = vmul.f32 %v3774_v25, %v3774_v25  ;;  %v5046_v34 = vpop.f32.mrb[14].mxu0 }
 0x140   : > { %v3778_v35 = vpop.eup %3777  ;;  %3797 = vpow2.f32 %v3197_v1  ;;  %v1774_v36 = vmul.f32 %v3776_v30, %v3776_v30  ;;  %v1694_v37 = vmul.f32 %v3776_v30, %v5020_v51  ;;  %v5049_v39 = vpop.f32.mrb[15].mxu0 }
 0x141   : > { %v3780_v40 = vpop.eup %3779  ;;  %3799 = vpow2.f32 %v3198_v7  ;;  %v1021_v41 = vadd.f32 %v990_v31, %v989_v26  ;;  %v1101_v42 = vadd.f32 %v1070_v32, %v1069_v27  ;;  %v1775_v43 = vmul.f32 %v3778_v35, %v3778_v35  ;;  %v5051_v44 = vpop.f32.mrb[14].mxu1 }
 0x142   : > { %v3782_v46 = vpop.eup %3781  ;;  %3801 = vpow2.f32 %v3199_v12  ;;  %v1071_v47 = vmul.f32 %v3780_v40, %v3780_v40  ;;  %v1695_v49 = vmul.f32 %v3778_v35, %v5022_v52  ;;  %v991_v50 = vmul.f32 %v3780_v40, %v5024_v56  ;;  %v5055_v45 = vpop.f32.mrb[15].mxu1  ;;  %v398_v35 = vld [vmem:[%s5015_s15 + $0x18] sm:$0xff] }
 0x143   : > { %v3784_v48 = vpop.eup %3783  ;;  %3803 = vpow2.f32 %v3276_v2  ;;  %1022 = vadd.xlane.f32.xlu0 %v1021_v41  ;;  %v1072_v53 = vmul.f32 %v3782_v46, %v3782_v46  ;;  %v1806_v54 = vadd.f32 %v1775_v43, %v1774_v36  ;;  %v992_v4 = vmul.f32 %v3782_v46, %v5026_v57  ;;  %v5058_v55 = vpop.f32.mrb[16].mxu0 }
 0x144   : > { %v3786_v58 = vpop.eup %3785  ;;  %3805 = vpow2.f32 %v3277_v8  ;;  %v1776_v59 = vmul.f32 %v3784_v48, %v3784_v48  ;;  %v5060_v60 = vadd.f32 %v1695_v49, %v1694_v37  ;;  %v1696_v63 = vmul.f32 %v3784_v48, %v5024_v56  ;;  %v5063_v0 = vpop.f32.mrb[17].mxu0 }
 0x145   : > { %v3788_v1 = vpop.eup %3787  ;;  %3807 = vpow2.f32 %v3278_v13  ;;  %v1104_v3 = vadd.f32 %v1072_v53, %v1071_v47  ;;  %v1777_v2 = vmul.f32 %v3786_v58, %v3786_v58  ;;  %v1697_v5 = vmul.f32 %v3786_v58, %v5026_v57  ;;  %v5066_v6 = vpop.f32.mrb[16].mxu1  ;;  %v400_v47 = vld [vmem:[%s5015_s15 + $0x28] sm:$0xff] }
 0x146   : > { %v3790_v7 = vpop.eup %3789  ;;  %3809 = vpow2.f32 %v3279_v17  ;;  %v5068_v9 = vadd.f32 %v992_v4, %v991_v50  ;;  %v993_v8 = vmul.f32 %v3788_v1, %v5028_v61  ;;  %v1073_v10 = vmul.f32 %v3788_v1, %v3788_v1  ;;  %v5071_v11 = vpop.f32.mrb[17].mxu1 }
 0x147   : > { %v3792_v12 = vpop.eup %3791  ;;  %1102 = vadd.xlane.f32.xlu0 %v1101_v42  ;;  %1105 = vadd.xlane.f32.xlu1 %v1104_v3  ;;  %v1809_v14 = vadd.f32 %v1777_v2, %v1776_v59  ;;  %3811 = vpow2.f32 %v5032_v18  ;;  %v1729_v13 = vadd.f32 %v1697_v5, %v1696_v63  ;;  %v994_v15 = vmul.f32 %v3790_v7, %v5030_v62  ;;  %v5075_v16 = vpop.f32.mrb[18].mxu0  ;;  %v399_v42 = vld [vmem:[%s5015_s15 + $0x20] sm:$0xff] }
 0x148   : > { %v3794_v17 = vpop.eup %3793  ;;  %3813 = vpow2.f32 %v5034_v22  ;;  %v1074_v19 = vmul.f32 %v3790_v7, %v3790_v7  ;;  %v1778_v20 = vmul.f32 %v3792_v12, %v3792_v12  ;;  %v1698_v21 = vmul.f32 %v3792_v12, %v5028_v61  ;;  %v5079_v25 = vpop.f32.mrb[19].mxu0 }
 0x149   : > { %v5081_v26 = vpop.eup %3795  ;;  %3815 = vpow2.f32 %v3202_v33  ;;  %v5083_v27 = vadd.f32 %v994_v15, %v993_v8  ;;  %v1779_v18 = vmul.f32 %v3794_v17, %v3794_v17  ;;  %v1699_v30 = vmul.f32 %v3794_v17, %v5030_v62  ;;  %v5086_v31 = vpop.f32.mrb[18].mxu1 }
 0x14a   : > { %v3798_v32 = vpop.eup %3797  ;;  %3817 = vpow2.f32 %v3203_v38  ;;  %v5088_v22 = vadd.f32 %v1074_v19, %v1073_v10  ;;  %v5091_v36 = vpop.f32.mrb[19].mxu1  ;;  %v5105_v53 = vunpack.c.l.bf16 %v398_v35  ;;  %v5110_v59 = vunpack.c.h.bf16 %v398_v35 }
 0x14b   : > { %v3800_v37 = vpop.eup %3799  ;;  %v900_v40 = vadd.f32 1.0, %v3798_v32  ;;  %1807 = vadd.xlane.f32.xlu0 %v1806_v54  ;;  %1810 = vadd.xlane.f32.xlu1 %v1809_v14  ;;  %3819 = vpow2.f32 %v5036_v23  ;;  %v5094_v33 = vadd.f32 %v1779_v18, %v1778_v20  ;;  %v5096_v41 = vadd.f32 %v1699_v30, %v1698_v21  ;;  %v5099_v43 = vpop.f32.mrb[20].mxu0  ;;  %v401_v23 = vld [vmem:[%s5015_s15 + $0x30] sm:$0xff] }
 0x14c   : > { %v3802_v38 = vpop.eup %3801  ;;  %v901_v46 = vadd.f32 1.0, %v3800_v37  ;;  %3821 = vpow2.f32 %v5041_v28  ;;  %v5103_v49 = vpop.f32.mrb[21].mxu0  ;;  %6005 = vst [vmem:[#allocation8_spill] sm:$0xff] %v5105_v53  ;;  %6006 = vst [vmem:[#allocation9_spill] sm:$0xff] %v5110_v59  ;;  %v5112_v63 = vunpack.c.l.bf16 %v399_v42  ;;  %v5117_v2 = vunpack.c.h.bf16 %v399_v42 }
 0x14d   : > { %v3804_v50 = vpop.eup %3803  ;;  %3823 = vrcp.f32 %v900_v40  ;;  %v902_v48 = vadd.f32 1.0, %v3802_v38  ;;  %v5108_v54 = vpop.f32.mrb[20].mxu1  ;;  %v5119_v5 = vunpack.c.l.bf16 %v400_v47  ;;  %v5123_v12 = vunpack.c.h.bf16 %v400_v47 }
 0x14e   : > { %v3806_v4 = vpop.eup %3805  ;;  %3825 = vrcp.f32 %v901_v46  ;;  %v1604_v58 = vadd.f32 1.0, %v3804_v50  ;;  %6007 = vst [vmem:[#allocation10_spill] sm:$0xff] %v5112_v63  ;;  %v5114_v1 = vpop.f32.mrb[21].mxu1  ;;  %6008 = vst [vmem:[#allocation11_spill] sm:$0xff] %v5117_v2  ;;  %v5125_v14 = vunpack.c.l.bf16 %v401_v23  ;;  %v3283_v30 = vmul.f32 -1.442695, %v5043_v29 }
 0x14f   : > { %v3808_v28 = vpop.eup %3807  ;;  %3827 = vrcp.f32 %v902_v48  ;;  %v1605_v3 = vadd.f32 1.0, %v3806_v4  ;;  %1727 = vadd.xlane.f32.xlu0 %v5060_v60  ;;  %1730 = vadd.xlane.f32.xlu1 %v1729_v13  ;;  %6009 = vst [vmem:[#allocation12_spill] sm:$0xff] %v5119_v5  ;;  %v5121_v7 = vpop.f32.mrb[22].mxu0  ;;  %6010 = vst [vmem:[#allocation13_spill] sm:$0xff] %v5123_v12  ;;  %v3282_v60 = vmul.f32 -1.442695, %v5038_v24  ;;  %v5130_v13 = vunpack.c.h.bf16 %v401_v23 }
 0x150   : > { %v3810_v8 = vpop.eup %3809  ;;  %3829 = vrcp.f32 %v1604_v58  ;;  %v1606_v10 = vadd.f32 1.0, %v3808_v28  ;;  %6011 = vst [vmem:[#allocation14_spill] sm:$0xff] %v5125_v14  ;;  %v5127_v15 = vpop.f32.mrb[23].mxu0  ;;  %v3204_v32 = vmul.f32 -1.442695, %v5046_v34  ;;  %v1075_v24 = vmul.f32 %v5081_v26, %v5081_v26 }
 0x151   : > { %v3812_v17 = vpop.eup %3811  ;;  %3831 = vrcp.f32 %v1605_v3  ;;  %v1607_v19 = vadd.f32 1.0, %v3810_v8  ;;  %6012 = vst [vmem:[#allocation15_spill] sm:$0xff] %v5130_v13  ;;  %v5132_v20 = vpop.f32.mrb[22].mxu1  ;;  %v3205_v42 = vmul.f32 -1.442695, %v5049_v39  ;;  %v995_v34 = vmul.f32 %v5081_v26, %v5105_v53 }
 0x152   : > { %v3814_v21 = vpop.eup %3813  ;;  %3833 = vrcp.f32 %v1606_v10  ;;  %v903_v18 = vadd.f32 1.0, %v3812_v17  ;;  %v5136_v35 = vpop.f32.mrb[23].mxu1  ;;  %v3206_v47 = vmul.f32 -1.442695, %v5058_v55  ;;  %v3207_v48 = vmul.f32 -1.442695, %v5063_v0 }
 0x153   : > { %v3816_v37 = vpop.eup %3815  ;;  %3835 = vrcp.f32 %v1607_v19  ;;  %v904_v40 = vadd.f32 1.0, %v3814_v21  ;;  %1025 = vadd.xlane.f32.xlu0 %v5068_v9  ;;  %1028 = vadd.xlane.f32.xlu1 %v5083_v27  ;;  %v5143_v38 = vpop.f32.mrb[24].mxu0  ;;  %v5152_v23 = vmul.f32 -1.442695, %v5051_v44  ;;  %v5157_v28 = vmul.f32 -1.442695, %v5055_v45 }
 0x154   : > { %v3818_v46 = vpop.eup %3817  ;;  %3837 = vrcp.f32 %v903_v18  ;;  %v905_v29 = vadd.f32 1.0, %v3816_v37  ;;  %v5148_v50 = vpop.f32.mrb[25].mxu0  ;;  %v5160_v55 = vmul.f32 -1.442695, %v5066_v6  ;;  %v5167_v44 = vmul.f32 -1.442695, %v5071_v11 }
 0x155   : > { %v3820_v9 = vpop.eup %3819  ;;  %3839 = vrcp.f32 %v904_v40  ;;  %v906_v27 = vadd.f32 1.0, %v3818_v46  ;;  %v5154_v39 = vpop.f32.mrb[24].mxu1  ;;  %v5170_v0 = vmul.f32 -1.442695, %v5075_v16  ;;  %v5176_v19 = vmul.f32 -1.442695, %v5079_v25 }
 0x156   : > { %v3822_v4 = vpop.eup %3821  ;;  %3841 = vrcp.f32 %v905_v29  ;;  %v1608_v58 = vadd.f32 1.0, %v3820_v9  ;;  %v5162_v26 = vpop.f32.mrb[25].mxu1  ;;  %v5182_v16 = vmul.f32 -1.442695, %v5099_v43 }
 0x157   : > { %v3824_v3 = vpop.eup %3823  ;;  %3843 = vrcp.f32 %v906_v27  ;;  %v1609_v8 = vadd.f32 1.0, %v3822_v4  ;;  %1108 = vadd.xlane.f32.xlu0 %v5088_v22  ;;  %1813 = vadd.xlane.f32.xlu1 %v5094_v33  ;;  %v5172_v45 = vpop.f32.mrb[26].mxu0 }
 0x158   : > { %v3826_v10 = vpop.eup %3825  ;;  %3845 = vrcp.f32 %v1608_v58  ;;  %v1076_v6 = vmul.f32 %v3824_v3, %v3824_v3  ;;  %v996_v17 = vmul.f32 %v3824_v3, %v5110_v59  ;;  %v5178_v21 = vpop.f32.mrb[27].mxu0 }
 0x159   : > { %v3828_v22 = vpop.eup %3827  ;;  %3847 = vrcp.f32 %v1609_v8  ;;  %v997_v11 = vmul.f32 %v3826_v10, %v5112_v63  ;;  %v1077_v33 = vmul.f32 %v3826_v10, %v3826_v10  ;;  %v5184_v18 = vpop.f32.mrb[26].mxu1 }
 0x15a   : > { %v3830_v37 = vpop.eup %3829  ;;  %3849 = vpow2.f32 %v3282_v60  ;;  %v1110_v40 = vadd.f32 %v1076_v6, %v1075_v24  ;;  %v1030_v46 = vadd.f32 %v996_v17, %v995_v34  ;;  %v998_v29 = vmul.f32 %v3828_v22, %v5117_v2  ;;  %v5187_v25 = vpop.f32.mrb[27].mxu1 }
 0x15b   : > { %v3832_v9 = vpop.eup %3831  ;;  %3851 = vpow2.f32 %v3283_v30  ;;  %1733 = vadd.xlane.f32.xlu1 %v5096_v41  ;;  %v1780_v27 = vmul.f32 %v3830_v37, %v3830_v37  ;;  %v1700_v4 = vmul.f32 %v3830_v37, %v5105_v53  ;;  %v1078_v58 = vmul.f32 %v3828_v22, %v3828_v22  ;;  %v5191_v43 = vpop.f32.mrb[28].mxu0 }
 0x15c   : > { %v3834_v3 = vpop.eup %3833  ;;  %1111 = vadd.xlane.f32.xlu0 %v1110_v40  ;;  %3853 = vpow2.f32 %v3204_v32  ;;  %v1033_v60 = vadd.f32 %v998_v29, %v997_v11  ;;  %v1781_v24 = vmul.f32 %v3832_v9, %v3832_v9  ;;  %v1701_v34 = vmul.f32 %v3832_v9, %v5110_v59  ;;  %v5194_v8 = vpop.f32.mrb[29].mxu0 }
 0x15d   : > { %v3836_v10 = vpop.eup %3835  ;;  %3855 = vpow2.f32 %v3205_v42  ;;  %v1782_v30 = vmul.f32 %v3834_v3, %v3834_v3  ;;  %v1702_v41 = vmul.f32 %v3834_v3, %v5112_v63  ;;  %v5197_v6 = vadd.f32 %v1078_v58, %v1077_v33  ;;  %v5199_v17 = vpop.f32.mrb[28].mxu1 }
 0x15e   : > { %v3838_v22 = vpop.eup %3837  ;;  %3857 = vpow2.f32 %v3206_v47  ;;  %v1815_v37 = vadd.f32 %v1781_v24, %v1780_v27  ;;  %v1783_v40 = vmul.f32 %v3836_v10, %v3836_v10  ;;  %v1735_v32 = vadd.f32 %v1701_v34, %v1700_v4  ;;  %v5201_v11 = vpop.f32.mrb[29].mxu1 }
 0x15f   : > { %v3840_v29 = vpop.eup %3839  ;;  %1031 = vadd.xlane.f32.xlu1 %v1030_v46  ;;  %3859 = vpow2.f32 %v3207_v48  ;;  %v1703_v9 = vmul.f32 %v3836_v10, %v5117_v2  ;;  %v1079_v42 = vmul.f32 %v3838_v22, %v3838_v22  ;;  %v999_v59 = vmul.f32 %v3838_v22, %v5119_v5  ;;  %v5205_v3 = vpop.f32.mrb[30].mxu0 }
 0x160   : > { %v3842_v33 = vpop.eup %3841  ;;  %1034 = vadd.xlane.f32.xlu0 %v1033_v60  ;;  %3861 = vpow2.f32 %v5152_v23  ;;  %v1818_v47 = vadd.f32 %v1783_v40, %v1782_v30  ;;  %v1080_v27 = vmul.f32 %v3840_v29, %v3840_v29  ;;  %v1000_v4 = vmul.f32 %v3840_v29, %v5123_v12  ;;  %v5209_v58 = vpop.f32.mrb[31].mxu0 }
 0x161   : > { %v3844_v24 = vpop.eup %3843  ;;  %3863 = vpow2.f32 %v5157_v28  ;;  %v1738_v48 = vadd.f32 %v1703_v9, %v1702_v41  ;;  %v1001_v46 = vmul.f32 %v3842_v33, %v5125_v14  ;;  %v1081_v34 = vmul.f32 %v3842_v33, %v3842_v33  ;;  %v5213_v10 = vpop.f32.mrb[30].mxu1 }
 0x162   : > { %v3846_v22 = vpop.eup %3845  ;;  %3865 = vpow2.f32 %v5160_v55  ;;  %v1116_v60 = vadd.f32 %v1080_v27, %v1079_v42  ;;  %v5216_v23 = vadd.f32 %v1000_v4, %v999_v59  ;;  %v1002_v30 = vmul.f32 %v3844_v24, %v5130_v13  ;;  %v5219_v40 = vpop.f32.mrb[31].mxu1 }
 0x163   : > { %v3848_v29 = vpop.eup %3847  ;;  %1816 = vadd.xlane.f32.xlu1 %v1815_v37  ;;  %3867 = vpow2.f32 %v5167_v44  ;;  %v1784_v28 = vmul.f32 %v3846_v22, %v3846_v22  ;;  %v1704_v41 = vmul.f32 %v3846_v22, %v5119_v5  ;;  %v1082_v9 = vmul.f32 %v3844_v24, %v3844_v24  ;;  %v5223_v33 = vpop.f32.mrb[32].mxu0 }
 0x164   : > { %v3850_v2 = vpop.eup %3849  ;;  %1819 = vadd.xlane.f32.xlu0 %v1818_v47  ;;  %3869 = vpow2.f32 %v5170_v0  ;;  %v5226_v59 = vadd.f32 %v1002_v30, %v1001_v46  ;;  %v1785_v55 = vmul.f32 %v3848_v29, %v3848_v29  ;;  %v1705_v42 = vmul.f32 %v3848_v29, %v5123_v12  ;;  %v5229_v27 = vpop.f32.mrb[33].mxu0 }
 0x165   : > { %v3852_v37 = vpop.eup %3851  ;;  %v1610_v44 = vadd.f32 1.0, %v3850_v2  ;;  %3871 = vpow2.f32 %v5176_v19  ;;  %v5232_v4 = vadd.f32 %v1082_v9, %v1081_v34  ;;  %v5234_v24 = vpop.f32.mrb[32].mxu1  ;;  %v402_v19 = vld [vmem:[%s5015_s15 + $0x38] sm:$0xff] }
 0x166   : > { %v3854_v22 = vpop.eup %3853  ;;  %v1611_v47 = vadd.f32 1.0, %v3852_v37  ;;  %3873 = vpow2.f32 %v5182_v16  ;;  %v5237_v0 = vadd.f32 %v1785_v55, %v1784_v28  ;;  %v5239_v46 = vadd.f32 %v1705_v42, %v1704_v41  ;;  %v5241_v30 = vpop.f32.mrb[33].mxu1  ;;  %v403_v37 = vld [vmem:[%s5015_s15 + $0x40] sm:$0xff]  ;;  %v404_v55 = vld [vmem:[%s5015_s15 + $0x48] sm:$0xff] }
 0x167   : > { %v3856_v29 = vpop.eup %3855  ;;  %3875 = vrcp.f32 %v1610_v44  ;;  %v907_v2 = vadd.f32 1.0, %v3854_v22  ;;  %1736 = vadd.xlane.f32.xlu1 %v1735_v32  ;;  %v5244_v34 = vpop.f32.mrb[34].mxu0  ;;  %v5252_v32 = vunpack.c.l.bf16 %v402_v19  ;;  %v5254_v22 = vunpack.c.h.bf16 %v402_v19 }
 0x168   : > { %v3858_v9 = vpop.eup %3857  ;;  %3877 = vrcp.f32 %v1611_v47  ;;  %v908_v12 = vadd.f32 1.0, %v3856_v29  ;;  %1739 = vadd.xlane.f32.xlu0 %v1738_v48  ;;  %v5247_v16 = vpop.f32.mrb[35].mxu0  ;;  %v5259_v29 = vunpack.c.l.bf16 %v403_v37  ;;  %v5267_v19 = vunpack.c.h.bf16 %v404_v55 }
 0x169   : > { %v3860_v28 = vpop.eup %3859  ;;  %3879 = vrcp.f32 %v907_v2  ;;  %v909_v41 = vadd.f32 1.0, %v3858_v9  ;;  %v5250_v42 = vpop.f32.mrb[34].mxu1  ;;  %6013 = vst [vmem:[#allocation16_spill] sm:$0xff] %v5252_v32  ;;  %6014 = vst [vmem:[#allocation17_spill] sm:$0xff] %v5254_v22  ;;  %v5261_v2 = vunpack.c.h.bf16 %v403_v37  ;;  %v3288_v37 = vmul.f32 -1.442695, %v5086_v31 }
 0x16a   : > { %v3862_v5 = vpop.eup %3861  ;;  %3881 = vrcp.f32 %v908_v12  ;;  %v910_v44 = vadd.f32 1.0, %v3860_v28  ;;  %v5256_v63 = vpop.f32.mrb[35].mxu1  ;;  %v5265_v28 = vunpack.c.l.bf16 %v404_v55  ;;  %v3292_v31 = vmul.f32 -1.442695, %v5132_v20 }
 0x16b   : > { %v3864_v47 = vpop.eup %3863  ;;  %3883 = vrcp.f32 %v909_v41  ;;  %v1612_v48 = vadd.f32 1.0, %v3862_v5  ;;  %1114 = vadd.xlane.f32.xlu1 %v5197_v6  ;;  %v5263_v9 = vpop.f32.mrb[36].mxu0  ;;  %v3211_v6 = vmul.f32 -1.442695, %v5103_v49  ;;  %v3291_v49 = vmul.f32 -1.442695, %v5114_v1 }
 0x16c   : > { %v3866_v53 = vpop.eup %3865  ;;  %3885 = vrcp.f32 %v910_v44  ;;  %v1613_v12 = vadd.f32 1.0, %v3864_v47  ;;  %1117 = vadd.xlane.f32.xlu0 %v1116_v60  ;;  %v5269_v62 = vpop.f32.mrb[37].mxu0  ;;  %v3289_v60 = vmul.f32 -1.442695, %v5091_v36  ;;  %v3290_v47 = vmul.f32 -1.442695, %v5108_v54 }
 0x16d   : > { %v3868_v41 = vpop.eup %3867  ;;  %3887 = vrcp.f32 %v1612_v48  ;;  %v1614_v5 = vadd.f32 1.0, %v3866_v53  ;;  %v5273_v61 = vpop.f32.mrb[36].mxu1  ;;  %v3212_v36 = vmul.f32 -1.442695, %v5121_v7  ;;  %v5287_v54 = vmul.f32 -1.442695, %v5136_v35 }
 0x16e   : > { %v3870_v57 = vpop.eup %3869  ;;  %3889 = vrcp.f32 %v1613_v12  ;;  %v1615_v44 = vadd.f32 1.0, %v3868_v41  ;;  %v5277_v55 = vpop.f32.mrb[37].mxu1  ;;  %v5292_v1 = vmul.f32 -1.442695, %v5127_v15  ;;  %v5295_v20 = vmul.f32 -1.442695, %v5143_v38 }
 0x16f   : > { %v3872_v56 = vpop.eup %3871  ;;  %3891 = vrcp.f32 %v1614_v5  ;;  %v911_v52 = vadd.f32 1.0, %v3870_v57  ;;  %1037 = vadd.xlane.f32.xlu1 %v5216_v23  ;;  %v5282_v53 = vpop.f32.mrb[38].mxu0  ;;  %v5301_v35 = vmul.f32 -1.442695, %v5148_v50  ;;  %v5313_v50 = vmul.f32 -1.442695, %v5162_v26 }
 0x170   : > { %6015 = vst [vmem:[#allocation18_spill] sm:$0xff] %v5282_v53  ;;  %v3874_v48 = vpop.eup %3873  ;;  %3893 = vrcp.f32 %v1615_v44  ;;  %v912_v12 = vadd.f32 1.0, %v3872_v56  ;;  %1040 = vadd.xlane.f32.xlu0 %v5226_v59  ;;  %v5289_v41 = vpop.f32.mrb[39].mxu0 }
 0x171   : > { %6016 = vst [vmem:[#allocation19_spill] sm:$0xff] %v5289_v41  ;;  %v3876_v57 = vpop.eup %3875  ;;  %3895 = vrcp.f32 %v911_v52  ;;  %v913_v23 = vadd.f32 1.0, %v3874_v48  ;;  %v5297_v5 = vpop.f32.mrb[38].mxu1  ;;  %v5308_v48 = vmul.f32 -1.442695, %v5154_v39 }
 0x172   : > { %6017 = vst [vmem:[#allocation20_spill] sm:$0xff] %v5297_v5  ;;  %v3878_v56 = vpop.eup %3877  ;;  %3897 = vrcp.f32 %v912_v12  ;;  %v1786_v59 = vmul.f32 %v3876_v57, %v3876_v57  ;;  %v1706_v7 = vmul.f32 %v3876_v57, %v5125_v14  ;;  %v5303_v44 = vpop.f32.mrb[39].mxu1 }
 0x173   : > { %6018 = vst [vmem:[#allocation21_spill] sm:$0xff] %v5303_v44  ;;  %v3880_v52 = vpop.eup %3879  ;;  %3899 = vrcp.f32 %v913_v23  ;;  %1822 = vadd.xlane.f32.xlu1 %v5237_v0  ;;  %v1787_v15 = vmul.f32 %v3878_v56, %v3878_v56  ;;  %v1707_v38 = vmul.f32 %v3878_v56, %v5130_v13  ;;  %v5310_v51 = vpop.f32.mrb[40].mxu0 }
 0x174   : > { %6019 = vst [vmem:[#allocation22_spill] sm:$0xff] %v5310_v51  ;;  %v3882_v12 = vpop.eup %3881  ;;  %3901 = vpow2.f32 %v3211_v6  ;;  %v1083_v57 = vmul.f32 %v3880_v52, %v3880_v52  ;;  %v1003_v14 = vmul.f32 %v3880_v52, %v5252_v32  ;;  %v5316_v44 = vpop.f32.mrb[41].mxu0 }
 0x175   : > { %6020 = vst [vmem:[#allocation23_spill] sm:$0xff] %v5316_v44  ;;  %v3884_v23 = vpop.eup %3883  ;;  %3903 = vpow2.f32 %v3288_v37  ;;  %v1824_v0 = vadd.f32 %v1787_v15, %v1786_v59  ;;  %v1744_v5 = vadd.f32 %v1707_v38, %v1706_v7  ;;  %v1084_v56 = vmul.f32 %v3882_v12, %v3882_v12  ;;  %v5318_v13 = vpop.f32.mrb[40].mxu1 }
 0x176   : > { %v3886_v39 = vpop.eup %3885  ;;  %3905 = vpow2.f32 %v3289_v60  ;;  %v1004_v51 = vmul.f32 %v3882_v12, %v5254_v22  ;;  %v1005_v6 = vmul.f32 %v3884_v23, %v5259_v29  ;;  %v1085_v41 = vmul.f32 %v3884_v23, %v3884_v23  ;;  %v5322_v26 = vpop.f32.mrb[41].mxu1 }
 0x177   : > { %v3888_v53 = vpop.eup %3887  ;;  %1825 = vadd.xlane.f32.xlu0 %v1824_v0  ;;  %3907 = vpow2.f32 %v3290_v47  ;;  %1742 = vadd.xlane.f32.xlu1 %v5239_v46  ;;  %v1122_v37 = vadd.f32 %v1084_v56, %v1083_v57  ;;  %v1006_v59 = vmul.f32 %v3886_v39, %v5261_v2  ;;  %v1086_v7 = vmul.f32 %v3886_v39, %v3886_v39  ;;  %v5326_v52 = vpop.f32.mrb[42].mxu0 }
 0x178   : > { %6021 = vst [vmem:[#allocation24_spill] sm:$0xff] %v5326_v52  ;;  %v3890_v15 = vpop.eup %3889  ;;  %3909 = vpow2.f32 %v3291_v49  ;;  %v1042_v60 = vadd.f32 %v1004_v51, %v1003_v14  ;;  %v1788_v38 = vmul.f32 %v3888_v53, %v3888_v53  ;;  %v1708_v12 = vmul.f32 %v3888_v53, %v5252_v32  ;;  %v5329_v23 = vpop.f32.mrb[43].mxu0 }
 0x179   : > { %v3892_v44 = vpop.eup %3891  ;;  %3911 = vpow2.f32 %v3292_v31  ;;  %v1045_v0 = vadd.f32 %v1006_v59, %v1005_v6  ;;  %v1789_v47 = vmul.f32 %v3890_v15, %v3890_v15  ;;  %v1709_v46 = vmul.f32 %v3890_v15, %v5254_v22  ;;  %v5332_v57 = vpop.f32.mrb[42].mxu1 }
 0x17a   : > { %v3894_v56 = vpop.eup %3893  ;;  %3913 = vpow2.f32 %v3212_v36  ;;  %v1790_v39 = vmul.f32 %v3892_v44, %v3892_v44  ;;  %v1710_v52 = vmul.f32 %v3892_v44, %v5259_v29  ;;  %v5335_v49 = vadd.f32 %v1086_v7, %v1085_v41  ;;  %v5337_v51 = vpop.f32.mrb[43].mxu1 }
 0x17b   : > { %v3896_v14 = vpop.eup %3895  ;;  %1745 = vadd.xlane.f32.xlu0 %v1744_v5  ;;  %3915 = vpow2.f32 %v5287_v54  ;;  %1120 = vadd.xlane.f32.xlu1 %v5232_v4  ;;  %v1827_v31 = vadd.f32 %v1789_v47, %v1788_v38  ;;  %v1791_v53 = vmul.f32 %v3894_v56, %v3894_v56  ;;  %v5341_v6 = vadd.f32 %v1709_v46, %v1708_v12  ;;  %v5343_v59 = vpop.f32.mrb[44].mxu0 }
 0x17c   : > { %v3898_v36 = vpop.eup %3897  ;;  %3917 = vpow2.f32 %v5292_v1  ;;  %v1711_v41 = vmul.f32 %v3894_v56, %v5261_v2  ;;  %v1087_v44 = vmul.f32 %v3896_v14, %v3896_v14  ;;  %v1007_v7 = vmul.f32 %v3896_v14, %v5265_v28  ;;  %v5348_v15 = vpop.f32.mrb[45].mxu0 }
 0x17d   : > { %v5350_v5 = vpop.eup %3899  ;;  %3919 = vpow2.f32 %v5295_v20  ;;  %v1830_v4 = vadd.f32 %v1791_v53, %v1790_v39  ;;  %v1088_v54 = vmul.f32 %v3898_v36, %v3898_v36  ;;  %v1008_v38 = vmul.f32 %v3898_v36, %v5267_v19  ;;  %v5354_v12 = vpop.f32.mrb[44].mxu1 }
 0x17e   : > { %v3902_v47 = vpop.eup %3901  ;;  %3921 = vpow2.f32 %v5301_v35  ;;  %v5357_v1 = vadd.f32 %v1711_v41, %v1710_v52  ;;  %v5359_v46 = vpop.f32.mrb[45].mxu1  ;;  %v405_v52 = vld [vmem:[%s5015_s15 + $0x50] sm:$0xff] }
 0x17f   : > { %v3904_v56 = vpop.eup %3903  ;;  %v914_v14 = vadd.f32 1.0, %v3902_v47  ;;  %1123 = vadd.xlane.f32.xlu0 %v1122_v37  ;;  %3923 = vpow2.f32 %v5308_v48  ;;  %1043 = vadd.xlane.f32.xlu1 %v1042_v60  ;;  %v5362_v20 = vadd.f32 %v1088_v54, %v1087_v44  ;;  %v5364_v39 = vadd.f32 %v1008_v38, %v1007_v7  ;;  %v5366_v53 = vpop.f32.mrb[46].mxu0  ;;  %v406_v47 = vld [vmem:[%s5015_s15 + $0x58] sm:$0xff]  ;;  %v407_v54 = vld [vmem:[%s5015_s15 + $0x60] sm:$0xff] }
 0x180   : > { %6022 = vst [vmem:[#allocation25_spill] sm:$0xff] %v5366_v53  ;;  %v3906_v36 = vpop.eup %3905  ;;  %v1616_v35 = vadd.f32 1.0, %v3904_v56  ;;  %3925 = vpow2.f32 %v5313_v50  ;;  %v5370_v41 = vpop.f32.mrb[47].mxu0  ;;  %v5378_v50 = vunpack.c.l.bf16 %v405_v52  ;;  %v5380_v32 = vunpack.c.h.bf16 %v405_v52 }
 0x181   : > { %6023 = vst [vmem:[#allocation26_spill] sm:$0xff] %v5370_v41  ;;  %v3908_v22 = vpop.eup %3907  ;;  %3927 = vrcp.f32 %v914_v14  ;;  %v1617_v37 = vadd.f32 1.0, %v3906_v36  ;;  %v5373_v48 = vpop.f32.mrb[46].mxu1  ;;  %v5382_v41 = vunpack.c.l.bf16 %v406_v47  ;;  %v3216_v52 = vmul.f32 -1.442695, %v5172_v45 }
 0x182   : > { %6024 = vst [vmem:[#allocation27_spill] sm:$0xff] %v5373_v48  ;;  %v3910_v60 = vpop.eup %3909  ;;  %3929 = vrcp.f32 %v1616_v35  ;;  %v1618_v44 = vadd.f32 1.0, %v3908_v22  ;;  %v5375_v7 = vpop.f32.mrb[47].mxu1  ;;  %v5384_v48 = vunpack.c.h.bf16 %v406_v47  ;;  %v3296_v47 = vmul.f32 -1.442695, %v5184_v18 }
 0x183   : > { %6025 = vst [vmem:[#allocation28_spill] sm:$0xff] %v5375_v7  ;;  %v3912_v38 = vpop.eup %3911  ;;  %3931 = vrcp.f32 %v1617_v37  ;;  %v1619_v56 = vadd.f32 1.0, %v3910_v60  ;;  %1046 = vadd.xlane.f32.xlu0 %v1045_v0  ;;  %1828 = vadd.xlane.f32.xlu1 %v1827_v31  ;;  %v5386_v7 = vunpack.c.l.bf16 %v407_v54  ;;  %v5388_v37 = vunpack.c.h.bf16 %v407_v54 }
 0x184   : > { %v3914_v14 = vpop.eup %3913  ;;  %3933 = vrcp.f32 %v1618_v44  ;;  %v1620_v36 = vadd.f32 1.0, %v3912_v38  ;;  %v3217_v60 = vmul.f32 -1.442695, %v5178_v21  ;;  %v3297_v53 = vmul.f32 -1.442695, %v5187_v25 }
 0x185   : > { %v3916_v22 = vpop.eup %3915  ;;  %3935 = vrcp.f32 %v1619_v56  ;;  %v915_v35 = vadd.f32 1.0, %v3914_v14  ;;  %v3218_v14 = vmul.f32 -1.442695, %v5191_v43 }
 0x186   : > { %v3918_v0 = vpop.eup %3917  ;;  %3937 = vrcp.f32 %v1620_v36  ;;  %v1621_v31 = vadd.f32 1.0, %v3916_v22  ;;  %v3219_v36 = vmul.f32 -1.442695, %v5194_v8  ;;  %v3298_v22 = vmul.f32 -1.442695, %v5199_v17 }
 0x187   : > { %v3920_v44 = vpop.eup %3919  ;;  %3939 = vrcp.f32 %v915_v35  ;;  %v916_v38 = vadd.f32 1.0, %v3918_v0  ;;  %1831 = vadd.xlane.f32.xlu0 %v1830_v4  ;;  %1748 = vadd.xlane.f32.xlu1 %v5341_v6  ;;  %v3299_v35 = vmul.f32 -1.442695, %v5201_v11  ;;  %v1009_v6 = vmul.f32 %v5350_v5, %v5378_v50 }
 0x188   : > { %v3922_v56 = vpop.eup %3921  ;;  %3941 = vrcp.f32 %v1621_v31  ;;  %v917_v54 = vadd.f32 1.0, %v3920_v44  ;;  %v1089_v4 = vmul.f32 %v5350_v5, %v5350_v5  ;;  %v3300_v8 = vmul.f32 -1.442695, %v5213_v10 }
 0x189   : > { %v3924_v45 = vpop.eup %3923  ;;  %3943 = vrcp.f32 %v916_v38  ;;  %v918_v21 = vadd.f32 1.0, %v3922_v56  ;;  %v3220_v17 = vmul.f32 -1.442695, %v5205_v3  ;;  %v5408_v31 = vmul.f32 -1.442695, %v5219_v40 }
 0x18a   : > { %v3926_v18 = vpop.eup %3925  ;;  %3945 = vrcp.f32 %v917_v54  ;;  %v1622_v25 = vadd.f32 1.0, %v3924_v45  ;;  %v5412_v56 = vmul.f32 -1.442695, %v5209_v58 }
 0x18b   : > { %v3928_v0 = vpop.eup %3927  ;;  %3947 = vrcp.f32 %v918_v21  ;;  %v1623_v43 = vadd.f32 1.0, %v3926_v18  ;;  %1751 = vadd.xlane.f32.xlu0 %v5357_v1  ;;  %1126 = vadd.xlane.f32.xlu1 %v5335_v49 }
 0x18c   : > { %v3930_v11 = vpop.eup %3929  ;;  %3949 = vrcp.f32 %v1622_v25  ;;  %v1010_v44 = vmul.f32 %v3928_v0, %v5380_v32  ;;  %v1090_v38 = vmul.f32 %v3928_v0, %v3928_v0 }
 0x18d   : > { %v3932_v5 = vpop.eup %3931  ;;  %3951 = vrcp.f32 %v1623_v43  ;;  %v1792_v10 = vmul.f32 %v3930_v11, %v3930_v11  ;;  %v1712_v1 = vmul.f32 %v3930_v11, %v5265_v28 }
 0x18e   : > { %v3934_v54 = vpop.eup %3933  ;;  %3953 = vpow2.f32 %v3296_v47  ;;  %v1051_v3 = vadd.f32 %v1010_v44, %v1009_v6  ;;  %v1793_v49 = vmul.f32 %v3932_v5, %v3932_v5  ;;  %v1131_v45 = vadd.f32 %v1090_v38, %v1089_v4 }
 0x18f   : > { %v3936_v21 = vpop.eup %3935  ;;  %3955 = vpow2.f32 %v3216_v52  ;;  %1129 = vadd.xlane.f32.xlu0 %v5362_v20  ;;  %1049 = vadd.xlane.f32.xlu1 %v5364_v39  ;;  %v1713_v40 = vmul.f32 %v3932_v5, %v5267_v19  ;;  %v1794_v18 = vmul.f32 %v3934_v54, %v3934_v54  ;;  %v1714_v58 = vmul.f32 %v3934_v54, %v5378_v50 }
 0x190   : > { %v3938_v25 = vpop.eup %3937  ;;  %3957 = vpow2.f32 %v3297_v53  ;;  %v1833_v0 = vadd.f32 %v1793_v49, %v1792_v10  ;;  %v1795_v43 = vmul.f32 %v3936_v21, %v3936_v21  ;;  %v1715_v47 = vmul.f32 %v3936_v21, %v5380_v32 }
 0x191   : > { %v3940_v6 = vpop.eup %3939  ;;  %3959 = vpow2.f32 %v3217_v60  ;;  %v1753_v4 = vadd.f32 %v1713_v40, %v1712_v1  ;;  %v1796_v11 = vmul.f32 %v3938_v25, %v3938_v25  ;;  %v1716_v52 = vmul.f32 %v3938_v25, %v5382_v41 }
 0x192   : > { %v3942_v20 = vpop.eup %3941  ;;  %3961 = vpow2.f32 %v3218_v14  ;;  %v1836_v39 = vadd.f32 %v1795_v43, %v1794_v18  ;;  %v5421_v44 = vadd.f32 %v1715_v47, %v1714_v58  ;;  %v1011_v38 = vmul.f32 %v3940_v6, %v5382_v41 }
 0x193   : > { %v3944_v5 = vpop.eup %3943  ;;  %3963 = vpow2.f32 %v3219_v36  ;;  %1052 = vadd.xlane.f32.xlu0 %v1051_v3  ;;  %1834 = vadd.xlane.f32.xlu1 %v1833_v0  ;;  %v1797_v53 = vmul.f32 %v3942_v20, %v3942_v20  ;;  %v1091_v10 = vmul.f32 %v3940_v6, %v3940_v6  ;;  %v1717_v54 = vmul.f32 %v3942_v20, %v5384_v48 }
 0x194   : > { %v3946_v60 = vpop.eup %3945  ;;  %3965 = vpow2.f32 %v3298_v22  ;;  %v3350_v1 = vmul.f32 -1.442695, %v5223_v33  ;;  %v1012_v49 = vmul.f32 %v3944_v5, %v5384_v48  ;;  %v1092_v14 = vmul.f32 %v3944_v5, %v3944_v5 }
 0x195   : > { %v3948_v21 = vpop.eup %3947  ;;  %3967 = vpow2.f32 %v3299_v35  ;;  %v1839_v40 = vadd.f32 %v1797_v53, %v1796_v11  ;;  %v1093_v18 = vmul.f32 %v3946_v60, %v3946_v60  ;;  %v5427_v58 = vadd.f32 %v1717_v54, %v1716_v52  ;;  %v408_v54 = vld [vmem:[%s5015_s15 + $0x68] sm:$0xff] }
 0x196   : > { %v3950_v36 = vpop.eup %3949  ;;  %3969 = vpow2.f32 %v3300_v8  ;;  %v1094_v3 = vmul.f32 %v3948_v21, %v3948_v21  ;;  %v5429_v25 = vadd.f32 %v1012_v49, %v1011_v38  ;;  %v5431_v0 = vadd.f32 %v1092_v14, %v1091_v10  ;;  %v409_v49 = vld [vmem:[%s5015_s15 + $0x70] sm:$0xff] }
 0x197   : > { %v3952_v43 = vpop.eup %3951  ;;  %3971 = vpow2.f32 %v3220_v17  ;;  %1132 = vadd.xlane.f32.xlu0 %v1131_v45  ;;  %1754 = vadd.xlane.f32.xlu1 %v1753_v4  ;;  %v1798_v33 = vmul.f32 %v3950_v36, %v3950_v36  ;;  %v1718_v22 = vmul.f32 %v3950_v36, %v5386_v7  ;;  %v1013_v35 = vmul.f32 %v3946_v60, %v5386_v7 }
 0x198   : > { %v3954_v47 = vpop.eup %3953  ;;  %3973 = vpow2.f32 %v5408_v31  ;;  %v1137_v6 = vadd.f32 %v1094_v3, %v1093_v18  ;;  %v1799_v11 = vmul.f32 %v3952_v43, %v3952_v43  ;;  %v1719_v8 = vmul.f32 %v3952_v43, %v5388_v37 }
 0x199   : > { %v3956_v52 = vpop.eup %3955  ;;  %v1624_v20 = vadd.f32 1.0, %v3954_v47  ;;  %3975 = vpow2.f32 %v5412_v56  ;;  %v1014_v17 = vmul.f32 %v3948_v21, %v5388_v37  ;;  %v410_v21 = vld [vmem:[%s5015_s15 + $0x78] sm:$0xff]  ;;  %v5448_v3 = vunpack.c.l.bf16 %v408_v54 }
 0x19a   : > { %v3958_v45 = vpop.eup %3957  ;;  %v919_v4 = vadd.f32 1.0, %v3956_v52  ;;  %3977 = vpow2.f32 %v3350_v1  ;;  %v5439_v38 = vadd.f32 %v1799_v11, %v1798_v33  ;;  %v5441_v5 = vadd.f32 %v1719_v8, %v1718_v22 }
 0x19b   : > { %v3960_v31 = vpop.eup %3959  ;;  %3979 = vrcp.f32 %v1624_v20  ;;  %v1625_v53 = vadd.f32 1.0, %v3958_v45  ;;  %1840 = vadd.xlane.f32.xlu0 %v1839_v40  ;;  %1837 = vadd.xlane.f32.xlu1 %v1836_v39  ;;  %v5443_v10 = vadd.f32 %v1014_v17, %v1013_v35  ;;  %v5451_v39 = vunpack.c.h.bf16 %v408_v54 }
 0x19c   : > { %v3962_v56 = vpop.eup %3961  ;;  %3981 = vrcp.f32 %v919_v4  ;;  %v920_v60 = vadd.f32 1.0, %v3960_v31  ;;  %v5453_v33 = vunpack.c.l.bf16 %v409_v49  ;;  %v5455_v47 = vunpack.c.h.bf16 %v409_v49 }
 0x19d   : > { %v3964_v14 = vpop.eup %3963  ;;  %3983 = vrcp.f32 %v1625_v53  ;;  %v921_v1 = vadd.f32 1.0, %v3962_v56  ;;  %v5457_v11 = vunpack.c.l.bf16 %v410_v21  ;;  %v3351_v20 = vmul.f32 -1.442695, %v5229_v27 }
 0x19e   : > { %v3966_v18 = vpop.eup %3965  ;;  %3985 = vrcp.f32 %v920_v60  ;;  %v922_v36 = vadd.f32 1.0, %v3964_v14  ;;  %v5460_v17 = vunpack.c.h.bf16 %v410_v21  ;;  %v3366_v45 = vmul.f32 -1.442695, %v5234_v24 }
 0x19f   : > { %v3968_v43 = vpop.eup %3967  ;;  %3987 = vrcp.f32 %v921_v1  ;;  %v1626_v40 = vadd.f32 1.0, %v3966_v18  ;;  %1138 = vadd.xlane.f32.xlu0 %v1137_v6  ;;  %1757 = vadd.xlane.f32.xlu1 %v5421_v44  ;;  %v3367_v4 = vmul.f32 -1.442695, %v5241_v30  ;;  %v3368_v54 = vmul.f32 -1.442695, %v5250_v42 }
 0x1a0   : > { %v3970_v22 = vpop.eup %3969  ;;  %3989 = vrcp.f32 %v922_v36  ;;  %v1627_v35 = vadd.f32 1.0, %v3968_v43  ;;  %v3369_v56 = vmul.f32 -1.442695, %v5256_v63  ;;  %v3352_v49 = vmul.f32 -1.442695, %v5244_v34 }
 0x1a1   : > { %v3972_v8 = vpop.eup %3971  ;;  %3991 = vrcp.f32 %v1626_v40  ;;  %v1628_v52 = vadd.f32 1.0, %v3970_v22  ;;  %v3353_v14 = vmul.f32 -1.442695, %v5247_v16  ;;  %v3354_v30 = vmul.f32 -1.442695, %v5263_v9 }
 0x1a2   : > { %v3974_v6 = vpop.eup %3973  ;;  %3993 = vrcp.f32 %v1627_v35  ;;  %v923_v44 = vadd.f32 1.0, %v3972_v8  ;;  %v3355_v21 = vmul.f32 -1.442695, %v5269_v62  ;;  %v3370_v63 = vmul.f32 -1.442695, %v5273_v61  ;;  %v6026_v62 = vld [vmem:[#allocation18_spill] sm:$0xff] }
 0x1a3   : > { %v3976_v31 = vpop.eup %3975  ;;  %3995 = vrcp.f32 %v1628_v52  ;;  %v1629_v53 = vadd.f32 1.0, %v3974_v6  ;;  %1055 = vadd.xlane.f32.xlu1 %v5429_v25  ;;  %v3371_v34 = vmul.f32 -1.442695, %v5277_v55  ;;  %v3356_v22 = vmul.f32 -1.442695, %v6026_v62  ;;  %v6027_v61 = vld [vmem:[#allocation19_spill] sm:$0xff] }
 0x1a4   : > { %v3978_v60 = vpop.eup %3977  ;;  %3997 = vrcp.f32 %v923_v44  ;;  %v924_v27 = vadd.f32 1.0, %v3976_v31  ;;  %v3357_v52 = vmul.f32 -1.442695, %v6027_v61 }
 0x1a5   : > { %v3980_v1 = vpop.eup %3979  ;;  %3999 = vrcp.f32 %v1629_v53  ;;  %v2303_v24 = vadd.f32 1.0, %v3978_v60 }
 0x1a6   : > { %v3982_v18 = vpop.eup %3981  ;;  %4001 = vrcp.f32 %v924_v27  ;;  %v1800_v42 = vmul.f32 %v3980_v1, %v3980_v1  ;;  %v1720_v25 = vmul.f32 %v3980_v1, %v5448_v3 }
 0x1a7   : > { %v3984_v36 = vpop.eup %3983  ;;  %4003 = vrcp.f32 %v2303_v24  ;;  %1135 = vadd.xlane.f32.xlu1 %v5431_v0  ;;  %v1095_v16 = vmul.f32 %v3982_v18, %v3982_v18  ;;  %v1015_v43 = vmul.f32 %v3982_v18, %v5448_v3 }
 0x1a8   : > { %v3986_v40 = vpop.eup %3985  ;;  %4005 = vpow2.f32 %v3351_v20  ;;  %v1801_v9 = vmul.f32 %v3984_v36, %v3984_v36  ;;  %v1721_v35 = vmul.f32 %v3984_v36, %v5451_v39 }
 0x1a9   : > { %v3988_v8 = vpop.eup %3987  ;;  %4007 = vpow2.f32 %v3366_v45  ;;  %v1096_v6 = vmul.f32 %v3986_v40, %v3986_v40  ;;  %v1016_v44 = vmul.f32 %v3986_v40, %v5451_v39 }
 0x1aa   : > { %v3990_v55 = vpop.eup %3989  ;;  %4009 = vpow2.f32 %v3367_v4  ;;  %v1845_v0 = vadd.f32 %v1801_v9, %v1800_v42  ;;  %v1097_v31 = vmul.f32 %v3988_v8, %v3988_v8  ;;  %v5480_v53 = vadd.f32 %v1721_v35, %v1720_v25 }
 0x1ab   : > { %v3992_v60 = vpop.eup %3991  ;;  %4011 = vpow2.f32 %v3368_v54  ;;  %v1098_v20 = vmul.f32 %v3990_v55, %v3990_v55  ;;  %1760 = vadd.xlane.f32.xlu1 %v5427_v58  ;;  %v1140_v27 = vadd.f32 %v1096_v6, %v1095_v16  ;;  %v5483_v1 = vadd.f32 %v1016_v44, %v1015_v43 }
 0x1ac   : > { %v3994_v45 = vpop.eup %3993  ;;  %4013 = vpow2.f32 %v3369_v56  ;;  %1846 = vadd.xlane.f32.xlu0 %v1845_v0  ;;  %v1802_v24 = vmul.f32 %v3992_v60, %v3992_v60  ;;  %v1722_v18 = vmul.f32 %v3992_v60, %v5453_v33  ;;  %v1017_v4 = vmul.f32 %v3988_v8, %v5453_v33 }
 0x1ad   : > { %v3996_v42 = vpop.eup %3995  ;;  %4015 = vpow2.f32 %v3352_v49  ;;  %v1143_v25 = vadd.f32 %v1098_v20, %v1097_v31  ;;  %v1803_v36 = vmul.f32 %v3994_v45, %v3994_v45  ;;  %v1723_v54 = vmul.f32 %v3994_v45, %v5455_v47 }
 0x1ae   : > { %v3998_v40 = vpop.eup %3997  ;;  %4017 = vpow2.f32 %v3353_v14  ;;  %v1804_v58 = vmul.f32 %v3996_v42, %v3996_v42  ;;  %v1018_v16 = vmul.f32 %v3990_v55, %v5455_v47  ;;  %v1724_v43 = vmul.f32 %v3996_v42, %v5457_v11 }
 0x1af   : > { %v4000_v56 = vpop.eup %3999  ;;  %4019 = vpow2.f32 %v3354_v30  ;;  %1843 = vadd.xlane.f32.xlu1 %v5439_v38  ;;  %v1848_v9 = vadd.f32 %v1803_v36, %v1802_v24  ;;  %v1099_v62 = vmul.f32 %v3998_v40, %v3998_v40  ;;  %v5491_v35 = vadd.f32 %v1723_v54, %v1722_v18 }
 0x1b0   : > { %v4002_v49 = vpop.eup %4001  ;;  %1144 = vadd.xlane.f32.xlu0 %v1143_v25  ;;  %4021 = vpow2.f32 %v3355_v21  ;;  %v1805_v8 = vmul.f32 %v4000_v56, %v4000_v56  ;;  %v5493_v61 = vadd.f32 %v1018_v16, %v1017_v4  ;;  %v1019_v14 = vmul.f32 %v3998_v40, %v5457_v11 }
 0x1b1   : > { %v4004_v6 = vpop.eup %4003  ;;  %4023 = vpow2.f32 %v3370_v63  ;;  %v1100_v44 = vmul.f32 %v4002_v49, %v4002_v49  ;;  %v1020_v55 = vmul.f32 %v4002_v49, %v5460_v17  ;;  %v1725_v30 = vmul.f32 %v4000_v56, %v5460_v17  ;;  %v6029_v56 = vld [vmem:[#allocation21_spill] sm:$0xff]  ;;  %v6030_v49 = vld [vmem:[#allocation22_spill] sm:$0xff] }
 0x1b2   : > { %v4006_v38 = vpop.eup %4005  ;;  %4025 = vpow2.f32 %v3371_v34  ;;  %v1851_v0 = vadd.f32 %v1805_v8, %v1804_v58  ;;  %v6028_v58 = vld [vmem:[#allocation20_spill] sm:$0xff]  ;;  %v3358_v8 = vmul.f32 -1.442695, %v6030_v49  ;;  %v5524_v49 = vmul.f32 -1.442695, %v5359_v46 }
 0x1b3   : > { %v4008_v31 = vpop.eup %4007  ;;  %v2304_v60 = vadd.f32 1.0, %v4006_v38  ;;  %4027 = vpow2.f32 %v3356_v22  ;;  %1141 = vadd.xlane.f32.xlu1 %v1140_v27  ;;  %v1146_v21 = vadd.f32 %v1100_v44, %v1099_v62  ;;  %v5498_v20 = vadd.f32 %v1020_v55, %v1019_v14 }
 0x1b4   : > { %v4010_v45 = vpop.eup %4009  ;;  %v2319_v24 = vadd.f32 1.0, %v4008_v31  ;;  %1852 = vadd.xlane.f32.xlu0 %v1851_v0  ;;  %4029 = vpow2.f32 %v3357_v52  ;;  %v5500_v63 = vadd.f32 %v1725_v30, %v1724_v43  ;;  %v3372_v52 = vmul.f32 -1.442695, %v6028_v58  ;;  %v6031_v0 = vld [vmem:[#allocation23_spill] sm:$0xff] }
 0x1b5   : > { %v4012_v18 = vpop.eup %4011  ;;  %4031 = vrcp.f32 %v2304_v60  ;;  %v2320_v4 = vadd.f32 1.0, %v4010_v45  ;;  %v3373_v62 = vmul.f32 -1.442695, %v6029_v56  ;;  %v3375_v55 = vmul.f32 -1.442695, %v5322_v26  ;;  %v6032_v60 = vld [vmem:[#allocation24_spill] sm:$0xff] }
 0x1b6   : > { %v4014_v42 = vpop.eup %4013  ;;  %4033 = vrcp.f32 %v2319_v24  ;;  %v2321_v34 = vadd.f32 1.0, %v4012_v18  ;;  %v3359_v31 = vmul.f32 -1.442695, %v6031_v0  ;;  %v3360_v45 = vmul.f32 -1.442695, %v6032_v60  ;;  %v6034_v58 = vld [vmem:[#allocation3_spill] sm:$0xff] }
 0x1b7   : > { %v4016_v25 = vpop.eup %4015  ;;  %4035 = vrcp.f32 %v2320_v4  ;;  %v2322_v36 = vadd.f32 1.0, %v4014_v42  ;;  %1849 = vadd.xlane.f32.xlu1 %v1848_v9  ;;  %v3374_v9 = vmul.f32 -1.442695, %v5318_v13  ;;  %v3361_v4 = vmul.f32 -1.442695, %v5329_v23 }
 0x1b8   : > { %v4018_v22 = vpop.eup %4017  ;;  %4037 = vrcp.f32 %v2321_v34  ;;  %v2305_v27 = vadd.f32 1.0, %v4016_v25  ;;  %v5511_v42 = vmul.f32 -1.442695, %v5332_v57  ;;  %v2479_v26 = vmul.f32 %v4004_v6, %v4004_v6 }
 0x1b9   : > { %v4020_v54 = vpop.eup %4019  ;;  %4039 = vrcp.f32 %v2322_v36  ;;  %v2306_v40 = vadd.f32 1.0, %v4018_v22 }
 0x1ba   : > { %v4022_v16 = vpop.eup %4021  ;;  %4041 = vrcp.f32 %v2305_v27  ;;  %v2307_v43 = vadd.f32 1.0, %v4020_v54  ;;  %v3377_v27 = vmul.f32 -1.442695, %v5337_v51  ;;  %v5516_v54 = vmul.f32 -1.442695, %v5343_v59 }
 0x1bb   : > { %v4024_v14 = vpop.eup %4023  ;;  %4043 = vrcp.f32 %v2306_v40  ;;  %v2308_v44 = vadd.f32 1.0, %v4022_v16  ;;  %1147 = vadd.xlane.f32.xlu1 %v1146_v21  ;;  %v6033_v21 = vld [vmem:[#allocation2_spill] sm:$0xff]  ;;  %v5520_v16 = vmul.f32 -1.442695, %v5354_v12 }
 0x1bc   : > { %v4026_v30 = vpop.eup %4025  ;;  %4045 = vrcp.f32 %v2307_v43  ;;  %v2323_v38 = vadd.f32 1.0, %v4024_v14  ;;  %v2399_v25 = vmul.f32 %v4004_v6, %v6033_v21 }
 0x1bd   : > { %v4028_v24 = vpop.eup %4027  ;;  %4047 = vrcp.f32 %v2308_v44  ;;  %v2324_v18 = vadd.f32 1.0, %v4026_v30 }
 0x1be   : > { %v4030_v34 = vpop.eup %4029  ;;  %4049 = vrcp.f32 %v2323_v38  ;;  %v2309_v13 = vadd.f32 1.0, %v4028_v24 }
 0x1bf   : > { %v4032_v36 = vpop.eup %4031  ;;  %4051 = vrcp.f32 %v2324_v18  ;;  %v2310_v22 = vadd.f32 1.0, %v4030_v34 }
 0x1c0   : > { %v4034_v40 = vpop.eup %4033  ;;  %4053 = vrcp.f32 %v2309_v13  ;;  %v2480_v23 = vmul.f32 %v4032_v36, %v4032_v36  ;;  %v2400_v57 = vmul.f32 %v4032_v36, %v6034_v58  ;;  %v6035_v13 = vld [vmem:[#allocation4_spill] sm:$0xff] }
 0x1c1   : > { %v4036_v43 = vpop.eup %4035  ;;  %4055 = vrcp.f32 %v2310_v22  ;;  %v2495_v56 = vmul.f32 %v4034_v40, %v4034_v40  ;;  %v2415_v6 = vmul.f32 %v4034_v40, %v5259_v29  ;;  %v6037_v40 = vld [vmem:[#allocation6_spill] sm:$0xff] }
 0x1c2   : > { %v4038_v51 = vpop.eup %4037  ;;  %v2511_v14 = vadd.f32 %v2480_v23, %v2479_v26  ;;  %4057 = vpow2.f32 %v3372_v52  ;;  %v2496_v59 = vmul.f32 %v4036_v43, %v4036_v43  ;;  %v2431_v44 = vadd.f32 %v2400_v57, %v2399_v25  ;;  %v6038_v57 = vld [vmem:[#allocation7_spill] sm:$0xff] }
 0x1c3   : > { %v4040_v30 = vpop.eup %4039  ;;  %4059 = vpow2.f32 %v3373_v62  ;;  %v2416_v38 = vmul.f32 %v4036_v43, %v5261_v2  ;;  %v2497_v0 = vmul.f32 %v4038_v51, %v4038_v51  ;;  %v2417_v12 = vmul.f32 %v4038_v51, %v5265_v28 }
 0x1c4   : > { %v4042_v60 = vpop.eup %4041  ;;  %2512 = vadd.xlane.f32.xlu0 %v2511_v14  ;;  %v2535_v24 = vadd.f32 %v2496_v59, %v2495_v56  ;;  %4061 = vpow2.f32 %v3358_v8  ;;  %v2498_v29 = vmul.f32 %v4040_v30, %v4040_v30  ;;  %v2418_v46 = vmul.f32 %v4040_v30, %v5267_v19  ;;  %v6036_v8 = vld [vmem:[#allocation5_spill] sm:$0xff] }
 0x1c5   : > { %v4044_v18 = vpop.eup %4043  ;;  %4063 = vpow2.f32 %v3374_v9  ;;  %v2455_v34 = vadd.f32 %v2416_v38, %v2415_v6  ;;  %v2481_v52 = vmul.f32 %v4042_v60, %v4042_v60  ;;  %v2401_v26 = vmul.f32 %v4042_v60, %v6035_v13 }
 0x1c6   : > { %v4046_v21 = vpop.eup %4045  ;;  %4065 = vpow2.f32 %v3375_v55  ;;  %v5530_v62 = vadd.f32 %v2498_v29, %v2497_v0  ;;  %v5532_v2 = vadd.f32 %v2418_v46, %v2417_v12  ;;  %v2482_v28 = vmul.f32 %v4044_v18, %v4044_v18  ;;  %v6039_v12 = vld [vmem:[#allocation8_spill] sm:$0xff] }
 0x1c7   : > { %v4048_v25 = vpop.eup %4047  ;;  %4067 = vpow2.f32 %v3359_v31  ;;  %v2483_v36 = vmul.f32 %v4046_v21, %v4046_v21  ;;  %v2402_v22 = vmul.f32 %v4044_v18, %v6036_v8  ;;  %v2403_v19 = vmul.f32 %v4046_v21, %v6037_v40 }
 0x1c8   : > { %v4050_v23 = vpop.eup %4049  ;;  %2536 = vadd.xlane.f32.xlu0 %v2535_v24  ;;  %4069 = vpow2.f32 %v3360_v45  ;;  %v2514_v9 = vadd.f32 %v2482_v28, %v2481_v52  ;;  %v2484_v58 = vmul.f32 %v4048_v25, %v4048_v25  ;;  %v2404_v43 = vmul.f32 %v4048_v25, %v6038_v57  ;;  %v5564_v57 = vld [vmem:[%s5557_s18 + $0x8] sm:$0xff] }
 0x1c9   : > { %v4052_v55 = vpop.eup %4051  ;;  %4071 = vpow2.f32 %v3361_v4  ;;  %v2434_v56 = vadd.f32 %v2402_v22, %v2401_v26  ;;  %v2499_v6 = vmul.f32 %v4050_v23, %v4050_v23  ;;  %v2419_v51 = vmul.f32 %v4050_v23, %v5378_v50 }
 0x1ca   : > { %v4054_v14 = vpop.eup %4053  ;;  %4073 = vpow2.f32 %v5511_v42  ;;  %2515 = vadd.xlane.f32.xlu1 %v2514_v9  ;;  %v5539_v31 = vadd.f32 %v2484_v58, %v2483_v36  ;;  %v5541_v59 = vadd.f32 %v2404_v43, %v2403_v19  ;;  %v2500_v30 = vmul.f32 %v4052_v55, %v4052_v55  ;;  %v6040_v42 = vld [vmem:[#allocation9_spill] sm:$0xff]  ;;  %v5561_v9 = vld [vmem:[%s5557_s18] sm:$0xff] }
 0x1cb   : > { %v4056_v45 = vpop.eup %4055  ;;  %4075 = vpow2.f32 %v3377_v27  ;;  %v2420_v38 = vmul.f32 %v4052_v55, %v5380_v32  ;;  %v2485_v0 = vmul.f32 %v4054_v14, %v4054_v14  ;;  %v2405_v4 = vmul.f32 %v4054_v14, %v6039_v12 }
 0x1cc   : > { %v4058_v60 = vpop.eup %4057  ;;  %2432 = vadd.xlane.f32.xlu0 %v2431_v44  ;;  %4077 = vpow2.f32 %v5516_v54  ;;  %v2541_v50 = vadd.f32 %v2500_v30, %v2499_v6  ;;  %v2486_v24 = vmul.f32 %v4056_v45, %v4056_v45  ;;  %v2406_v29 = vmul.f32 %v4056_v45, %v6040_v42  ;;  %v6041_v30 = vld [vmem:[#allocation25_spill] sm:$0xff] }
 0x1cd   : > { %v4060_v46 = vpop.eup %4059  ;;  %v2325_v18 = vadd.f32 1.0, %v4058_v60  ;;  %4079 = vpow2.f32 %v5520_v16  ;;  %v5548_v52 = vadd.f32 %v2420_v38, %v2419_v51  ;;  %v3363_v51 = vmul.f32 -1.442695, %v5348_v15 }
 0x1ce   : > { %v4062_v27 = vpop.eup %4061  ;;  %v2326_v13 = vadd.f32 1.0, %v4060_v46  ;;  %4081 = vpow2.f32 %v5524_v49  ;;  %2435 = vadd.xlane.f32.xlu1 %v2434_v56  ;;  %v2520_v32 = vadd.f32 %v2486_v24, %v2485_v0  ;;  %v2440_v44 = vadd.f32 %v2406_v29, %v2405_v4  ;;  %v6042_v4 = vld [vmem:[#allocation26_spill] sm:$0xff] }
 0x1cf   : > { %v4064_v26 = vpop.eup %4063  ;;  %4083 = vrcp.f32 %v2325_v18  ;;  %v2311_v54 = vadd.f32 1.0, %v4062_v27  ;;  %v3364_v45 = vmul.f32 -1.442695, %v6041_v30  ;;  %v3365_v60 = vmul.f32 -1.442695, %v6042_v4  ;;  %v6044_v27 = vld [vmem:[#allocation28_spill] sm:$0xff] }
 0x1d0   : > { %v4066_v21 = vpop.eup %4065  ;;  %4085 = vrcp.f32 %v2326_v13  ;;  %v2327_v28 = vadd.f32 1.0, %v4064_v26  ;;  %2456 = vadd.xlane.f32.xlu0 %v2455_v34  ;;  %v5551_v25 = vpop.xlane.xlu0 %1022  ;;  %v3381_v13 = vmul.f32 -1.442695, %v6044_v27  ;;  %v6047_v4 = vld [vmem:[#allocation12_spill] sm:$0xff]  ;;  %v6048_v27 = vld [vmem:[#allocation13_spill] sm:$0xff] }
 0x1d1   : > { %v4068_v16 = vpop.eup %4067  ;;  %4087 = vrcp.f32 %v2311_v54  ;;  %v2328_v36 = vadd.f32 1.0, %v4066_v21 }
 0x1d2   : > { %v4070_v49 = vpop.eup %4069  ;;  %4089 = vrcp.f32 %v2327_v28  ;;  %v2312_v8 = vadd.f32 1.0, %v4068_v16  ;;  %2542 = vadd.xlane.f32.xlu1 %v2541_v50  ;;  %v6043_v50 = vld [vmem:[#allocation27_spill] sm:$0xff] }
 0x1d3   : > { %v4072_v22 = vpop.eup %4071  ;;  %4091 = vrcp.f32 %v2328_v36  ;;  %v2313_v40 = vadd.f32 1.0, %v4070_v49  ;;  %v3380_v24 = vmul.f32 -1.442695, %v6043_v50 }
 0x1d4   : > { %v4074_v34 = vpop.eup %4073  ;;  %4093 = vrcp.f32 %v2312_v8  ;;  %v2314_v19 = vadd.f32 1.0, %v4072_v22  ;;  %2539 = vadd.xlane.f32.xlu0 %v5530_v62  ;;  %v1103_v23 = vpop.xlane.xlu0 %1102 }
 0x1d5   : > { %v1106_v58 = vpop.xlane.xlu1 %1105  ;;  %v4076_v43 = vpop.eup %4075  ;;  %4095 = vrcp.f32 %v2313_v40  ;;  %v2329_v55 = vadd.f32 1.0, %v4074_v34  ;;  %v2575_v62 = vmul.f32 %v5561_v9, %v1103_v23 }
 0x1d6   : > { %v4078_v56 = vpop.eup %4077  ;;  %4097 = vrcp.f32 %v2314_v19  ;;  %v2330_v6 = vadd.f32 1.0, %v4076_v43  ;;  %2521 = vadd.xlane.f32.xlu1 %v2520_v32  ;;  %v5570_v38 = vmul.f32 %v5564_v57, %v1106_v58  ;;  %v6045_v43 = vld [vmem:[#allocation10_spill] sm:$0xff] }
 0x1d7   : > { %v4080_v14 = vpop.eup %4079  ;;  %4099 = vrcp.f32 %v2329_v55  ;;  %v5575_v46 = vadd.f32 1.0, %v4078_v56  ;;  %v2591_v36 = vmax.f32 %v2575_v62, 1e-16  ;;  %v6046_v62 = vld [vmem:[#allocation11_spill] sm:$0xff] }
 0x1d8   : > { %v4082_v0 = vpop.eup %4081  ;;  %4101 = vrcp.f32 %v2330_v6  ;;  %v2331_v12 = vadd.f32 1.0, %v4080_v14  ;;  %2459 = vadd.xlane.f32.xlu0 %v5532_v2  ;;  %v1808_v15 = vpop.xlane.xlu0 %1807  ;;  %v2592_v49 = vmax.f32 %v5570_v38, 1e-16 }
 0x1d9   : > { %v1811_v42 = vpop.xlane.xlu1 %1810  ;;  %v4084_v29 = vpop.eup %4083  ;;  %v2332_v18 = vadd.f32 1.0, %v4082_v0  ;;  %v2639_v32 = vmul.f32 %v5561_v9, %v1808_v15 }
 0x1da   : > { %v4086_v26 = vpop.eup %4085  ;;  %4103 = vrcp.f32 %v2331_v12  ;;  %v2501_v54 = vmul.f32 %v4084_v29, %v4084_v29  ;;  %2441 = vadd.xlane.f32.xlu1 %v2440_v44  ;;  %v2640_v2 = vmul.f32 %v5564_v57, %v1811_v42  ;;  %v2421_v21 = vmul.f32 %v4084_v29, %v5382_v41 }
 0x1db   : > { %v4088_v28 = vpop.eup %4087  ;;  %4105 = vrcp.f32 %v2332_v18  ;;  %v2502_v16 = vmul.f32 %v4086_v26, %v4086_v26  ;;  %v2655_v40 = vmax.f32 %v2639_v32, 1e-16  ;;  %v2422_v44 = vmul.f32 %v4086_v26, %v5384_v48  ;;  %v5603_v32 = vld [vmem:[%s5557_s18 + $0x10] sm:$0xff] }
 0x1dc   : > { %v4090_v8 = vpop.eup %4089  ;;  %4107 = vpow2.f32 %v3363_v51  ;;  %2518 = vadd.xlane.f32.xlu0 %v5539_v31  ;;  %v2487_v22 = vmul.f32 %v4088_v28, %v4088_v28  ;;  %v5583_v34 = vpop.xlane.xlu0 %1727  ;;  %v2407_v55 = vmul.f32 %v4088_v28, %v6045_v43  ;;  %v2656_v51 = vmax.f32 %v2640_v2, 1e-16 }
 0x1dd   : > { %v5585_v19 = vpop.xlane.xlu1 %1730  ;;  %v4092_v23 = vpop.eup %4091  ;;  %4109 = vpow2.f32 %v3364_v45  ;;  %v2544_v41 = vadd.f32 %v2502_v16, %v2501_v54  ;;  %v2503_v58 = vmul.f32 %v4090_v8, %v4090_v8  ;;  %v5589_v14 = vadd.f32 %v2422_v44, %v2421_v21 }
 0x1de   : > { %v4094_v56 = vpop.eup %4093  ;;  %4111 = vpow2.f32 %v3365_v60  ;;  %v2504_v6 = vmul.f32 %v4092_v23, %v4092_v23  ;;  %v2423_v0 = vmul.f32 %v4090_v8, %v5386_v7  ;;  %v2424_v26 = vmul.f32 %v4092_v23, %v5388_v37 }
 0x1df   : > { %v4096_v31 = vpop.eup %4095  ;;  %4113 = vpow2.f32 %v3380_v24  ;;  %v2488_v30 = vmul.f32 %v4094_v56, %v4094_v56  ;;  %v2408_v38 = vmul.f32 %v4094_v56, %v6046_v62 }
 0x1e0   : > { %v4098_v48 = vpop.eup %4097  ;;  %2438 = vadd.xlane.f32.xlu0 %v5541_v59  ;;  %4115 = vpow2.f32 %v3381_v13  ;;  %v2547_v45 = vadd.f32 %v2504_v6, %v2503_v58  ;;  %v2489_v12 = vmul.f32 %v4096_v31, %v4096_v31  ;;  %v2409_v60 = vmul.f32 %v4096_v31, %v6047_v4  ;;  %v5595_v50 = vpop.xlane.xlu0 %1025 }
 0x1e1   : > { %v5597_v15 = vpop.xlane.xlu1 %1028  ;;  %v4100_v42 = vpop.eup %4099  ;;  %v2523_v24 = vadd.f32 %v2488_v30, %v2487_v22  ;;  %4117 = vrsqrt.f32 %v2591_v36  ;;  %v5599_v29 = vadd.f32 %v2408_v38, %v2407_v55  ;;  %v2490_v18 = vmul.f32 %v4098_v48, %v4098_v48 }
 0x1e2   : > { %v4102_v7 = vpop.eup %4101  ;;  %2548 = vadd.xlane.f32.xlu1 %v2547_v45  ;;  %4119 = vrsqrt.f32 %v2592_v49  ;;  %v2505_v59 = vmul.f32 %v4100_v42, %v4100_v42  ;;  %v2410_v13 = vmul.f32 %v4098_v48, %v6048_v27  ;;  %v2425_v23 = vmul.f32 %v4100_v42, %v5448_v3  ;;  %v5623_v48 = vld [vmem:[%s5557_s18 + $0x18] sm:$0xff] }
 0x1e3   : > { %v2526_v54 = vadd.f32 %v2490_v18, %v2489_v12  ;;  %4121 = vrsqrt.f32 %v2655_v40  ;;  %v2506_v2 = vmul.f32 %v4102_v7, %v4102_v7  ;;  %v5611_v40 = vadd.f32 %v2424_v26, %v2423_v0 }
 0x1e4   : > { %v4104_v21 = vpop.eup %4103  ;;  %2462 = vadd.xlane.f32.xlu0 %v5548_v52  ;;  %4123 = vrsqrt.f32 %v2656_v51  ;;  %v2446_v28 = vadd.f32 %v2410_v13, %v2409_v60  ;;  %v1109_v16 = vpop.xlane.xlu0 %1108  ;;  %v2426_v52 = vmul.f32 %v4102_v7, %v5451_v39 }
 0x1e5   : > { %v1814_v36 = vpop.xlane.xlu1 %1813  ;;  %v4106_v8 = vpop.eup %4105  ;;  %4125 = vrcp.f32 %v5575_v46  ;;  %v5608_v49 = vadd.f32 %v2506_v2, %v2505_v59  ;;  %v2507_v22 = vmul.f32 %v4104_v21, %v4104_v21  ;;  %v2577_v44 = vmul.f32 %v5603_v32, %v1109_v16 }
 0x1e6   : > { %v4108_v58 = vpop.eup %4107  ;;  %2527 = vadd.xlane.f32.xlu1 %v2526_v54  ;;  %v2508_v37 = vmul.f32 %v4106_v8, %v4106_v8  ;;  %v2641_v56 = vmul.f32 %v5603_v32, %v1814_v36  ;;  %v2427_v46 = vmul.f32 %v4104_v21, %v5453_v33  ;;  %v5619_v62 = vadd.f32 %v2426_v52, %v2425_v23  ;;  %v5643_v36 = vld [vmem:[%s5557_s18 + $0x20] sm:$0xff] }
 0x1e7   : > { %v4110_v43 = vpop.eup %4109  ;;  %v2316_v55 = vadd.f32 1.0, %v4108_v58  ;;  %v2428_v38 = vmul.f32 %v4106_v8, %v5455_v47  ;;  %v2593_v33 = vmax.f32 %v2577_v44, 1e-16  ;;  %v6050_v52 = vld [vmem:[#allocation14_spill] sm:$0xff] }
 0x1e8   : > { %v4112_v6 = vpop.eup %4111  ;;  %v2317_v51 = vadd.f32 1.0, %v4110_v43  ;;  %2545 = vadd.xlane.f32.xlu0 %v2544_v41  ;;  %v2553_v31 = vadd.f32 %v2508_v37, %v2507_v22  ;;  %v2657_v42 = vmax.f32 %v2641_v56, 1e-16 }
 0x1e9   : > { %v5617_v30 = vpop.xlane.xlu1 %1733  ;;  %v4114_v3 = vpop.eup %4113  ;;  %4127 = vrcp.f32 %v2316_v55  ;;  %v2318_v39 = vadd.f32 1.0, %v4112_v6  ;;  %v5625_v4 = vadd.f32 %v2428_v38, %v2427_v46  ;;  %v6051_v6 = vld [vmem:[#allocation15_spill] sm:$0xff] }
 0x1ea   : > { %v1112_v0 = vpop.xlane.xlu0 %1111  ;;  %v4116_v45 = vpop.eup %4115  ;;  %4129 = vrcp.f32 %v2317_v51  ;;  %v2333_v12 = vadd.f32 1.0, %v4114_v3  ;;  %2447 = vadd.xlane.f32.xlu1 %v2446_v28 }
 0x1eb   : > { %v4118_v41 = vpop.eup %4117  ;;  %4131 = vrcp.f32 %v2318_v39  ;;  %v2334_v60 = vadd.f32 1.0, %v4116_v45  ;;  %v2578_v7 = vmul.f32 %v5623_v48, %v1112_v0  ;;  %v6052_v0 = vld [vmem:[#allocation16_spill] sm:$0xff] }
 0x1ec   : > { %v4120_v18 = vpop.eup %4119  ;;  %4133 = vrcp.f32 %v2333_v12  ;;  %2524 = vadd.xlane.f32.xlu0 %v2523_v24  ;;  %v5628_v47 = vmul.f32 %v4118_v41, %v5551_v25 }
 0x1ed   : > { %v5631_v59 = vpop.xlane.xlu1 %1031  ;;  %v4122_v27 = vpop.eup %4121  ;;  %4135 = vrcp.f32 %v2334_v60  ;;  %v5634_v13 = vmul.f32 %v4120_v18, %v5595_v50  ;;  %v2594_v22 = vmax.f32 %v2578_v7, 1e-16  ;;  %v6053_v7 = vld [vmem:[#allocation17_spill] sm:$0xff] }
 0x1ee   : > { %v5636_v26 = vpop.xlane.xlu0 %1034  ;;  %v4124_v54 = vpop.eup %4123  ;;  %v2767_v2 = vmul.f32 1.442695, %v5628_v47  ;;  %v2687_v24 = vmul.f32 %v4122_v27, %v5583_v34  ;;  %2554 = vadd.xlane.f32.xlu1 %v2553_v31  ;;  %4137 = vrsqrt.f32 %v2593_v33 }
 0x1ef   : > { %6049 = vst [vmem:[#allocation18_spill] sm:$0xff] %v5636_v26  ;;  %v4126_v21 = vpop.eup %4125  ;;  %v2688_v28 = vmul.f32 %v4124_v54, %v5585_v19  ;;  %v2769_v16 = vmul.f32 1.442695, %v5634_v13  ;;  %4139 = vrsqrt.f32 %v2657_v42  ;;  %v5654_v54 = vld [vmem:[%s5557_s18 + $0x28] sm:$0xff] }
 0x1f0   : > { %4141 = vpow2.f32 %v2767_v2  ;;  %2444 = vadd.xlane.f32.xlu0 %v5599_v29  ;;  %v2799_v8 = vmul.f32 1.442695, %v2687_v24  ;;  %v2491_v23 = vmul.f32 %v4126_v21, %v4126_v21  ;;  %v2411_v19 = vmul.f32 %v4126_v21, %v6050_v52 }
 0x1f1   : > { %v1817_v44 = vpop.xlane.xlu1 %1816  ;;  %v2801_v58 = vmul.f32 1.442695, %v2688_v28  ;;  %4143 = vpow2.f32 %v2769_v16 }
 0x1f2   : > { %v2642_v34 = vmul.f32 %v5623_v48, %v1817_v44  ;;  %v1820_v37 = vpop.xlane.xlu0 %1819  ;;  %4145 = vpow2.f32 %v2799_v8 }
 0x1f3   : > { %v2643_v43 = vmul.f32 %v5643_v36, %v1820_v37  ;;  %v4128_v55 = vpop.eup %4127  ;;  %4147 = vpow2.f32 %v2801_v58 }
 0x1f4   : > { %v2658_v56 = vmax.f32 %v2642_v34, 1e-16  ;;  %v4130_v46 = vpop.eup %4129  ;;  %2551 = vadd.xlane.f32.xlu0 %v5608_v49  ;;  %v2492_v29 = vmul.f32 %v4128_v55, %v4128_v55  ;;  %v2412_v51 = vmul.f32 %v4128_v55, %v6051_v6  ;;  %4149 = vrsqrt.f32 %v2594_v22 }
 0x1f5   : > { %v2659_v31 = vmax.f32 %v2643_v43, 1e-16  ;;  %v1737_v38 = vpop.xlane.xlu1 %1736  ;;  %v4132_v3 = vpop.eup %4131  ;;  %v2493_v39 = vmul.f32 %v4130_v46, %v4130_v46  ;;  %v2413_v45 = vmul.f32 %v4130_v46, %v6052_v0 }
 0x1f6   : > { %4151 = vrsqrt.f32 %v2658_v56  ;;  %v1740_v12 = vpop.xlane.xlu0 %1739  ;;  %v4134_v33 = vpop.eup %4133  ;;  %v2529_v41 = vadd.f32 %v2492_v29, %v2491_v23  ;;  %v2449_v60 = vadd.f32 %v2412_v51, %v2411_v19  ;;  %v2494_v42 = vmul.f32 %v4132_v3, %v4132_v3 }
 0x1f7   : > { %4153 = vrsqrt.f32 %v2659_v31  ;;  %v4136_v18 = vpop.eup %4135  ;;  %v2509_v49 = vmul.f32 %v4134_v33, %v4134_v33  ;;  %v2414_v27 = vmul.f32 %v4132_v3, %v6053_v7  ;;  %v2429_v2 = vmul.f32 %v4134_v33, %v5457_v11 }
 0x1f8   : > { %v4138_v24 = vpop.eup %4137  ;;  %2530 = vadd.xlane.f32.xlu0 %v2529_v41  ;;  %v2532_v21 = vadd.f32 %v2494_v42, %v2493_v39  ;;  %v2510_v28 = vmul.f32 %v4136_v18, %v4136_v18  ;;  %v2430_v8 = vmul.f32 %v4136_v18, %v5460_v17 }
 0x1f9   : > { %v1115_v16 = vpop.xlane.xlu1 %1114  ;;  %v4140_v22 = vpop.eup %4139  ;;  %v5659_v44 = vmul.f32 %v4138_v24, %v5597_v15  ;;  %v2452_v58 = vadd.f32 %v2414_v27, %v2413_v45  ;;  %v5684_v27 = vld [vmem:[%s5557_s18 + $0x30] sm:$0xff] }
 0x1fa   : > { %v2579_v34 = vmul.f32 %v5643_v36, %v1115_v16  ;;  %v1118_v37 = vpop.xlane.xlu0 %1117  ;;  %v4142_v23 = vpop.eup %4141  ;;  %2533 = vadd.xlane.f32.xlu1 %v2532_v21  ;;  %v2689_v52 = vmul.f32 %v4140_v22, %v5617_v30  ;;  %v2556_v11 = vadd.f32 %v2510_v28, %v2509_v49  ;;  %v5664_v43 = vadd.f32 %v2430_v8, %v2429_v2 }
 0x1fb   : > { %v2580_v19 = vmul.f32 %v5654_v54, %v1118_v37  ;;  %v4144_v55 = vpop.eup %4143  ;;  %v2771_v17 = vmul.f32 1.442695, %v5659_v44 }
 0x1fc   : > { %v2595_v56 = vmax.f32 %v2579_v34, 1e-16  ;;  %v4146_v46 = vpop.eup %4145  ;;  %2450 = vadd.xlane.f32.xlu0 %v2449_v60  ;;  %v2803_v29 = vmul.f32 1.442695, %v2689_v52 }
 0x1fd   : > { %v2596_v6 = vmax.f32 %v2580_v19, 1e-16  ;;  %v5667_v51 = vpop.xlane.xlu1 %1037  ;;  %v4148_v31 = vpop.eup %4147  ;;  %v5669_v3 = vadd.f32 %v4146_v46, %v4142_v23  ;;  %4155 = vpow2.f32 %v2771_v17 }
 0x1fe   : > { %v4150_v30 = vpop.eup %4149  ;;  %1058 = vadd.xlane.f32.xlu1 %v5443_v10  ;;  %4157 = vpow2.f32 %v2803_v29  ;;  %v5672_v39 = vpop.xlane.xlu0 %1040  ;;  %v5674_v0 = vadd.f32 %v4148_v31, %v4144_v55 }
 0x1ff   : > { %6054 = vst [vmem:[#allocation19_spill] sm:$0xff] %v5672_v39  ;;  %v5677_v33 = vmul.f32 %v4150_v30, %v5631_v59  ;;  %4159 = vrsqrt.f32 %v2595_v56 }
 0x200   : > { %v4152_v45 = vpop.eup %4151  ;;  %1763 = vadd.xlane.f32.xlu0 %v5441_v5  ;;  %4161 = vrsqrt.f32 %v2596_v6 }
 0x201   : > { %v4154_v41 = vpop.eup %4153  ;;  %v2690_v60 = vmul.f32 %v4152_v45, %v1737_v38  ;;  %v1823_v42 = vpop.xlane.xlu1 %1822  ;;  %v2773_v18 = vmul.f32 1.442695, %v5677_v33 }
 0x202   : > { %v2691_v10 = vmul.f32 %v4154_v41, %v1740_v12  ;;  %v2644_v49 = vmul.f32 %v5654_v54, %v1823_v42  ;;  %2465 = vadd.xlane.f32.xlu1 %v5589_v14  ;;  %v5716_v42 = vld [vmem:[%s5557_s18 + $0x40] sm:$0xff] }
 0x203   : > { %v2805_v7 = vmul.f32 1.442695, %v2690_v60  ;;  %4163 = vpow2.f32 %v2773_v18 }
 0x204   : > { %v2660_v2 = vmax.f32 %v2644_v49, 1e-16  ;;  %1061 = vadd.xlane.f32.xlu0 %v5483_v1  ;;  %v1826_v24 = vpop.xlane.xlu0 %1825  ;;  %v2807_v14 = vmul.f32 1.442695, %v2691_v10 }
 0x205   : > { %4165 = vpow2.f32 %v2805_v7  ;;  %v1743_v5 = vpop.xlane.xlu1 %1742  ;;  %v2645_v38 = vmul.f32 %v5684_v27, %v1826_v24 }
 0x206   : > { %1766 = vadd.xlane.f32.xlu1 %v5480_v53  ;;  %4167 = vrsqrt.f32 %v2660_v2  ;;  %v5696_v53 = vld [vmem:[%s5557_s18 + $0x38] sm:$0xff] }
 0x207   : > { %v4156_v12 = vpop.eup %4155  ;;  %v2661_v21 = vmax.f32 %v2645_v38, 1e-16 }
 0x208   : > { %v4158_v28 = vpop.eup %4157  ;;  %2557 = vadd.xlane.f32.xlu0 %v2556_v11  ;;  %v1746_v16 = vpop.xlane.xlu0 %1745 }
 0x209   : > { %v1121_v8 = vpop.xlane.xlu1 %1120  ;;  %v4160_v22 = vpop.eup %4159  ;;  %v5689_v34 = vadd.f32 %v4158_v28, %v4156_v12  ;;  %4169 = vrsqrt.f32 %v2661_v21 }
 0x20a   : > { %v2581_v1 = vmul.f32 %v5684_v27, %v1121_v8  ;;  %v4162_v37 = vpop.eup %4161  ;;  %2453 = vadd.xlane.f32.xlu1 %v2452_v58  ;;  %v5693_v23 = vmul.f32 %v4160_v22, %v5636_v26  ;;  %4171 = vpow2.f32 %v2807_v14  ;;  %v5731_v8 = vld [vmem:[%s5557_s18 + $0x48] sm:$0xff] }
 0x20b   : > { %v5699_v52 = vmul.f32 %v4162_v37, %v5667_v51 }
 0x20c   : > { %6055 = vst [vmem:[#allocation20_spill] sm:$0xff] %v5693_v23  ;;  %v2597_v11 = vmax.f32 %v2581_v1, 1e-16  ;;  %2468 = vadd.xlane.f32.xlu0 %v5611_v40  ;;  %v2775_v19 = vmul.f32 1.442695, %v5693_v23  ;;  %v1124_v55 = vpop.xlane.xlu0 %1123 }
 0x20d   : > { %v5703_v17 = vpop.xlane.xlu1 %1043  ;;  %v4164_v56 = vpop.eup %4163  ;;  %v2582_v58 = vmul.f32 %v5696_v53, %v1124_v55  ;;  %v2777_v40 = vmul.f32 1.442695, %v5699_v52 }
 0x20e   : > { %6056 = vst [vmem:[#allocation21_spill] sm:$0xff] %v5703_v17  ;;  %4173 = vrsqrt.f32 %v2597_v11  ;;  %1064 = vadd.xlane.f32.xlu1 %v5493_v61 }
 0x20f   : > { %v4166_v46 = vpop.eup %4165  ;;  %4175 = vpow2.f32 %v2775_v19  ;;  %v2598_v6 = vmax.f32 %v2582_v58, 1e-16 }
 0x210   : > { %v5707_v29 = vadd.f32 %v4166_v46, %v4164_v56  ;;  %v4168_v31 = vpop.eup %4167  ;;  %1769 = vadd.xlane.f32.xlu0 %v5491_v35  ;;  %v5711_v30 = vpop.xlane.xlu0 %1046 }
 0x211   : > { %v1829_v45 = vpop.xlane.xlu1 %1828  ;;  %v2692_v41 = vmul.f32 %v4168_v31, %v1743_v5  ;;  %4177 = vrsqrt.f32 %v2598_v6 }
 0x212   : > { %v2646_v60 = vmul.f32 %v5696_v53, %v1829_v45  ;;  %2471 = vadd.xlane.f32.xlu1 %v5619_v62  ;;  %4179 = vpow2.f32 %v2777_v40 }
 0x213   : > { %v4170_v61 = vpop.eup %4169  ;;  %v2809_v18 = vmul.f32 1.442695, %v2692_v41 }
 0x214   : > { %v2662_v10 = vmax.f32 %v2646_v60, 1e-16  ;;  %1067 = vadd.xlane.f32.xlu0 %v5498_v20  ;;  %v2693_v35 = vmul.f32 %v4170_v61, %v1746_v16  ;;  %v1832_v49 = vpop.xlane.xlu0 %1831  ;;  %v4172_v24 = vpop.eup %4171  ;;  %v5746_v60 = vld [vmem:[%s5557_s18 + $0x50] sm:$0xff] }
 0x215   : > { %v1749_v7 = vpop.xlane.xlu1 %1748  ;;  %4181 = vpow2.f32 %v2809_v18  ;;  %v2647_v2 = vmul.f32 %v5716_v42, %v1832_v49 }
 0x216   : > { %1772 = vadd.xlane.f32.xlu1 %v5500_v63  ;;  %4183 = vrsqrt.f32 %v2662_v10  ;;  %v2811_v5 = vmul.f32 1.442695, %v2693_v35 }
 0x217   : > { %v2663_v38 = vmax.f32 %v2647_v2, 1e-16 }
 0x218   : > { %v4174_v62 = vpop.eup %4173  ;;  %2474 = vadd.xlane.f32.xlu0 %v5625_v4  ;;  %v1752_v21 = vpop.xlane.xlu0 %1751 }
 0x219   : > { %v4176_v12 = vpop.eup %4175  ;;  %v5723_v20 = vmul.f32 %v4174_v62, %v5672_v39  ;;  %v1127_v28 = vpop.xlane.xlu1 %1126  ;;  %4185 = vrsqrt.f32 %v2663_v38 }
 0x21a   : > { %v2583_v14 = vmul.f32 %v5716_v42, %v1127_v28  ;;  %v5726_v16 = vadd.f32 %v4176_v12, %v4172_v24  ;;  %2477 = vadd.xlane.f32.xlu1 %v5664_v43  ;;  %4187 = vpow2.f32 %v2811_v5 }
 0x21b   : > { %6057 = vst [vmem:[#allocation22_spill] sm:$0xff] %v5723_v20  ;;  %v2779_v63 = vmul.f32 1.442695, %v5723_v20  ;;  %v4178_v22 = vpop.eup %4177 }
 0x21c   : > { %v2599_v1 = vmax.f32 %v2583_v14, 1e-16  ;;  %v5734_v4 = vmul.f32 %v4178_v22, %v5703_v17  ;;  %v1130_v37 = vpop.xlane.xlu0 %1129  ;;  %v4180_v55 = vpop.eup %4179 }
 0x21d   : > { %4189 = vpow2.f32 %v2779_v63  ;;  %v5736_v11 = vpop.xlane.xlu1 %1049  ;;  %v2584_v19 = vmul.f32 %v5731_v8, %v1130_v37 }
 0x21e   : > { %6058 = vst [vmem:[#allocation23_spill] sm:$0xff] %v5734_v4  ;;  %4191 = vrsqrt.f32 %v2599_v1  ;;  %v2781_v6 = vmul.f32 1.442695, %v5734_v4 }
 0x21f   : > { %v4182_v43 = vpop.eup %4181  ;;  %v2600_v56 = vmax.f32 %v2584_v19, 1e-16 }
 0x220   : > { %v4184_v58 = vpop.eup %4183  ;;  %v5739_v46 = vadd.f32 %v4182_v43, %v4180_v55  ;;  %v5742_v31 = vpop.xlane.xlu0 %1052 }
 0x221   : > { %v1835_v40 = vpop.xlane.xlu1 %1834  ;;  %v2694_v45 = vmul.f32 %v4184_v58, %v1749_v7  ;;  %4193 = vrsqrt.f32 %v2600_v56  ;;  %v5750_v7 = vld [vmem:[%s5557_s18 + $0x58] sm:$0xff] }
 0x222   : > { %v2648_v41 = vmul.f32 %v5731_v8, %v1835_v40  ;;  %4195 = vpow2.f32 %v2781_v6 }
 0x223   : > { %v4186_v61 = vpop.eup %4185  ;;  %v2813_v18 = vmul.f32 1.442695, %v2694_v45 }
 0x224   : > { %v2664_v10 = vmax.f32 %v2648_v41, 1e-16  ;;  %v2695_v35 = vmul.f32 %v4186_v61, %v1752_v21  ;;  %v1133_v49 = vpop.xlane.xlu0 %1132  ;;  %v4188_v24 = vpop.eup %4187 }
 0x225   : > { %v1755_v2 = vpop.xlane.xlu1 %1754  ;;  %4197 = vpow2.f32 %v2813_v18  ;;  %v2585_v62 = vmul.f32 %v5746_v60, %v1133_v49 }
 0x226   : > { %4199 = vrsqrt.f32 %v2664_v10  ;;  %v2815_v12 = vmul.f32 1.442695, %v2695_v35 }
 0x227   : > { %v4190_v5 = vpop.eup %4189  ;;  %v2601_v28 = vmax.f32 %v2585_v62, 1e-16 }
 0x228   : > { %v4192_v38 = vpop.eup %4191  ;;  %v5752_v14 = vadd.f32 %v4190_v5, %v4188_v24  ;;  %v1841_v22 = vpop.xlane.xlu0 %1840 }
 0x229   : > { %v5755_v63 = vmul.f32 %v4192_v38, %v5711_v30  ;;  %v1838_v21 = vpop.xlane.xlu1 %1837  ;;  %4201 = vrsqrt.f32 %v2601_v28  ;;  %v2650_v1 = vmul.f32 %v5750_v7, %v1841_v22 }
 0x22a   : > { %v2649_v37 = vmul.f32 %v5746_v60, %v1838_v21  ;;  %4203 = vpow2.f32 %v2815_v12 }
 0x22b   : > { %v2783_v19 = vmul.f32 1.442695, %v5755_v63  ;;  %v4194_v55 = vpop.eup %4193  ;;  %v2666_v43 = vmax.f32 %v2650_v1, 1e-16 }
 0x22c   : > { %v2665_v56 = vmax.f32 %v2649_v37, 1e-16  ;;  %v5761_v58 = vmul.f32 %v4194_v55, %v5736_v11  ;;  %v4196_v40 = vpop.eup %4195  ;;  %v5775_v55 = vpop.xlane.xlu0 %1138 }
 0x22d   : > { %4205 = vpow2.f32 %v2783_v19  ;;  %v1758_v6 = vpop.xlane.xlu1 %1757 }
 0x22e   : > { %4207 = vrsqrt.f32 %v2666_v43  ;;  %v2785_v18 = vmul.f32 1.442695, %v5761_v58 }
 0x22f   : > { %4209 = vrsqrt.f32 %v2665_v56  ;;  %v4198_v45 = vpop.eup %4197 }
 0x230   : > { %v4200_v41 = vpop.eup %4199  ;;  %v5763_v61 = vadd.f32 %v4198_v45, %v4196_v40  ;;  %4211 = vpow2.f32 %v2785_v18 }
 0x231   : > { %v5766_v10 = vpop.xlane.xlu1 %1055  ;;  %v2696_v35 = vmul.f32 %v4200_v41, %v1755_v2 }
 0x232   : > { %6059 = vst [vmem:[#allocation24_spill] sm:$0xff] %v5763_v61  ;;  %6060 = vst [vmem:[#allocation2_spill] sm:$0xff] %v5766_v10 }
 0x233   : > { %v4202_v49 = vpop.eup %4201  ;;  %v2817_v24 = vmul.f32 1.442695, %v2696_v35 }
 0x234   : > { %v5769_v62 = vmul.f32 %v4202_v49, %v5742_v31  ;;  %v4204_v38 = vpop.eup %4203 }
 0x235   : > { %v1136_v5 = vpop.xlane.xlu1 %1135  ;;  %4213 = vpow2.f32 %v2817_v24 }
 0x236   : > { %v2586_v12 = vmul.f32 %v5750_v7, %v1136_v5  ;;  %v2787_v19 = vmul.f32 1.442695, %v5769_v62 }
 0x237   : > { %v4206_v28 = vpop.eup %4205 }
 0x238   : > { %v4208_v22 = vpop.eup %4207  ;;  %v2602_v21 = vmax.f32 %v2586_v12, 1e-16  ;;  %v5772_v1 = vadd.f32 %v4206_v28, %v4204_v38 }
 0x239   : > { %v4210_v37 = vpop.eup %4209  ;;  %v1761_v2 = vpop.xlane.xlu1 %1760 }
 0x23a   : > { %v2697_v43 = vmul.f32 %v4210_v37, %v1758_v6  ;;  %4215 = vrsqrt.f32 %v2602_v21  ;;  %v2698_v56 = vmul.f32 %v4208_v22, %v1761_v2  ;;  %v4212_v45 = vpop.eup %4211  ;;  %v5777_v18 = vpop.xlane.xlu0 %1846 }
 0x23b   : > { %4217 = vpow2.f32 %v2787_v19 }
 0x23c   : > { %v2819_v40 = vmul.f32 1.442695, %v2697_v43  ;;  %v2821_v5 = vmul.f32 1.442695, %v2698_v56 }
 0x23d   : > { %v5779_v35 = vpop.xlane.xlu1 %1843 }
 0x23e   : > { %4219 = vpow2.f32 %v2819_v40  ;;  %v5786_v12 = vpop.xlane.xlu0 %1144 }
 0x23f   : > { %v4214_v41 = vpop.eup %4213  ;;  %4221 = vpow2.f32 %v2821_v5 }
 0x240   : > { %v5781_v49 = vadd.f32 %v4214_v41, %v4212_v45 }
 0x241   : > { %v5788_v6 = vpop.xlane.xlu1 %1141 }
 0x242   : > { %v5793_v19 = vpop.xlane.xlu0 %1852 }
 0x244   : > { %v4216_v24 = vpop.eup %4215 }
 0x245   : > { %v5784_v38 = vmul.f32 %v4216_v24, %v5766_v10  ;;  %v4218_v28 = vpop.eup %4217  ;;  %v5795_v2 = vpop.xlane.xlu1 %1849 }
 0x247   : > { %6061 = vst [vmem:[#allocation3_spill] sm:$0xff] %v5784_v38  ;;  %v2789_v22 = vmul.f32 1.442695, %v5784_v38 }
 0x248   : > { %v4220_v21 = vpop.eup %4219 }
 0x249   : > { %v5791_v37 = vadd.f32 %v4220_v21, %v4218_v28  ;;  %4223 = vpow2.f32 %v2789_v22  ;;  %v4222_v43 = vpop.eup %4221  ;;  %v5797_v40 = vpop.xlane.xlu1 %1147 }
 0x251   : > { %v2513_v56 = vpop.xlane.xlu0 %2512 }
 0x252   : > { %v2703_v41 = vmul.f32 %v5561_v9, %v2513_v56 }
 0x253   : > { %v4224_v45 = vpop.eup %4223 }
 0x254   : > { %v5800_v24 = vadd.f32 %v4224_v45, %v4222_v43  ;;  %v2719_v4 = vmax.f32 %v2703_v41, 1e-16 }
 0x255   : > { %v2537_v17 = vpop.xlane.xlu0 %2536 }
 0x256   : > { %4225 = vrsqrt.f32 %v2719_v4  ;;  %v2711_v5 = vmul.f32 %v5716_v42, %v2537_v17 }
 0x257   : > { %v2516_v28 = vpop.xlane.xlu1 %2515 }
 0x258   : > { %v2727_v22 = vmax.f32 %v2711_v5, 1e-16  ;;  %v2704_v21 = vmul.f32 %v5564_v57, %v2516_v28 }
 0x259   : > { %v2433_v20 = vpop.xlane.xlu0 %2432 }
 0x25a   : > { %4227 = vrsqrt.f32 %v2727_v22  ;;  %v2720_v39 = vmax.f32 %v2704_v21, 1e-16 }
 0x25b   : > { %v2436_v38 = vpop.xlane.xlu1 %2435 }
 0x25c   : > { %4229 = vrsqrt.f32 %v2720_v39 }
 0x25d   : > { %v2457_v10 = vpop.xlane.xlu0 %2456 }
 0x25f   : > { %v2543_v61 = vpop.xlane.xlu1 %2542 }
 0x260   : > { %v4226_v23 = vpop.eup %4225  ;;  %v2713_v9 = vmul.f32 %v5746_v60, %v2543_v61 }
 0x261   : > { %v2751_v43 = vmul.f32 %v4226_v23, %v2433_v20  ;;  %v2540_v56 = vpop.xlane.xlu0 %2539 }
 0x262   : > { %v2712_v4 = vmul.f32 %v5731_v8, %v2540_v56  ;;  %v2729_v45 = vmax.f32 %v2713_v9, 1e-16 }
 0x263   : > { %v2847_v17 = vmul.f32 1.442695, %v2751_v43  ;;  %v2522_v42 = vpop.xlane.xlu1 %2521 }
 0x264   : > { %v4228_v41 = vpop.eup %4227  ;;  %v2728_v5 = vmax.f32 %v2712_v4, 1e-16  ;;  %4231 = vrsqrt.f32 %v2729_v45  ;;  %v2706_v57 = vmul.f32 %v5623_v48, %v2522_v42 }
 0x265   : > { %4233 = vpow2.f32 %v2847_v17  ;;  %v2759_v28 = vmul.f32 %v4228_v41, %v2457_v10  ;;  %v2460_v39 = vpop.xlane.xlu0 %2459 }
 0x266   : > { %v4230_v22 = vpop.eup %4229  ;;  %4235 = vrsqrt.f32 %v2728_v5  ;;  %v2722_v21 = vmax.f32 %v2706_v57, 1e-16 }
 0x267   : > { %v2863_v26 = vmul.f32 1.442695, %v2759_v28  ;;  %v2752_v60 = vmul.f32 %v4230_v22, %v2436_v38  ;;  %v2442_v8 = vpop.xlane.xlu1 %2441  ;;  %v5812_v22 = vld [vmem:[%s5557_s18 + $0x60] sm:$0xff] }
 0x268   : > { %4237 = vrsqrt.f32 %v2722_v21 }
 0x269   : > { %4239 = vpow2.f32 %v2863_v26  ;;  %v2519_v23 = vpop.xlane.xlu0 %2518  ;;  %v2849_v20 = vmul.f32 1.442695, %v2752_v60 }
 0x26a   : > { %v2705_v61 = vmul.f32 %v5603_v32, %v2519_v23 }
 0x26b   : > { %4241 = vpow2.f32 %v2849_v20  ;;  %v5817_v20 = vld [vmem:[%s5557_s18 + $0x68] sm:$0xff] }
 0x26c   : > { %v2721_v9 = vmax.f32 %v2705_v61, 1e-16 }
 0x26d   : > { %v2439_v43 = vpop.xlane.xlu0 %2438 }
 0x26e   : > { %v4232_v48 = vpop.eup %4231  ;;  %4243 = vrsqrt.f32 %v2721_v9 }
 0x26f   : > { %v4234_v10 = vpop.eup %4233  ;;  %v5808_v56 = vpop.xlane.xlu1 %2548 }
 0x270   : > { %v4236_v4 = vpop.eup %4235  ;;  %v2879_v45 = vadd.f32 %v4234_v10, %v5669_v3  ;;  %v5823_v10 = vld [vmem:[%s5557_s18 + $0x70] sm:$0xff] }
 0x271   : > { %v2760_v38 = vmul.f32 %v4236_v4, %v2460_v39  ;;  %v2463_v26 = vpop.xlane.xlu0 %2462 }
 0x272   : > { %v4238_v17 = vpop.eup %4237  ;;  %v2895_v42 = vadd.f32 1e-08, %v2879_v45  ;;  %v2761_v41 = vmul.f32 %v4232_v48, %v2463_v26 }
 0x273   : > { %v4240_v5 = vpop.eup %4239  ;;  %v2865_v32 = vmul.f32 1.442695, %v2760_v38  ;;  %v2754_v57 = vmul.f32 %v4238_v17, %v2442_v8  ;;  %v2528_v28 = vpop.xlane.xlu1 %2527  ;;  %v2587_v8 = vmul.f32 %v5812_v22, %v5775_v55  ;;  %v2651_v38 = vmul.f32 %v5812_v22, %v5779_v35 }
 0x274   : > { %4245 = vlog2.f32 %v2895_v42  ;;  %v2887_v21 = vadd.f32 %v4240_v5, %v5772_v1  ;;  %v2867_v60 = vmul.f32 1.442695, %v2761_v41  ;;  %v2708_v23 = vmul.f32 %v5654_v54, %v2528_v28 }
 0x275   : > { %v4242_v3 = vpop.eup %4241  ;;  %4247 = vpow2.f32 %v2865_v32  ;;  %v2546_v39 = vpop.xlane.xlu0 %2545  ;;  %v2853_v61 = vmul.f32 1.442695, %v2754_v57  ;;  %v2652_v54 = vmul.f32 %v5817_v20, %v5777_v18  ;;  %v2603_v42 = vmax.f32 %v2587_v8, 1e-16 }
 0x276   : > { %v2903_v9 = vadd.f32 1e-08, %v2887_v21  ;;  %v2880_v48 = vadd.f32 %v4242_v3, %v5674_v0  ;;  %4249 = vpow2.f32 %v2867_v60  ;;  %v2724_v45 = vmax.f32 %v2708_v23, 1e-16 }
 0x277   : > { %4251 = vpow2.f32 %v2853_v61  ;;  %v2589_v0 = vmul.f32 %v5823_v10, %v5786_v12  ;;  %v2714_v5 = vmul.f32 %v5750_v7, %v2546_v39  ;;  %v2448_v32 = vpop.xlane.xlu1 %2447  ;;  %v2668_v18 = vmax.f32 %v2652_v54, 1e-16 }
 0x278   : > { %v4244_v1 = vpop.eup %4243  ;;  %4253 = vlog2.f32 %v2903_v9  ;;  %v2896_v4 = vadd.f32 1e-08, %v2880_v48  ;;  %v2667_v28 = vmax.f32 %v2651_v38, 1e-16  ;;  %v2943_v61 = vsub.f32 0.0, %v5551_v25  ;;  %v5845_v25 = vld [vmem:[%s5557_s18 + $0x78] sm:$0xff] }
 0x279   : > { %v2753_v26 = vmul.f32 %v4244_v1, %v2439_v43  ;;  %v2525_v17 = vpop.xlane.xlu0 %2524  ;;  %v2605_v43 = vmax.f32 %v2589_v0, 1e-16  ;;  %v2730_v23 = vmax.f32 %v2714_v5, 1e-16  ;;  %v2715_v5 = vmul.f32 %v5812_v22, %v5808_v56 }
 0x27a   : > { %4255 = vlog2.f32 %v2896_v4  ;;  %v2707_v55 = vmul.f32 %v5643_v36, %v2525_v17  ;;  %v2588_v36 = vmul.f32 %v5817_v20, %v5788_v6 }
 0x27b   : > { %v2851_v41 = vmul.f32 1.442695, %v2753_v26  ;;  %4257 = vrsqrt.f32 %v2724_v45  ;;  %v5841_v1 = vpop.xlane.xlu1 %2554 }
 0x27c   : > { %v2723_v57 = vmax.f32 %v2707_v55, 1e-16  ;;  %v2604_v17 = vmax.f32 %v2588_v36, 1e-16 }
 0x27d   : > { %4259 = vpow2.f32 %v2851_v41  ;;  %v2445_v21 = vpop.xlane.xlu0 %2444 }
 0x27e   : > { %v4246_v35 = vpop.eup %4245  ;;  %4261 = vrsqrt.f32 %v2723_v57 }
 0x27f   : > { %v4248_v60 = vpop.eup %4247  ;;  %4263 = vrsqrt.f32 %v2603_v42  ;;  %v2912_v12 = vmul.f32 0.6931472, %v4246_v35 }
 0x280   : > { %v4250_v3 = vpop.eup %4249  ;;  %4265 = vrsqrt.f32 %v2668_v18  ;;  %v2888_v7 = vadd.f32 %v4248_v60, %v5781_v49 }
 0x281   : > { %v4252_v39 = vpop.eup %4251  ;;  %4267 = vrsqrt.f32 %v2667_v28  ;;  %v2959_v9 = vsub.f32 %v5628_v47, %v2912_v12  ;;  %v2889_v48 = vadd.f32 %v4250_v3, %v5791_v37  ;;  %v5839_v8 = vpop.xlane.xlu0 %2551  ;;  %v2951_v37 = vsub.f32 0.0, %v5711_v30 }
 0x282   : > { %v4254_v54 = vpop.eup %4253  ;;  %4269 = vrsqrt.f32 %v2605_v43  ;;  %v2904_v4 = vadd.f32 1e-08, %v2888_v7  ;;  %v2882_v6 = vadd.f32 %v4252_v39, %v5707_v29  ;;  %v2944_v29 = vsub.f32 0.0, %v5595_v50 }
 0x283   : > { %v2975_v45 = vmul.f32 %v2959_v9, %v2943_v61  ;;  %v2928_v49 = vmul.f32 0.6931472, %v4254_v54  ;;  %v2905_v38 = vadd.f32 1e-08, %v2889_v48  ;;  %4271 = vrsqrt.f32 %v2730_v23 }
 0x284   : > { %v4256_v26 = vpop.eup %4255  ;;  %4273 = vlog2.f32 %v2904_v4  ;;  %v2898_v47 = vadd.f32 1e-08, %v2882_v6  ;;  %v2654_v28 = vmul.f32 %v5845_v25, %v5793_v19 }
 0x285   : > { %v2967_v0 = vsub.f32 %v5755_v63, %v2928_v49  ;;  %v2914_v55 = vmul.f32 0.6931472, %v4256_v26  ;;  %4275 = vlog2.f32 %v2905_v38  ;;  %v2531_v42 = vpop.xlane.xlu0 %2530  ;;  %v4258_v41 = vpop.eup %4257 }
 0x286   : > { %4277 = vlog2.f32 %v2898_v47  ;;  %v2709_v18 = vmul.f32 %v5684_v27, %v2531_v42  ;;  %v2756_v63 = vmul.f32 %v4258_v41, %v2448_v32  ;;  %v2653_v27 = vmul.f32 %v5823_v10, %v5795_v2 }
 0x287   : > { %v4260_v57 = vpop.eup %4259  ;;  %v5855_v35 = vmul.f32 %v2967_v0, %v2951_v37  ;;  %v2960_v30 = vsub.f32 %v5634_v13, %v2914_v55  ;;  %v2534_v43 = vpop.xlane.xlu1 %2533  ;;  %4279 = vrsqrt.f32 %v2604_v17  ;;  %v2731_v32 = vmax.f32 %v2715_v5, 1e-16 }
 0x288   : > { %v4262_v60 = vpop.eup %4261  ;;  %v2881_v50 = vadd.f32 %v4260_v57, %v5689_v34  ;;  %v2725_v12 = vmax.f32 %v2709_v18, 1e-16  ;;  %v2710_v23 = vmul.f32 %v5696_v53, %v2534_v43  ;;  %v2857_v19 = vmul.f32 1.442695, %v2756_v63 }
 0x289   : > { %v4264_v56 = vpop.eup %4263  ;;  %v2976_v22 = vmul.f32 %v2960_v30, %v2944_v29  ;;  %v2755_v3 = vmul.f32 %v4262_v60, %v2445_v21  ;;  %v2451_v36 = vpop.xlane.xlu0 %2450  ;;  %v2992_v34 = vsel %vm2991_vm2, %v2975_v45, 0.0  ;;  %v2590_v21 = vmul.f32 %v5845_v25, %v5797_v40 }
 0x28a   : > { %v5862_v7 = vpop.eup %4265  ;;  %v2897_v13 = vadd.f32 1e-08, %v2881_v50  ;;  %4281 = vrsqrt.f32 %v2725_v12  ;;  %v2726_v39 = vmax.f32 %v2710_v23, 1e-16  ;;  %v2670_v6 = vmax.f32 %v2654_v28, 1e-16 }
 0x28b   : > { %v4268_v61 = vpop.eup %4267  ;;  %v2993_v9 = vsel %vm2991_vm2, %v2976_v22, 0.0  ;;  %v2855_v53 = vmul.f32 1.442695, %v2755_v3  ;;  %4283 = vpow2.f32 %v2857_v19  ;;  %v5866_v48 = vpop.xlane.xlu1 %1058  ;;  %v2946_v45 = vsub.f32 0.0, %v5631_v59 }
 0x28c   : > { %v5868_v2 = vpop.eup %4269  ;;  %v5872_v54 = vadd.f32 %v2993_v9, %v2992_v34  ;;  %4285 = vlog2.f32 %v2897_v13  ;;  %v2669_v26 = vmax.f32 %v2653_v27, 1e-16  ;;  %v2716_v17 = vmul.f32 %v5817_v20, %v5839_v8 }
 0x28d   : > { %v4272_v4 = vpop.eup %4271  ;;  %4287 = vpow2.f32 %v2855_v53  ;;  %v1764_v49 = vpop.xlane.xlu0 %1763  ;;  %v2952_v37 = vsub.f32 0.0, %v5736_v11  ;;  %v5879_v40 = vmul.f32 %v4264_v56, %v5866_v48  ;;  %v2606_v41 = vmax.f32 %v2590_v21, 1e-16 }
 0x28e   : > { %v4274_v38 = vpop.eup %4273  ;;  %4289 = vrsqrt.f32 %v2726_v39  ;;  %v2699_v5 = vmul.f32 %v4268_v61, %v1764_v49  ;;  %v2953_v59 = vsub.f32 0.0, %v5742_v31  ;;  %v2732_v30 = vmax.f32 %v2716_v17, 1e-16 }
 0x28f   : > { %v4276_v47 = vpop.eup %4275  ;;  %v2930_v0 = vmul.f32 0.6931472, %v4274_v38  ;;  %4291 = vrsqrt.f32 %v2731_v32  ;;  %v2466_v55 = vpop.xlane.xlu1 %2465  ;;  %v2717_v63 = vmul.f32 %v5823_v10, %v5841_v1  ;;  %v2791_v31 = vmul.f32 1.442695, %v5879_v40 }
 0x290   : > { %v4278_v42 = vpop.eup %4277  ;;  %v2932_v29 = vmul.f32 0.6931472, %v4276_v47  ;;  %v2762_v18 = vmul.f32 %v4272_v4, %v2466_v55  ;;  %4293 = vrsqrt.f32 %v2670_v6  ;;  %v2823_v56 = vmul.f32 1.442695, %v2699_v5 }
 0x291   : > { %v2968_v20 = vsub.f32 %v5761_v58, %v2930_v0  ;;  %v2918_v8 = vmul.f32 0.6931472, %v4278_v42  ;;  %v5883_v57 = vpop.xlane.xlu0 %1061  ;;  %v4280_v11 = vpop.eup %4279  ;;  %4295 = vrsqrt.f32 %v2669_v26  ;;  %v2945_v10 = vsub.f32 0.0, %v5597_v15 }
 0x292   : > { %v2969_v28 = vsub.f32 %v5769_v62, %v2932_v29  ;;  %v2869_v50 = vmul.f32 1.442695, %v2762_v18  ;;  %4297 = vrsqrt.f32 %v2606_v41  ;;  %v2733_v39 = vmax.f32 %v2717_v63, 1e-16 }
 0x293   : > { %v5888_v43 = vmul.f32 %v2968_v20, %v2952_v37  ;;  %v2962_v60 = vsub.f32 %v5677_v33, %v2918_v8  ;;  %v1767_v12 = vpop.xlane.xlu1 %1766  ;;  %v5901_v38 = vmul.f32 %v4280_v11, %v5883_v57 }
 0x294   : > { %v4282_v58 = vpop.eup %4281  ;;  %v5892_v23 = vmul.f32 %v2969_v28, %v2953_v59  ;;  %4299 = vpow2.f32 %v2869_v50  ;;  %v2700_v21 = vmul.f32 %v5862_v7, %v1767_v12 }
 0x295   : > { %v4284_v27 = vpop.eup %4283  ;;  %v2978_v22 = vmul.f32 %v2962_v60, %v2946_v45  ;;  %v2757_v62 = vmul.f32 %v4282_v58, %v2451_v36  ;;  %v2558_v3 = vpop.xlane.xlu0 %2557  ;;  %4301 = vrsqrt.f32 %v2732_v30  ;;  %v2793_v18 = vmul.f32 1.442695, %v5901_v38 }
 0x296   : > { %v4286_v19 = vpop.eup %4285  ;;  %v2884_v33 = vadd.f32 %v4284_v27, %v5739_v46  ;;  %v2718_v1 = vmul.f32 %v5845_v25, %v2558_v3  ;;  %4303 = vpow2.f32 %v2791_v31  ;;  %v2825_v42 = vmul.f32 1.442695, %v2700_v21 }
 0x297   : > { %v4288_v13 = vpop.eup %4287  ;;  %v2916_v32 = vmul.f32 0.6931472, %v4286_v19  ;;  %v2859_v61 = vmul.f32 1.442695, %v2757_v62  ;;  %v2454_v34 = vpop.xlane.xlu1 %2453  ;;  %4305 = vpow2.f32 %v2823_v56  ;;  %v2997_v55 = vsel %vm2991_vm2, %v2978_v22, 0.0 }
 0x298   : > { %v4290_v9 = vpop.eup %4289  ;;  %v2883_v53 = vadd.f32 %v4288_v13, %v5726_v16  ;;  %v2900_v36 = vadd.f32 1e-08, %v2884_v33  ;;  %v2734_v46 = vmax.f32 %v2718_v1, 1e-16  ;;  %v2948_v33 = vsub.f32 0.0, %v5667_v51 }
 0x299   : > { %v4292_v4 = vpop.eup %4291  ;;  %v2961_v15 = vsub.f32 %v5659_v44, %v2916_v32  ;;  %4307 = vpow2.f32 %v2859_v61  ;;  %v2469_v6 = vpop.xlane.xlu0 %2468  ;;  %v2758_v25 = vmul.f32 %v4290_v9, %v2454_v34 }
 0x29a   : > { %v2899_v49 = vadd.f32 1e-08, %v2883_v53  ;;  %4309 = vlog2.f32 %v2900_v36  ;;  %v2763_v45 = vmul.f32 %v4292_v4, %v2469_v6  ;;  %v4294_v26 = vpop.eup %4293 }
 0x29b   : > { %v2977_v17 = vmul.f32 %v2961_v15, %v2945_v10  ;;  %4311 = vrsqrt.f32 %v2733_v39  ;;  %v2861_v16 = vmul.f32 1.442695, %v2758_v25  ;;  %v5903_v47 = vpop.xlane.xlu1 %1064  ;;  %v4296_v7 = vpop.eup %4295  ;;  %v6062_v15 = vld [vmem:[#allocation18_spill] sm:$0xff] }
 0x29c   : > { %4313 = vlog2.f32 %v2899_v49  ;;  %v2871_v37 = vmul.f32 1.442695, %v2763_v45  ;;  %v5907_v44 = vmul.f32 %v5868_v2, %v5903_v47  ;;  %v4298_v29 = vpop.eup %4297  ;;  %v6063_v49 = vld [vmem:[#allocation20_spill] sm:$0xff] }
 0x29d   : > { %v2995_v0 = vsel %vm2991_vm2, %v2977_v17, 0.0  ;;  %4315 = vrsqrt.f32 %v2734_v46  ;;  %v1770_v41 = vpop.xlane.xlu0 %1769  ;;  %v2947_v46 = vsub.f32 0.0, %v6062_v15 }
 0x29e   : > { %v2996_v5 = vadd.f32 %v2995_v0, %v5872_v54  ;;  %4317 = vpow2.f32 %v2871_v37  ;;  %v2701_v59 = vmul.f32 %v4296_v7, %v1770_v41  ;;  %v4300_v20 = vpop.eup %4299  ;;  %v2795_v8 = vmul.f32 1.442695, %v5907_v44 }
 0x29f   : > { %4319 = vpow2.f32 %v2861_v16  ;;  %v2472_v2 = vpop.xlane.xlu1 %2471  ;;  %v4302_v11 = vpop.eup %4301  ;;  %v2890_v30 = vadd.f32 %v4300_v20, %v5800_v24  ;;  %v6064_v16 = vld [vmem:[#allocation24_spill] sm:$0xff] }
 0x2a0   : > { %v2998_v28 = vadd.f32 %v2997_v55, %v2996_v5  ;;  %v4304_v63 = vpop.eup %4303  ;;  %4321 = vpow2.f32 %v2825_v42  ;;  %v2764_v60 = vmul.f32 %v4302_v11, %v2472_v2  ;;  %v2827_v12 = vmul.f32 1.442695, %v2701_v59 }
 0x2a1   : > { %v5915_v31 = vpop.xlane.xlu0 %1067  ;;  %v4306_v50 = vpop.eup %4305  ;;  %4323 = vpow2.f32 %v2793_v18  ;;  %v2906_v54 = vadd.f32 1e-08, %v2890_v30 }
 0x2a2   : > { %v5918_v58 = vmul.f32 %v4298_v29, %v5915_v31  ;;  %4325 = vpow2.f32 %v2795_v8  ;;  %v2873_v27 = vmul.f32 1.442695, %v2764_v60 }
 0x2a3   : > { %v4308_v56 = vpop.eup %4307  ;;  %v1773_v22 = vpop.xlane.xlu1 %1772  ;;  %4327 = vlog2.f32 %v2906_v54  ;;  %v6065_v54 = vld [vmem:[#allocation2_spill] sm:$0xff] }
 0x2a4   : > { %v4310_v62 = vpop.eup %4309  ;;  %v2885_v3 = vadd.f32 %v4308_v56, %v5752_v14  ;;  %v2797_v24 = vmul.f32 1.442695, %v5918_v58  ;;  %v2702_v19 = vmul.f32 %v4294_v26, %v1773_v22  ;;  %4329 = vpow2.f32 %v2873_v27  ;;  %v6066_v56 = vld [vmem:[#allocation3_spill] sm:$0xff] }
 0x2a5   : > { %v4312_v10 = vpop.eup %4311  ;;  %v2922_v1 = vmul.f32 0.6931472, %v4310_v62  ;;  %v2475_v13 = vpop.xlane.xlu0 %2474  ;;  %4331 = vpow2.f32 %v2827_v12  ;;  %v2843_v14 = vadd.f32 %v4306_v50, %v4304_v63  ;;  %v2954_v12 = vsub.f32 0.0, %v6065_v54 }
 0x2a6   : > { %v4314_v32 = vpop.eup %4313  ;;  %v2901_v39 = vadd.f32 1e-08, %v2885_v3  ;;  %v2829_v61 = vmul.f32 1.442695, %v2702_v19  ;;  %v2765_v34 = vmul.f32 %v4312_v10, %v2475_v13  ;;  %4333 = vpow2.f32 %v2797_v24  ;;  %v6068_v13 = vld [vmem:[#allocation22_spill] sm:$0xff] }
 0x2a7   : > { %v4316_v9 = vpop.eup %4315  ;;  %v2920_v53 = vmul.f32 0.6931472, %v4314_v32  ;;  %v2964_v36 = vsub.f32 %v5699_v52, %v2922_v1  ;;  %v2478_v21 = vpop.xlane.xlu1 %2477 }
 0x2a8   : > { %v4318_v4 = vpop.eup %4317  ;;  %4335 = vlog2.f32 %v2901_v39  ;;  %v2875_v51 = vmul.f32 1.442695, %v2765_v34  ;;  %v2766_v6 = vmul.f32 %v4316_v9, %v2478_v21 }
 0x2a9   : > { %v4320_v25 = vpop.eup %4319  ;;  %v2963_v45 = vsub.f32 %v6063_v49, %v2920_v53  ;;  %v2980_v26 = vmul.f32 %v2964_v36, %v2948_v33  ;;  %v2891_v17 = vadd.f32 %v4318_v4, %v2843_v14  ;;  %4337 = vpow2.f32 %v2829_v61  ;;  %v6067_v33 = vld [vmem:[#allocation19_spill] sm:$0xff] }
 0x2aa   : > { %v2886_v7 = vadd.f32 %v4320_v25, %v6064_v16  ;;  %4339 = vpow2.f32 %v2875_v51  ;;  %v2877_v37 = vmul.f32 1.442695, %v2766_v6  ;;  %v4322_v52 = vpop.eup %4321  ;;  %v2949_v1 = vsub.f32 0.0, %v6067_v33  ;;  %v6069_v6 = vld [vmem:[#allocation21_spill] sm:$0xff]  ;;  %v6070_v49 = vld [vmem:[#allocation23_spill] sm:$0xff] }
 0x2ab   : > { %v2979_v0 = vmul.f32 %v2963_v45, %v2947_v46  ;;  %v4324_v55 = vpop.eup %4323  ;;  %v2907_v42 = vadd.f32 1e-08, %v2891_v17  ;;  %v3001_v18 = vsel %vm2991_vm2, %v2980_v26, 0.0  ;;  %v2950_v25 = vsub.f32 0.0, %v6069_v6 }
 0x2ac   : > { %v2902_v41 = vadd.f32 1e-08, %v2886_v7  ;;  %4341 = vpow2.f32 %v2877_v37  ;;  %v4326_v29 = vpop.eup %4325  ;;  %v2844_v8 = vadd.f32 %v4324_v55, %v4322_v52 }
 0x2ad   : > { %v2999_v5 = vsel %vm2991_vm2, %v2979_v0, 0.0  ;;  %v4328_v59 = vpop.eup %4327  ;;  %v3007_v0 = vsel %vm2991_vm2, %v5855_v35, 0.0 }
 0x2ae   : > { %v3000_v20 = vadd.f32 %v2999_v5, %v2998_v28  ;;  %4343 = vlog2.f32 %v2902_v41  ;;  %v4330_v2 = vpop.eup %4329  ;;  %v2934_v11 = vmul.f32 0.6931472, %v4328_v59  ;;  %v2955_v5 = vsub.f32 0.0, %v5866_v48 }
 0x2af   : > { %v4332_v30 = vpop.eup %4331  ;;  %4345 = vlog2.f32 %v2907_v42  ;;  %v2892_v60 = vadd.f32 %v4330_v2, %v2844_v8  ;;  %v3011_v2 = vsel %vm2991_vm2, %v5892_v23, 0.0 }
 0x2b0   : > { %v3002_v63 = vadd.f32 %v3001_v18, %v3000_v20  ;;  %v4334_v50 = vpop.eup %4333  ;;  %v2970_v27 = vsub.f32 %v6066_v56, %v2934_v11  ;;  %v2845_v10 = vadd.f32 %v4332_v30, %v4326_v29  ;;  %v3009_v29 = vsel %vm2991_vm2, %v5888_v43, 0.0 }
 0x2b1   : > { %v2908_v62 = vadd.f32 1e-08, %v2892_v60  ;;  %v2956_v11 = vsub.f32 0.0, %v5883_v57  ;;  %v2957_v43 = vsub.f32 0.0, %v5903_v47 }
 0x2b2   : > { %v4336_v22 = vpop.eup %4335  ;;  %v2986_v19 = vmul.f32 %v2970_v27, %v2954_v12 }
 0x2b3   : > { %v4338_v3 = vpop.eup %4337  ;;  %v2924_v24 = vmul.f32 0.6931472, %v4336_v22  ;;  %4347 = vlog2.f32 %v2908_v62 }
 0x2b4   : > { %v4340_v28 = vpop.eup %4339  ;;  %v2846_v39 = vadd.f32 %v4338_v3, %v4334_v50  ;;  %v3013_v60 = vsel %vm2991_vm2, %v2986_v19, 0.0  ;;  %v2958_v50 = vsub.f32 0.0, %v5915_v31 }
 0x2b5   : > { %v2965_v32 = vsub.f32 %v6068_v13, %v2924_v24  ;;  %v2893_v61 = vadd.f32 %v4340_v28, %v2845_v10 }
 0x2b6   : > { %v4342_v34 = vpop.eup %4341 }
 0x2b7   : > { %v2981_v9 = vmul.f32 %v2965_v32, %v2949_v1  ;;  %v2909_v53 = vadd.f32 1e-08, %v2893_v61  ;;  %v2894_v36 = vadd.f32 %v4342_v34, %v2846_v39 }
 0x2b8   : > { %v4344_v14 = vpop.eup %4343 }
 0x2b9   : > { %v3003_v21 = vsel %vm2991_vm2, %v2981_v9, 0.0  ;;  %v2926_v4 = vmul.f32 0.6931472, %v4344_v14  ;;  %4349 = vlog2.f32 %v2909_v53  ;;  %v2910_v15 = vadd.f32 1e-08, %v2894_v36  ;;  %v4346_v46 = vpop.eup %4345 }
 0x2ba   : > { %v3004_v51 = vadd.f32 %v3003_v21, %v3002_v63  ;;  %v2936_v26 = vmul.f32 0.6931472, %v4346_v46 }
 0x2bb   : > { %v2966_v45 = vsub.f32 %v6070_v49, %v2926_v4  ;;  %4351 = vlog2.f32 %v2910_v15 }
 0x2bc   : > { %v2971_v55 = vsub.f32 %v5879_v40, %v2936_v26 }
 0x2bd   : > { %v2982_v17 = vmul.f32 %v2966_v45, %v2950_v25  ;;  %v4348_v16 = vpop.eup %4347 }
 0x2be   : > { %v2938_v37 = vmul.f32 0.6931472, %v4348_v16  ;;  %v2987_v35 = vmul.f32 %v2971_v55, %v2955_v5 }
 0x2bf   : > { %v3005_v7 = vsel %vm2991_vm2, %v2982_v17, 0.0 }
 0x2c0   : > { %v3006_v52 = vadd.f32 %v3005_v7, %v3004_v51  ;;  %v2972_v18 = vsub.f32 %v5901_v38, %v2938_v37  ;;  %v3015_v23 = vsel %vm2991_vm2, %v2987_v35, 0.0 }
 0x2c2   : > { %v3008_v42 = vadd.f32 %v3007_v0, %v3006_v52  ;;  %v2988_v48 = vmul.f32 %v2972_v18, %v2956_v11 }
 0x2c3   : > { %v4350_v41 = vpop.eup %4349 }
 0x2c4   : > { %v3010_v59 = vadd.f32 %v3009_v29, %v3008_v42  ;;  %v2940_v20 = vmul.f32 0.6931472, %v4350_v41 }
 0x2c5   : > { %v4352_v8 = vpop.eup %4351 }
 0x2c6   : > { %v3012_v30 = vadd.f32 %v3011_v2, %v3010_v59  ;;  %v2973_v40 = vsub.f32 %v5907_v44, %v2940_v20  ;;  %v2942_v63 = vmul.f32 0.6931472, %v4352_v8  ;;  %v3017_v44 = vsel %vm2991_vm2, %v2988_v48, 0.0 }
 0x2c8   : > { %v3014_v38 = vadd.f32 %v3013_v60, %v3012_v30  ;;  %v2974_v54 = vsub.f32 %v5918_v58, %v2942_v63  ;;  %v2989_v57 = vmul.f32 %v2973_v40, %v2957_v43 }
 0x2ca   : > { %v3016_v12 = vadd.f32 %v3015_v23, %v3014_v38  ;;  %v2990_v56 = vmul.f32 %v2974_v54, %v2958_v50  ;;  %v3019_v22 = vsel %vm2991_vm2, %v2989_v57, 0.0 }
 0x2cc   : > { %v3018_v27 = vadd.f32 %v3017_v44, %v3016_v12  ;;  %v3021_v47 = vsel %vm2991_vm2, %v2990_v56, 0.0 }
 0x2ce   : > { %v3020_v62 = vadd.f32 %v3019_v22, %v3018_v27 }
 0x2d0   : > { %v3022_v3 = vadd.f32 %v3021_v47, %v3020_v62 }
 0x2d2   : > { %v3023_v24 = vrot.slane %v3022_v3, 4 }
 0x2d4   : > { %v3024_v31 = vadd.f32 %v3023_v24, %v3022_v3 }
 0x2d6   : > { %v3025_v19 = vrot.slane %v3024_v31, 2 }
 0x2d8   : > { %v3026_v58 = vadd.f32 %v3025_v19, %v3024_v31 }
 0x2da   : > { %v3027_v10 = vrot.slane %v3026_v58, 1 }
 0x2dc   : > { %v3028_v28 = vadd.f32 %v3027_v10, %v3026_v58 }
 0x2de   : > { %3030 = vst.msk [vmem:[%s394_s20] sm:$0x1] %vm3029_vm3, %v3028_v28 }
 0x2df PF: > { %s18_s27 = sadd.s32 1, %s4359_s27  }
 0x2e0   : > { %p15_p5 = scmp.ge.s32.totalorder %s18_s27, 4  }
 0x2e2   :  { %17 = sbr.rel (!%p15_p5) target bundleno = 1 (0x1), region = 94 }

</bundles_post_ra>
